<compile_context>
chip_gen: v7x
topology: tpu7x:2x2x1
jax: 0.10.0
libtpu: 0.0.40
codegen_flags: <defaults>
</compile_context>

<pallas_src>
import functools

import jax
import jax.numpy as jnp
from jax import lax
from jax.experimental import pallas as pl
from jax.experimental.pallas import tpu as pltpu


# ----------------------------------------------------------------------------
# Per-generation VMEM budget
# ----------------------------------------------------------------------------
def _vmem_capacity_bytes():
    try:
        return int(pltpu.get_tpu_info().vmem_capacity_bytes)
    except Exception:
        return 64 * 1024 * 1024            # conservative (v7x per-TensorCore)


_VMEM_CAP = _vmem_capacity_bytes()
_VMEM_LIMIT = max(32 * 1024 * 1024, min((_VMEM_CAP * 3) // 4, 100 * 1024 * 1024))


def _rup(v, m):
    return -(-v // m) * m


def _choose_band_rows(B, H, W, H_out, W_out, cin, hidden, oup, stride, use_res, budget):
    """Largest output-row band whose VMEM working set fits the budget."""
    def fits(th):
        th_in = th * stride
        hid = (th_in + 2) * _rup(W + 2, 16) * _rup(hidden, 128) * 2        # bf16 scratch
        x1 = 2 * (H + 2) * _rup(W, 16) * _rup(cin, 128) * 2                # resident image
        x2 = (2 * _rup(cin, 16) * _rup(th * W, 128) * 2) if use_res else 0
        out = 2 * _rup(oup, 8) * _rup(th * W_out, 128) * 4
        wts = (_rup(cin, 16) + _rup(oup, 16) + 9 * 8) * _rup(hidden, 128) * 4
        return hid + x1 + x2 + out + wts <= budget

    def valid(th):
        if H_out % th:
            return False
        nb = H_out // th
        if nb == 1:
            return True
        # multi-band blocks must keep a 128-multiple trailing dim (lane-dense stores)
        if (th * W_out) % 128:
            return False
        if use_res and (th * W) % 128:
            return False
        return True

    cands = [th for th in range(1, H_out + 1) if valid(th) and fits(th)]
    if not cands:
        return H_out
    if B == 1:                              # keep >=2 grid steps for v7x megacore
        multi = [th for th in cands if H_out // th >= 2]
        if multi:
            return max(multi)
    return max(cands)


def _fold_bn(gamma, beta, mean, var, eps=1e-5):
    scale = gamma / jnp.sqrt(var + eps)
    bias = beta - mean * scale
    return scale, bias


# ----------------------------------------------------------------------------
# Fused kernel
# ----------------------------------------------------------------------------
def _make_kernel(*, stride, expand, use_res, th_out, W, W_out, hidden, cin, oup, rc, erc):
    th_in = th_out * stride
    band_rows = th_in + 2                   # padded rows in the hidden scratch band

    def kernel(*refs):
        i = 0
        x1_ref = refs[i]; i += 1            # (1, H+2, W, cin)   bf16, resident per batch
        x2_ref = None
        if use_res:
            x2_ref = refs[i]; i += 1        # (1, cin, th_out*W) bf16, residual band
        if expand:
            w1_ref = refs[i]                # (cin, hidden)      bf16
            b1_ref = refs[i + 1]            # (1, hidden)        f32
            i += 2
        dw_ref = refs[i]                    # (3, 3, hidden)     f32
        b2_ref = refs[i + 1]                # (1, hidden)        f32
        w3t_ref = refs[i + 2]               # (oup, hidden)      bf16
        b3_ref = refs[i + 3]                # (oup, 1)           f32
        i += 4
        selt_ref = None
        if stride == 2:
            selt_ref = refs[i]; i += 1      # (rc*W, rc*W_out)   f32 0/1 column selector
        o_ref = refs[i]                     # (1, oup, th_out*W_out) f32
        hid_ref = refs[i + 1]               # (th_in+2, W+2, hidden) bf16 scratch

        t = pl.program_id(1)
        r0 = pl.multiple_of(t * th_in, th_in)   # first padded input row of this band

        # ---- 1) expand 1x1 (+BN+ReLU) into the bf16 hidden band, chunked --------
        for e0 in range(0, band_rows, erc):
            er = min(erc, band_rows - e0)
            xw = x1_ref[0, pl.ds(r0 + e0, er), :, :]              # (er, W, cin) bf16
            if expand:
                h = jnp.dot(xw.reshape(er * W, cin), w1_ref[...],
                            preferred_element_type=jnp.float32)
                h = jnp.maximum(h + b1_ref[...], 0.0)
                hid_ref[e0:e0 + er, 1:W + 1, :] = (
                    h.reshape(er, W, hidden).astype(hid_ref.dtype))
            else:                                                  # expand_ratio == 1
                hid_ref[e0:e0 + er, 1:W + 1, :] = xw.astype(hid_ref.dtype)

        # ---- 2) zero the depthwise halo (pad=1) ---------------------------------
        zc = jnp.zeros((band_rows, 1, hidden), hid_ref.dtype)
        hid_ref[:, 0:1, :] = zc
        hid_ref[:, W + 1:W + 2, :] = zc
        zr = jnp.zeros((1, W + 2, hidden), hid_ref.dtype)

        @pl.when(t == 0)
        def _():                                                   # top image boundary
            hid_ref[0:1, :, :] = zr

        @pl.when(t == pl.num_programs(1) - 1)
        def _():                                                   # bottom image boundary
            hid_ref[band_rows - 1:band_rows, :, :] = zr

        # ---- 3) depthwise 3x3 (+BN+ReLU) -> project 1x1 (+BN) -> (+residual) ----
        b2 = b2_ref[...]
        b3 = b3_ref[...]
        w3t = w3t_ref[...]
        for c0 in range(0, th_out, rc):                            # static row chunks
            nr = min(rc, th_out - c0)
            acc = jnp.zeros((nr, W, hidden), jnp.float32)          # stays in vregs
            for kh in range(3):
                for kw in range(3):
                    if stride == 1:
                        tap = hid_ref[c0 + kh:c0 + kh + nr, kw:kw + W, :]
                    else:
                        # subsample the needed (even) rows before the FMA
                        tap = hid_ref[2 * c0 + kh:2 * c0 + kh + 2 * nr, kw:kw + W, :]
                        tap = tap.reshape(nr, 2, W, hidden)[:, 0]
                    acc = acc + tap.astype(jnp.float32) * dw_ref[kh, kw]
            acc = jnp.maximum(acc + b2, 0.0)                       # (nr, W, hidden)
            a2 = acc.reshape(nr * W, hidden).astype(jnp.bfloat16)
            # transposed projection: (oup, hidden) . (nr*W, hidden)^T -> (oup, nr*W)
            yt = lax.dot_general(w3t, a2, (((1,), (1,)), ((), ())),
                                 preferred_element_type=jnp.float32)
            if stride == 2:
                # fold the even-column subsample into one 0/1 selection matmul
                yt = jnp.dot(yt, selt_ref[0:nr * W, 0:nr * W_out],
                             preferred_element_type=jnp.float32)
            yt = yt + b3
            if use_res:
                xres = x2_ref[0, :, c0 * W:(c0 + nr) * W]          # (cin, nr*W) bf16
                yt = yt + xres.astype(jnp.float32)
            o_ref[0, :, c0 * W_out:(c0 + nr) * W_out] = yt.astype(o_ref.dtype)

    return kernel


# ----------------------------------------------------------------------------
# InvertedResidual forward (NCHW in / NCHW out, like the PyTorch module)
# ----------------------------------------------------------------------------
@functools.partial(jax.jit, static_argnames=("stride", "expand_ratio"))
def inverted_residual_forward(x_nchw, p, *, stride, expand_ratio):
    assert stride in (1, 2)
    B, Cin, H, W = x_nchw.shape
    if stride == 2:
        # TODO(synk): odd spatial sizes with stride 2 (not used by MobileNetV2).
        assert H % 2 == 0 and W % 2 == 0
    hidden = p["dw_w"].shape[-1]
    oup = p["proj_w"].shape[-1]
    expand = expand_ratio != 1
    use_res = (stride == 1) and (Cin == oup)
    H_out, W_out = H // stride, W // stride

    xf = x_nchw.astype(jnp.float32)
    # NHWC view with an H halo for the expand/depthwise input (bf16: MXU + half VMEM).
    x1 = jnp.pad(jnp.transpose(xf, (0, 2, 3, 1)),
                 ((0, 0), (1, 1), (0, 0), (0, 0))).astype(jnp.bfloat16)
    # Flattened-NCHW view for the fused residual add (lane-dense, no in-kernel relayout).
    x2 = xf.reshape(B, Cin, H * W).astype(jnp.bfloat16) if use_res else None

    # Fold eval-mode BatchNorm into the conv weights / biases; matmul operands in bf16.
    s2, b2 = _fold_bn(*p["bn2"])
    dw = (p["dw_w"] * s2).astype(jnp.float32)          # depthwise stays f32 (v5e-safe VPU)
    s3, b3 = _fold_bn(*p["bn3"])
    w3t = (p["proj_w"] * s3).T.astype(jnp.bfloat16)    # (oup, hidden) for transposed matmul
    if expand:
        s1, b1 = _fold_bn(*p["bn1"])
        w1 = (p["exp_w"] * s1).astype(jnp.bfloat16)

    th_out = _choose_band_rows(B, H, W, H_out, W_out, Cin, hidden, oup, stride, use_res,
                               budget=int(_VMEM_LIMIT * 0.6))
    th_in = th_out * stride
    n_bands = H_out // th_out
    rc = min(8, th_out)            # depthwise/projection row chunk (acc stays in vregs)
    erc = 8                        # expand row chunk (M ~= 128 rows per MXU dot)

    kernel = _make_kernel(stride=stride, expand=expand, use_res=use_res, th_out=th_out,
                          W=W, W_out=W_out, hidden=hidden, cin=Cin, oup=oup, rc=rc, erc=erc)

    inputs = [x1]
    in_specs = [pl.BlockSpec((1, H + 2, W, Cin), lambda b, t: (b, 0, 0, 0))]
    if use_res:
        inputs.append(x2)
        in_specs.append(pl.BlockSpec((1, Cin, th_out * W), lambda b, t: (b, 0, t)))
    if expand:
        inputs += [w1, b1.reshape(1, hidden)]
        in_specs += [pl.BlockSpec((Cin, hidden), lambda b, t: (0, 0)),
                     pl.BlockSpec((1, hidden), lambda b, t: (0, 0))]
    inputs += [dw, b2.reshape(1, hidden), w3t, b3.reshape(oup, 1)]
    in_specs += [pl.BlockSpec((3, 3, hidden), lambda b, t: (0, 0, 0)),
                 pl.BlockSpec((1, hidden), lambda b, t: (0, 0)),
                 pl.BlockSpec((oup, hidden), lambda b, t: (0, 0)),
                 pl.BlockSpec((oup, 1), lambda b, t: (0, 0))]
    if stride == 2:
        ri = jnp.arange(rc * W) // W
        wi = jnp.arange(rc * W) % W
        ro = jnp.arange(rc * W_out) // W_out
        wo = jnp.arange(rc * W_out) % W_out
        selT = ((ri[:, None] == ro[None, :]) &
                (wi[:, None] == 2 * wo[None, :])).astype(jnp.float32)
        inputs.append(selT)
        in_specs.append(pl.BlockSpec((rc * W, rc * W_out), lambda b, t: (0, 0)))

    out_spec = pl.BlockSpec((1, oup, th_out * W_out), lambda b, t: (b, 0, t))

    flops = 2 * 9 * B * H_out * W * hidden + 2 * B * H_out * W * hidden * oup
    if expand:
        flops += 2 * B * (H + 2) * W * Cin * hidden
    bytes_accessed = (B * (H + 2) * W * Cin * 2 + B * oup * H_out * W_out * 4 +
                      (B * Cin * H * W * 2 if use_res else 0) +
                      9 * hidden * 4 + oup * hidden * 2 + (Cin * hidden * 2 if expand else 0))

    y = pl.pallas_call(
        kernel,
        out_shape=jax.ShapeDtypeStruct((B, oup, H_out * W_out), jnp.float32),
        grid=(B, n_bands),
        in_specs=in_specs,
        out_specs=out_spec,
        scratch_shapes=[pltpu.VMEM((th_in + 2, W + 2, hidden), jnp.bfloat16)],
        compiler_params=pltpu.CompilerParams(
            dimension_semantics=("parallel", "parallel"),
            vmem_limit_bytes=_VMEM_LIMIT),
        cost_estimate=pl.CostEstimate(flops=int(flops), transcendentals=0,
                                      bytes_accessed=int(bytes_accessed)),
    )(*inputs)
    # Kernel already emitted flattened NCHW -> just unflatten spatial dims (no transpose).
    return y.reshape(B, oup, H_out, W_out)


# ----------------------------------------------------------------------------
# Deterministic parameter init (shapes match the nn.Module __init__)
# ----------------------------------------------------------------------------
def init_params(key, inp, oup, expand_ratio):
    hidden = int(round(inp * expand_ratio))
    ks = jax.random.split(key, 8)

    def bn_params(k, c):
        k1, k2, k3, k4 = jax.random.split(k, 4)
        gamma = 1.0 + 0.1 * jax.random.normal(k1, (c,), jnp.float32)
        beta = 0.1 * jax.random.normal(k2, (c,), jnp.float32)
        mean = 0.1 * jax.random.normal(k3, (c,), jnp.float32)
        var = jnp.abs(jax.random.normal(k4, (c,), jnp.float32)) + 0.5
        return (gamma, beta, mean, var)

    p = {}
    if expand_ratio != 1:
        p["exp_w"] = 0.2 * jax.random.normal(ks[0], (inp, hidden), jnp.float32)
        p["bn1"] = bn_params(ks[1], hidden)
    p["dw_w"] = 0.2 * jax.random.normal(ks[2], (3, 3, hidden), jnp.float32)
    p["bn2"] = bn_params(ks[3], hidden)
    p["proj_w"] = 0.2 * jax.random.normal(ks[4], (hidden, oup), jnp.float32)
    p["bn3"] = bn_params(ks[5], oup)
    return p


# ----------------------------------------------------------------------------
# Pure-JAX reference (lax.conv) for validation
# ----------------------------------------------------------------------------
def reference_forward(x_nchw, p, *, stride, expand_ratio):
    def bn(x, gamma, beta, mean, var, eps=1e-5):
        s = gamma / jnp.sqrt(var + eps)
        return x * s[None, :, None, None] + (beta - mean * s)[None, :, None, None]

    x = x_nchw.astype(jnp.float32)
    h = x
    if expand_ratio != 1:
        w = jnp.transpose(p["exp_w"], (1, 0))[:, :, None, None]
        h = lax.conv_general_dilated(h, w, (1, 1), "VALID",
                                     dimension_numbers=("NCHW", "OIHW", "NCHW"))
        h = jax.nn.relu(bn(h, *p["bn1"]))
    hidden = p["dw_w"].shape[-1]
    dw = jnp.transpose(p["dw_w"], (2, 0, 1))[:, None, :, :]
    h = lax.conv_general_dilated(h, dw, (stride, stride), ((1, 1), (1, 1)),
                                 dimension_numbers=("NCHW", "OIHW", "NCHW"),
                                 feature_group_count=hidden)
    h = jax.nn.relu(bn(h, *p["bn2"]))
    w3 = jnp.transpose(p["proj_w"], (1, 0))[:, :, None, None]
    h = lax.conv_general_dilated(h, w3, (1, 1), "VALID",
                                 dimension_numbers=("NCHW", "OIHW", "NCHW"))
    h = bn(h, *p["bn3"])
    use_res = (stride == 1) and (x.shape[1] == h.shape[1])
    return x + h if use_res else h


# ----------------------------------------------------------------------------
if __name__ == "__main__":
    key = jax.random.PRNGKey(0)
    B, H, W = 2, 16, 16
    configs = [
        dict(inp=4, oup=4, stride=1, expand_ratio=6),   # residual path
        dict(inp=4, oup=8, stride=2, expand_ratio=6),   # stride-2 path
        dict(inp=8, oup=8, stride=1, expand_ratio=1),   # no-expand + residual
    ]
    for i, cfg in enumerate(configs):
        kx, kp = jax.random.split(jax.random.fold_in(key, i))
        x = jax.random.normal(kx, (B, cfg["inp"], H, W), jnp.float32)  # NCHW
        params = init_params(kp, cfg["inp"], cfg["oup"], cfg["expand_ratio"])

        out = inverted_residual_forward(x, params, stride=cfg["stride"],
                                        expand_ratio=cfg["expand_ratio"])
        out = jax.block_until_ready(out)

        ref = reference_forward(x, params, stride=cfg["stride"],
                                expand_ratio=cfg["expand_ratio"])
        assert out.shape == ref.shape, (cfg, out.shape, ref.shape)
        # Tolerance relaxed vs. the f32 version: matmul operands / hidden band are bf16.
        err = float(jnp.max(jnp.abs(out - ref)))
        assert jnp.allclose(out, ref, atol=5e-2, rtol=5e-2), (cfg, err)

    print("KERNEL_OK")
</pallas_src>

<mosaic_0001>
module attributes {stable_mosaic.version = 11 : i64} {
  func.func @kernel(%arg0: i32, %arg1: i32, %arg2: memref<1x18x16x4xbf16, #tpu.memory_space<vmem>>, %arg3: memref<1x4x256xbf16, #tpu.memory_space<vmem>>, %arg4: memref<4x24xbf16, #tpu.memory_space<vmem>>, %arg5: memref<1x24xf32, #tpu.memory_space<vmem>>, %arg6: memref<3x3x24xf32, #tpu.memory_space<vmem>>, %arg7: memref<1x24xf32, #tpu.memory_space<vmem>>, %arg8: memref<4x24xbf16, #tpu.memory_space<vmem>>, %arg9: memref<4x1xf32, #tpu.memory_space<vmem>>, %arg10: memref<1x4x256xf32, #tpu.memory_space<vmem>>, %arg11: memref<18x18x24xbf16, #tpu.memory_space<vmem>>) attributes {dimension_semantics = [#tpu.dimension_semantics<parallel>, #tpu.dimension_semantics<parallel>], iteration_bounds = array<i64: 2, 1>, scalar_prefetch = 0 : i64, scratch_operands = 1 : i64, tpu.core_type = #tpu.core_type<tc>, window_params = [{transform_indices = @transform_0, window_bounds = array<i64: 1, 18, 16, 4>}, {transform_indices = @transform_1, window_bounds = array<i64: 1, 4, 256>}, {pipeline_mode = #tpu.pipeline_mode<synchronous>, transform_indices = @transform_2, window_bounds = array<i64: 4, 24>}, {pipeline_mode = #tpu.pipeline_mode<synchronous>, transform_indices = @transform_3, window_bounds = array<i64: 1, 24>}, {pipeline_mode = #tpu.pipeline_mode<synchronous>, transform_indices = @transform_4, window_bounds = array<i64: 3, 3, 24>}, {pipeline_mode = #tpu.pipeline_mode<synchronous>, transform_indices = @transform_5, window_bounds = array<i64: 1, 24>}, {pipeline_mode = #tpu.pipeline_mode<synchronous>, transform_indices = @transform_6, window_bounds = array<i64: 4, 24>}, {pipeline_mode = #tpu.pipeline_mode<synchronous>, transform_indices = @transform_7, window_bounds = array<i64: 4, 1>}, {transform_indices = @transform_8, window_bounds = array<i64: 1, 4, 256>}]} {
    %c16_i32 = arith.constant 16 : i32
    %0 = arith.muli %arg1, %c16_i32 : i32
    %1 = tpu.assume_multiple %0, 16 : i32
    %c0_i32 = arith.constant 0 : i32
    %2 = arith.addi %1, %c0_i32 : i32
    %c0 = arith.constant 0 : index
    %3 = arith.index_cast %2 : i32 to index
    %c0_0 = arith.constant 0 : index
    %c0_1 = arith.constant 0 : index
    %4 = vector.load %arg2[%c0, %3, %c0_0, %c0_1] : memref<1x18x16x4xbf16, #tpu.memory_space<vmem>>, vector<1x8x16x4xbf16>
    %5 = vector.shape_cast %4 : vector<1x8x16x4xbf16> to vector<8x16x4xbf16>
    %6 = vector.shape_cast %5 : vector<8x16x4xbf16> to vector<128x4xbf16>
    %c0_2 = arith.constant 0 : index
    %c0_3 = arith.constant 0 : index
    %7 = vector.load %arg4[%c0_2, %c0_3] : memref<4x24xbf16, #tpu.memory_space<vmem>>, vector<4x24xbf16>
    %cst = arith.constant dense<0.000000e+00> : vector<128x24xf32>
    %8 = tpu.matmul %6, %7, %cst {dimension_numbers = #tpu.dot_dimension_numbers<[1], [0], [0], [1], [0, 0, 1, 1], [], []>} : vector<128x4xbf16>, vector<4x24xbf16>, vector<128x24xf32> -> vector<128x24xf32>
    %c0_4 = arith.constant 0 : index
    %c0_5 = arith.constant 0 : index
    %9 = vector.load %arg5[%c0_4, %c0_5] : memref<1x24xf32, #tpu.memory_space<vmem>>, vector<1x24xf32>
    %10 = vector.broadcast %9 : vector<1x24xf32> to vector<128x24xf32>
    %11 = arith.addf %8, %10 : vector<128x24xf32>
    %cst_6 = arith.constant 0.000000e+00 : f32
    %12 = vector.broadcast %cst_6 : f32 to vector<128x24xf32>
    %13 = arith.maximumf %11, %12 : vector<128x24xf32>
    %14 = vector.shape_cast %13 : vector<128x24xf32> to vector<8x16x24xf32>
    %15 = arith.truncf %14 : vector<8x16x24xf32> to vector<8x16x24xbf16>
    %c0_7 = arith.constant 0 : index
    %c1 = arith.constant 1 : index
    %c0_8 = arith.constant 0 : index
    %16 = vector.load %arg11[%c0_7, %c1, %c0_8] : memref<18x18x24xbf16, #tpu.memory_space<vmem>>, vector<8x16x24xbf16>
    tpu.vector_store %arg11[%c0_7, %c1, %c0_8], %15 {strides = array<i32>} : memref<18x18x24xbf16, #tpu.memory_space<vmem>>, vector<8x16x24xbf16>,
    %c8_i32 = arith.constant 8 : i32
    %17 = arith.addi %1, %c8_i32 : i32
    %c0_9 = arith.constant 0 : index
    %18 = arith.index_cast %17 : i32 to index
    %c0_10 = arith.constant 0 : index
    %c0_11 = arith.constant 0 : index
    %19 = vector.load %arg2[%c0_9, %18, %c0_10, %c0_11] : memref<1x18x16x4xbf16, #tpu.memory_space<vmem>>, vector<1x8x16x4xbf16>
    %20 = vector.shape_cast %19 : vector<1x8x16x4xbf16> to vector<8x16x4xbf16>
    %21 = vector.shape_cast %20 : vector<8x16x4xbf16> to vector<128x4xbf16>
    %c0_12 = arith.constant 0 : index
    %c0_13 = arith.constant 0 : index
    %22 = vector.load %arg4[%c0_12, %c0_13] : memref<4x24xbf16, #tpu.memory_space<vmem>>, vector<4x24xbf16>
    %cst_14 = arith.constant dense<0.000000e+00> : vector<128x24xf32>
    %23 = tpu.matmul %21, %22, %cst_14 {dimension_numbers = #tpu.dot_dimension_numbers<[1], [0], [0], [1], [0, 0, 1, 1], [], []>} : vector<128x4xbf16>, vector<4x24xbf16>, vector<128x24xf32> -> vector<128x24xf32>
    %c0_15 = arith.constant 0 : index
    %c0_16 = arith.constant 0 : index
    %24 = vector.load %arg5[%c0_15, %c0_16] : memref<1x24xf32, #tpu.memory_space<vmem>>, vector<1x24xf32>
    %25 = vector.broadcast %24 : vector<1x24xf32> to vector<128x24xf32>
    %26 = arith.addf %23, %25 : vector<128x24xf32>
    %cst_17 = arith.constant 0.000000e+00 : f32
    %27 = vector.broadcast %cst_17 : f32 to vector<128x24xf32>
    %28 = arith.maximumf %26, %27 : vector<128x24xf32>
    %29 = vector.shape_cast %28 : vector<128x24xf32> to vector<8x16x24xf32>
    %30 = arith.truncf %29 : vector<8x16x24xf32> to vector<8x16x24xbf16>
    %c8 = arith.constant 8 : index
    %c1_18 = arith.constant 1 : index
    %c0_19 = arith.constant 0 : index
    %31 = vector.load %arg11[%c8, %c1_18, %c0_19] : memref<18x18x24xbf16, #tpu.memory_space<vmem>>, vector<8x16x24xbf16>
    tpu.vector_store %arg11[%c8, %c1_18, %c0_19], %30 {strides = array<i32>} : memref<18x18x24xbf16, #tpu.memory_space<vmem>>, vector<8x16x24xbf16>,
    %c16_i32_20 = arith.constant 16 : i32
    %32 = arith.addi %1, %c16_i32_20 : i32
    %c0_21 = arith.constant 0 : index
    %33 = arith.index_cast %32 : i32 to index
    %c0_22 = arith.constant 0 : index
    %c0_23 = arith.constant 0 : index
    %34 = vector.load %arg2[%c0_21, %33, %c0_22, %c0_23] : memref<1x18x16x4xbf16, #tpu.memory_space<vmem>>, vector<1x2x16x4xbf16>
    %35 = vector.shape_cast %34 : vector<1x2x16x4xbf16> to vector<2x16x4xbf16>
    %36 = vector.shape_cast %35 : vector<2x16x4xbf16> to vector<32x4xbf16>
    %c0_24 = arith.constant 0 : index
    %c0_25 = arith.constant 0 : index
    %37 = vector.load %arg4[%c0_24, %c0_25] : memref<4x24xbf16, #tpu.memory_space<vmem>>, vector<4x24xbf16>
    %cst_26 = arith.constant dense<0.000000e+00> : vector<32x24xf32>
    %38 = tpu.matmul %36, %37, %cst_26 {dimension_numbers = #tpu.dot_dimension_numbers<[1], [0], [0], [1], [0, 0, 1, 1], [], []>} : vector<32x4xbf16>, vector<4x24xbf16>, vector<32x24xf32> -> vector<32x24xf32>
    %c0_27 = arith.constant 0 : index
    %c0_28 = arith.constant 0 : index
    %39 = vector.load %arg5[%c0_27, %c0_28] : memref<1x24xf32, #tpu.memory_space<vmem>>, vector<1x24xf32>
    %40 = vector.broadcast %39 : vector<1x24xf32> to vector<32x24xf32>
    %41 = arith.addf %38, %40 : vector<32x24xf32>
    %cst_29 = arith.constant 0.000000e+00 : f32
    %42 = vector.broadcast %cst_29 : f32 to vector<32x24xf32>
    %43 = arith.maximumf %41, %42 : vector<32x24xf32>
    %44 = vector.shape_cast %43 : vector<32x24xf32> to vector<2x16x24xf32>
    %45 = arith.truncf %44 : vector<2x16x24xf32> to vector<2x16x24xbf16>
    %c16 = arith.constant 16 : index
    %c1_30 = arith.constant 1 : index
    %c0_31 = arith.constant 0 : index
    %46 = vector.load %arg11[%c16, %c1_30, %c0_31] : memref<18x18x24xbf16, #tpu.memory_space<vmem>>, vector<2x16x24xbf16>
    tpu.vector_store %arg11[%c16, %c1_30, %c0_31], %45 {strides = array<i32>} : memref<18x18x24xbf16, #tpu.memory_space<vmem>>, vector<2x16x24xbf16>,
    %cst_32 = arith.constant 0.000000e+00 : bf16
    %47 = vector.broadcast %cst_32 : bf16 to vector<18x1x24xbf16>
    %c0_33 = arith.constant 0 : index
    %c0_34 = arith.constant 0 : index
    %c0_35 = arith.constant 0 : index
    %48 = vector.load %arg11[%c0_33, %c0_34, %c0_35] : memref<18x18x24xbf16, #tpu.memory_space<vmem>>, vector<18x1x24xbf16>
    tpu.vector_store %arg11[%c0_33, %c0_34, %c0_35], %47 {strides = array<i32>} : memref<18x18x24xbf16, #tpu.memory_space<vmem>>, vector<18x1x24xbf16>,
    %c0_36 = arith.constant 0 : index
    %c17 = arith.constant 17 : index
    %c0_37 = arith.constant 0 : index
    %49 = vector.load %arg11[%c0_36, %c17, %c0_37] : memref<18x18x24xbf16, #tpu.memory_space<vmem>>, vector<18x1x24xbf16>
    tpu.vector_store %arg11[%c0_36, %c17, %c0_37], %47 {strides = array<i32>} : memref<18x18x24xbf16, #tpu.memory_space<vmem>>, vector<18x1x24xbf16>,
    %cst_38 = arith.constant 0.000000e+00 : bf16
    %50 = vector.broadcast %cst_38 : bf16 to vector<1x18x24xbf16>
    %c0_i32_39 = arith.constant 0 : i32
    %51 = arith.cmpi eq, %arg1, %c0_i32_39 : i32
    %52 = arith.extui %51 : i1 to i32
    %c0_i32_40 = arith.constant 0 : i32
    %53 = arith.cmpi ne, %52, %c0_i32_40 : i32
    scf.if %53 {
      %c0_171 = arith.constant 0 : index
      %c0_172 = arith.constant 0 : index
      %c0_173 = arith.constant 0 : index
      %240 = vector.load %arg11[%c0_171, %c0_172, %c0_173] : memref<18x18x24xbf16, #tpu.memory_space<vmem>>, vector<1x18x24xbf16>
      tpu.vector_store %arg11[%c0_171, %c0_172, %c0_173], %50 {strides = array<i32>} : memref<18x18x24xbf16, #tpu.memory_space<vmem>>, vector<1x18x24xbf16>,
    } else {
    }
    %c0_i32_41 = arith.constant 0 : i32
    %54 = arith.cmpi eq, %arg1, %c0_i32_41 : i32
    %55 = arith.extui %54 : i1 to i32
    %c0_i32_42 = arith.constant 0 : i32
    %56 = arith.cmpi ne, %55, %c0_i32_42 : i32
    scf.if %56 {
      %c17_171 = arith.constant 17 : index
      %c0_172 = arith.constant 0 : index
      %c0_173 = arith.constant 0 : index
      %240 = vector.load %arg11[%c17_171, %c0_172, %c0_173] : memref<18x18x24xbf16, #tpu.memory_space<vmem>>, vector<1x18x24xbf16>
      tpu.vector_store %arg11[%c17_171, %c0_172, %c0_173], %50 {strides = array<i32>} : memref<18x18x24xbf16, #tpu.memory_space<vmem>>, vector<1x18x24xbf16>,
    } else {
    }
    %c0_43 = arith.constant 0 : index
    %c0_44 = arith.constant 0 : index
    %57 = vector.load %arg7[%c0_43, %c0_44] : memref<1x24xf32, #tpu.memory_space<vmem>>, vector<1x24xf32>
    %c0_45 = arith.constant 0 : index
    %c0_46 = arith.constant 0 : index
    %58 = vector.load %arg9[%c0_45, %c0_46] : memref<4x1xf32, #tpu.memory_space<vmem>>, vector<4x1xf32>
    %c0_47 = arith.constant 0 : index
    %c0_48 = arith.constant 0 : index
    %59 = vector.load %arg8[%c0_47, %c0_48] : memref<4x24xbf16, #tpu.memory_space<vmem>>, vector<4x24xbf16>
    %cst_49 = arith.constant 0.000000e+00 : f32
    %60 = vector.broadcast %cst_49 : f32 to vector<8x16x24xf32>
    %c0_50 = arith.constant 0 : index
    %c0_51 = arith.constant 0 : index
    %c0_52 = arith.constant 0 : index
    %61 = vector.load %arg11[%c0_50, %c0_51, %c0_52] : memref<18x18x24xbf16, #tpu.memory_space<vmem>>, vector<8x16x24xbf16>
    %62 = arith.extf %61 : vector<8x16x24xbf16> to vector<8x16x24xf32>
    %c0_53 = arith.constant 0 : index
    %c0_54 = arith.constant 0 : index
    %c0_55 = arith.constant 0 : index
    %63 = vector.load %arg6[%c0_53, %c0_54, %c0_55] : memref<3x3x24xf32, #tpu.memory_space<vmem>>, vector<1x1x24xf32>
    %64 = vector.shape_cast %63 : vector<1x1x24xf32> to vector<24xf32>
    %65 = vector.shape_cast %64 : vector<24xf32> to vector<1x1x24xf32>
    %66 = vector.broadcast %65 : vector<1x1x24xf32> to vector<8x16x24xf32>
    %67 = arith.mulf %62, %66 : vector<8x16x24xf32>
    %68 = arith.addf %60, %67 : vector<8x16x24xf32>
    %c0_56 = arith.constant 0 : index
    %c1_57 = arith.constant 1 : index
    %c0_58 = arith.constant 0 : index
    %69 = vector.load %arg11[%c0_56, %c1_57, %c0_58] : memref<18x18x24xbf16, #tpu.memory_space<vmem>>, vector<8x16x24xbf16>
    %70 = arith.extf %69 : vector<8x16x24xbf16> to vector<8x16x24xf32>
    %c0_59 = arith.constant 0 : index
    %c1_60 = arith.constant 1 : index
    %c0_61 = arith.constant 0 : index
    %71 = vector.load %arg6[%c0_59, %c1_60, %c0_61] : memref<3x3x24xf32, #tpu.memory_space<vmem>>, vector<1x1x24xf32>
    %72 = vector.shape_cast %71 : vector<1x1x24xf32> to vector<24xf32>
    %73 = vector.shape_cast %72 : vector<24xf32> to vector<1x1x24xf32>
    %74 = vector.broadcast %73 : vector<1x1x24xf32> to vector<8x16x24xf32>
    %75 = arith.mulf %70, %74 : vector<8x16x24xf32>
    %76 = arith.addf %68, %75 : vector<8x16x24xf32>
    %c0_62 = arith.constant 0 : index
    %c2 = arith.constant 2 : index
    %c0_63 = arith.constant 0 : index
    %77 = vector.load %arg11[%c0_62, %c2, %c0_63] : memref<18x18x24xbf16, #tpu.memory_space<vmem>>, vector<8x16x24xbf16>
    %78 = arith.extf %77 : vector<8x16x24xbf16> to vector<8x16x24xf32>
    %c0_64 = arith.constant 0 : index
    %c2_65 = arith.constant 2 : index
    %c0_66 = arith.constant 0 : index
    %79 = vector.load %arg6[%c0_64, %c2_65, %c0_66] : memref<3x3x24xf32, #tpu.memory_space<vmem>>, vector<1x1x24xf32>
    %80 = vector.shape_cast %79 : vector<1x1x24xf32> to vector<24xf32>
    %81 = vector.shape_cast %80 : vector<24xf32> to vector<1x1x24xf32>
    %82 = vector.broadcast %81 : vector<1x1x24xf32> to vector<8x16x24xf32>
    %83 = arith.mulf %78, %82 : vector<8x16x24xf32>
    %84 = arith.addf %76, %83 : vector<8x16x24xf32>
    %c1_67 = arith.constant 1 : index
    %c0_68 = arith.constant 0 : index
    %c0_69 = arith.constant 0 : index
    %85 = vector.load %arg11[%c1_67, %c0_68, %c0_69] : memref<18x18x24xbf16, #tpu.memory_space<vmem>>, vector<8x16x24xbf16>
    %86 = arith.extf %85 : vector<8x16x24xbf16> to vector<8x16x24xf32>
    %c1_70 = arith.constant 1 : index
    %c0_71 = arith.constant 0 : index
    %c0_72 = arith.constant 0 : index
    %87 = vector.load %arg6[%c1_70, %c0_71, %c0_72] : memref<3x3x24xf32, #tpu.memory_space<vmem>>, vector<1x1x24xf32>
    %88 = vector.shape_cast %87 : vector<1x1x24xf32> to vector<24xf32>
    %89 = vector.shape_cast %88 : vector<24xf32> to vector<1x1x24xf32>
    %90 = vector.broadcast %89 : vector<1x1x24xf32> to vector<8x16x24xf32>
    %91 = arith.mulf %86, %90 : vector<8x16x24xf32>
    %92 = arith.addf %84, %91 : vector<8x16x24xf32>
    %c1_73 = arith.constant 1 : index
    %c1_74 = arith.constant 1 : index
    %c0_75 = arith.constant 0 : index
    %93 = vector.load %arg11[%c1_73, %c1_74, %c0_75] : memref<18x18x24xbf16, #tpu.memory_space<vmem>>, vector<8x16x24xbf16>
    %94 = arith.extf %93 : vector<8x16x24xbf16> to vector<8x16x24xf32>
    %c1_76 = arith.constant 1 : index
    %c1_77 = arith.constant 1 : index
    %c0_78 = arith.constant 0 : index
    %95 = vector.load %arg6[%c1_76, %c1_77, %c0_78] : memref<3x3x24xf32, #tpu.memory_space<vmem>>, vector<1x1x24xf32>
    %96 = vector.shape_cast %95 : vector<1x1x24xf32> to vector<24xf32>
    %97 = vector.shape_cast %96 : vector<24xf32> to vector<1x1x24xf32>
    %98 = vector.broadcast %97 : vector<1x1x24xf32> to vector<8x16x24xf32>
    %99 = arith.mulf %94, %98 : vector<8x16x24xf32>
    %100 = arith.addf %92, %99 : vector<8x16x24xf32>
    %c1_79 = arith.constant 1 : index
    %c2_80 = arith.constant 2 : index
    %c0_81 = arith.constant 0 : index
    %101 = vector.load %arg11[%c1_79, %c2_80, %c0_81] : memref<18x18x24xbf16, #tpu.memory_space<vmem>>, vector<8x16x24xbf16>
    %102 = arith.extf %101 : vector<8x16x24xbf16> to vector<8x16x24xf32>
    %c1_82 = arith.constant 1 : index
    %c2_83 = arith.constant 2 : index
    %c0_84 = arith.constant 0 : index
    %103 = vector.load %arg6[%c1_82, %c2_83, %c0_84] : memref<3x3x24xf32, #tpu.memory_space<vmem>>, vector<1x1x24xf32>
    %104 = vector.shape_cast %103 : vector<1x1x24xf32> to vector<24xf32>
    %105 = vector.shape_cast %104 : vector<24xf32> to vector<1x1x24xf32>
    %106 = vector.broadcast %105 : vector<1x1x24xf32> to vector<8x16x24xf32>
    %107 = arith.mulf %102, %106 : vector<8x16x24xf32>
    %108 = arith.addf %100, %107 : vector<8x16x24xf32>
    %c2_85 = arith.constant 2 : index
    %c0_86 = arith.constant 0 : index
    %c0_87 = arith.constant 0 : index
    %109 = vector.load %arg11[%c2_85, %c0_86, %c0_87] : memref<18x18x24xbf16, #tpu.memory_space<vmem>>, vector<8x16x24xbf16>
    %110 = arith.extf %109 : vector<8x16x24xbf16> to vector<8x16x24xf32>
    %c2_88 = arith.constant 2 : index
    %c0_89 = arith.constant 0 : index
    %c0_90 = arith.constant 0 : index
    %111 = vector.load %arg6[%c2_88, %c0_89, %c0_90] : memref<3x3x24xf32, #tpu.memory_space<vmem>>, vector<1x1x24xf32>
    %112 = vector.shape_cast %111 : vector<1x1x24xf32> to vector<24xf32>
    %113 = vector.shape_cast %112 : vector<24xf32> to vector<1x1x24xf32>
    %114 = vector.broadcast %113 : vector<1x1x24xf32> to vector<8x16x24xf32>
    %115 = arith.mulf %110, %114 : vector<8x16x24xf32>
    %116 = arith.addf %108, %115 : vector<8x16x24xf32>
    %c2_91 = arith.constant 2 : index
    %c1_92 = arith.constant 1 : index
    %c0_93 = arith.constant 0 : index
    %117 = vector.load %arg11[%c2_91, %c1_92, %c0_93] : memref<18x18x24xbf16, #tpu.memory_space<vmem>>, vector<8x16x24xbf16>
    %118 = arith.extf %117 : vector<8x16x24xbf16> to vector<8x16x24xf32>
    %c2_94 = arith.constant 2 : index
    %c1_95 = arith.constant 1 : index
    %c0_96 = arith.constant 0 : index
    %119 = vector.load %arg6[%c2_94, %c1_95, %c0_96] : memref<3x3x24xf32, #tpu.memory_space<vmem>>, vector<1x1x24xf32>
    %120 = vector.shape_cast %119 : vector<1x1x24xf32> to vector<24xf32>
    %121 = vector.shape_cast %120 : vector<24xf32> to vector<1x1x24xf32>
    %122 = vector.broadcast %121 : vector<1x1x24xf32> to vector<8x16x24xf32>
    %123 = arith.mulf %118, %122 : vector<8x16x24xf32>
    %124 = arith.addf %116, %123 : vector<8x16x24xf32>
    %c2_97 = arith.constant 2 : index
    %c2_98 = arith.constant 2 : index
    %c0_99 = arith.constant 0 : index
    %125 = vector.load %arg11[%c2_97, %c2_98, %c0_99] : memref<18x18x24xbf16, #tpu.memory_space<vmem>>, vector<8x16x24xbf16>
    %126 = arith.extf %125 : vector<8x16x24xbf16> to vector<8x16x24xf32>
    %c2_100 = arith.constant 2 : index
    %c2_101 = arith.constant 2 : index
    %c0_102 = arith.constant 0 : index
    %127 = vector.load %arg6[%c2_100, %c2_101, %c0_102] : memref<3x3x24xf32, #tpu.memory_space<vmem>>, vector<1x1x24xf32>
    %128 = vector.shape_cast %127 : vector<1x1x24xf32> to vector<24xf32>
    %129 = vector.shape_cast %128 : vector<24xf32> to vector<1x1x24xf32>
    %130 = vector.broadcast %129 : vector<1x1x24xf32> to vector<8x16x24xf32>
    %131 = arith.mulf %126, %130 : vector<8x16x24xf32>
    %132 = arith.addf %124, %131 : vector<8x16x24xf32>
    %133 = vector.shape_cast %57 : vector<1x24xf32> to vector<1x1x24xf32>
    %134 = vector.broadcast %133 : vector<1x1x24xf32> to vector<8x16x24xf32>
    %135 = arith.addf %132, %134 : vector<8x16x24xf32>
    %cst_103 = arith.constant 0.000000e+00 : f32
    %136 = vector.broadcast %cst_103 : f32 to vector<8x16x24xf32>
    %137 = arith.maximumf %135, %136 : vector<8x16x24xf32>
    %138 = vector.shape_cast %137 : vector<8x16x24xf32> to vector<128x24xf32>
    %139 = arith.truncf %138 : vector<128x24xf32> to vector<128x24xbf16>
    %cst_104 = arith.constant dense<0.000000e+00> : vector<4x128xf32>
    %140 = tpu.matmul %59, %139, %cst_104 {dimension_numbers = #tpu.dot_dimension_numbers<[1], [1], [0], [0], [0, 0, 1, 0], [], []>} : vector<4x24xbf16>, vector<128x24xbf16>, vector<4x128xf32> -> vector<4x128xf32>
    %141 = vector.broadcast %58 : vector<4x1xf32> to vector<4x128xf32>
    %142 = arith.addf %140, %141 : vector<4x128xf32>
    %c0_105 = arith.constant 0 : index
    %c0_106 = arith.constant 0 : index
    %c0_107 = arith.constant 0 : index
    %143 = vector.load %arg3[%c0_105, %c0_106, %c0_107] : memref<1x4x256xbf16, #tpu.memory_space<vmem>>, vector<1x4x128xbf16>
    %144 = vector.shape_cast %143 : vector<1x4x128xbf16> to vector<4x128xbf16>
    %145 = arith.extf %144 : vector<4x128xbf16> to vector<4x128xf32>
    %146 = arith.addf %142, %145 : vector<4x128xf32>
    %c0_108 = arith.constant 0 : index
    %c0_109 = arith.constant 0 : index
    %c0_110 = arith.constant 0 : index
    %147 = vector.load %arg10[%c0_108, %c0_109, %c0_110] : memref<1x4x256xf32, #tpu.memory_space<vmem>>, vector<1x4x128xf32>
    %148 = vector.shape_cast %147 : vector<1x4x128xf32> to vector<4x128xf32>
    %149 = vector.shape_cast %146 : vector<4x128xf32> to vector<1x4x128xf32>
    tpu.vector_store %arg10[%c0_108, %c0_109, %c0_110], %149 {strides = array<i32>} : memref<1x4x256xf32, #tpu.memory_space<vmem>>, vector<1x4x128xf32>,
    %cst_111 = arith.constant 0.000000e+00 : f32
    %150 = vector.broadcast %cst_111 : f32 to vector<8x16x24xf32>
    %c8_112 = arith.constant 8 : index
    %c0_113 = arith.constant 0 : index
    %c0_114 = arith.constant 0 : index
    %151 = vector.load %arg11[%c8_112, %c0_113, %c0_114] : memref<18x18x24xbf16, #tpu.memory_space<vmem>>, vector<8x16x24xbf16>
    %152 = arith.extf %151 : vector<8x16x24xbf16> to vector<8x16x24xf32>
    %c0_115 = arith.constant 0 : index
    %c0_116 = arith.constant 0 : index
    %c0_117 = arith.constant 0 : index
    %153 = vector.load %arg6[%c0_115, %c0_116, %c0_117] : memref<3x3x24xf32, #tpu.memory_space<vmem>>, vector<1x1x24xf32>
    %154 = vector.shape_cast %153 : vector<1x1x24xf32> to vector<24xf32>
    %155 = vector.shape_cast %154 : vector<24xf32> to vector<1x1x24xf32>
    %156 = vector.broadcast %155 : vector<1x1x24xf32> to vector<8x16x24xf32>
    %157 = arith.mulf %152, %156 : vector<8x16x24xf32>
    %158 = arith.addf %150, %157 : vector<8x16x24xf32>
    %c8_118 = arith.constant 8 : index
    %c1_119 = arith.constant 1 : index
    %c0_120 = arith.constant 0 : index
    %159 = vector.load %arg11[%c8_118, %c1_119, %c0_120] : memref<18x18x24xbf16, #tpu.memory_space<vmem>>, vector<8x16x24xbf16>
    %160 = arith.extf %159 : vector<8x16x24xbf16> to vector<8x16x24xf32>
    %c0_121 = arith.constant 0 : index
    %c1_122 = arith.constant 1 : index
    %c0_123 = arith.constant 0 : index
    %161 = vector.load %arg6[%c0_121, %c1_122, %c0_123] : memref<3x3x24xf32, #tpu.memory_space<vmem>>, vector<1x1x24xf32>
    %162 = vector.shape_cast %161 : vector<1x1x24xf32> to vector<24xf32>
    %163 = vector.shape_cast %162 : vector<24xf32> to vector<1x1x24xf32>
    %164 = vector.broadcast %163 : vector<1x1x24xf32> to vector<8x16x24xf32>
    %165 = arith.mulf %160, %164 : vector<8x16x24xf32>
    %166 = arith.addf %158, %165 : vector<8x16x24xf32>
    %c8_124 = arith.constant 8 : index
    %c2_125 = arith.constant 2 : index
    %c0_126 = arith.constant 0 : index
    %167 = vector.load %arg11[%c8_124, %c2_125, %c0_126] : memref<18x18x24xbf16, #tpu.memory_space<vmem>>, vector<8x16x24xbf16>
    %168 = arith.extf %167 : vector<8x16x24xbf16> to vector<8x16x24xf32>
    %c0_127 = arith.constant 0 : index
    %c2_128 = arith.constant 2 : index
    %c0_129 = arith.constant 0 : index
    %169 = vector.load %arg6[%c0_127, %c2_128, %c0_129] : memref<3x3x24xf32, #tpu.memory_space<vmem>>, vector<1x1x24xf32>
    %170 = vector.shape_cast %169 : vector<1x1x24xf32> to vector<24xf32>
    %171 = vector.shape_cast %170 : vector<24xf32> to vector<1x1x24xf32>
    %172 = vector.broadcast %171 : vector<1x1x24xf32> to vector<8x16x24xf32>
    %173 = arith.mulf %168, %172 : vector<8x16x24xf32>
    %174 = arith.addf %166, %173 : vector<8x16x24xf32>
    %c9 = arith.constant 9 : index
    %c0_130 = arith.constant 0 : index
    %c0_131 = arith.constant 0 : index
    %175 = vector.load %arg11[%c9, %c0_130, %c0_131] : memref<18x18x24xbf16, #tpu.memory_space<vmem>>, vector<8x16x24xbf16>
    %176 = arith.extf %175 : vector<8x16x24xbf16> to vector<8x16x24xf32>
    %c1_132 = arith.constant 1 : index
    %c0_133 = arith.constant 0 : index
    %c0_134 = arith.constant 0 : index
    %177 = vector.load %arg6[%c1_132, %c0_133, %c0_134] : memref<3x3x24xf32, #tpu.memory_space<vmem>>, vector<1x1x24xf32>
    %178 = vector.shape_cast %177 : vector<1x1x24xf32> to vector<24xf32>
    %179 = vector.shape_cast %178 : vector<24xf32> to vector<1x1x24xf32>
    %180 = vector.broadcast %179 : vector<1x1x24xf32> to vector<8x16x24xf32>
    %181 = arith.mulf %176, %180 : vector<8x16x24xf32>
    %182 = arith.addf %174, %181 : vector<8x16x24xf32>
    %c9_135 = arith.constant 9 : index
    %c1_136 = arith.constant 1 : index
    %c0_137 = arith.constant 0 : index
    %183 = vector.load %arg11[%c9_135, %c1_136, %c0_137] : memref<18x18x24xbf16, #tpu.memory_space<vmem>>, vector<8x16x24xbf16>
    %184 = arith.extf %183 : vector<8x16x24xbf16> to vector<8x16x24xf32>
    %c1_138 = arith.constant 1 : index
    %c1_139 = arith.constant 1 : index
    %c0_140 = arith.constant 0 : index
    %185 = vector.load %arg6[%c1_138, %c1_139, %c0_140] : memref<3x3x24xf32, #tpu.memory_space<vmem>>, vector<1x1x24xf32>
    %186 = vector.shape_cast %185 : vector<1x1x24xf32> to vector<24xf32>
    %187 = vector.shape_cast %186 : vector<24xf32> to vector<1x1x24xf32>
    %188 = vector.broadcast %187 : vector<1x1x24xf32> to vector<8x16x24xf32>
    %189 = arith.mulf %184, %188 : vector<8x16x24xf32>
    %190 = arith.addf %182, %189 : vector<8x16x24xf32>
    %c9_141 = arith.constant 9 : index
    %c2_142 = arith.constant 2 : index
    %c0_143 = arith.constant 0 : index
    %191 = vector.load %arg11[%c9_141, %c2_142, %c0_143] : memref<18x18x24xbf16, #tpu.memory_space<vmem>>, vector<8x16x24xbf16>
    %192 = arith.extf %191 : vector<8x16x24xbf16> to vector<8x16x24xf32>
    %c1_144 = arith.constant 1 : index
    %c2_145 = arith.constant 2 : index
    %c0_146 = arith.constant 0 : index
    %193 = vector.load %arg6[%c1_144, %c2_145, %c0_146] : memref<3x3x24xf32, #tpu.memory_space<vmem>>, vector<1x1x24xf32>
    %194 = vector.shape_cast %193 : vector<1x1x24xf32> to vector<24xf32>
    %195 = vector.shape_cast %194 : vector<24xf32> to vector<1x1x24xf32>
    %196 = vector.broadcast %195 : vector<1x1x24xf32> to vector<8x16x24xf32>
    %197 = arith.mulf %192, %196 : vector<8x16x24xf32>
    %198 = arith.addf %190, %197 : vector<8x16x24xf32>
    %c10 = arith.constant 10 : index
    %c0_147 = arith.constant 0 : index
    %c0_148 = arith.constant 0 : index
    %199 = vector.load %arg11[%c10, %c0_147, %c0_148] : memref<18x18x24xbf16, #tpu.memory_space<vmem>>, vector<8x16x24xbf16>
    %200 = arith.extf %199 : vector<8x16x24xbf16> to vector<8x16x24xf32>
    %c2_149 = arith.constant 2 : index
    %c0_150 = arith.constant 0 : index
    %c0_151 = arith.constant 0 : index
    %201 = vector.load %arg6[%c2_149, %c0_150, %c0_151] : memref<3x3x24xf32, #tpu.memory_space<vmem>>, vector<1x1x24xf32>
    %202 = vector.shape_cast %201 : vector<1x1x24xf32> to vector<24xf32>
    %203 = vector.shape_cast %202 : vector<24xf32> to vector<1x1x24xf32>
    %204 = vector.broadcast %203 : vector<1x1x24xf32> to vector<8x16x24xf32>
    %205 = arith.mulf %200, %204 : vector<8x16x24xf32>
    %206 = arith.addf %198, %205 : vector<8x16x24xf32>
    %c10_152 = arith.constant 10 : index
    %c1_153 = arith.constant 1 : index
    %c0_154 = arith.constant 0 : index
    %207 = vector.load %arg11[%c10_152, %c1_153, %c0_154] : memref<18x18x24xbf16, #tpu.memory_space<vmem>>, vector<8x16x24xbf16>
    %208 = arith.extf %207 : vector<8x16x24xbf16> to vector<8x16x24xf32>
    %c2_155 = arith.constant 2 : index
    %c1_156 = arith.constant 1 : index
    %c0_157 = arith.constant 0 : index
    %209 = vector.load %arg6[%c2_155, %c1_156, %c0_157] : memref<3x3x24xf32, #tpu.memory_space<vmem>>, vector<1x1x24xf32>
    %210 = vector.shape_cast %209 : vector<1x1x24xf32> to vector<24xf32>
    %211 = vector.shape_cast %210 : vector<24xf32> to vector<1x1x24xf32>
    %212 = vector.broadcast %211 : vector<1x1x24xf32> to vector<8x16x24xf32>
    %213 = arith.mulf %208, %212 : vector<8x16x24xf32>
    %214 = arith.addf %206, %213 : vector<8x16x24xf32>
    %c10_158 = arith.constant 10 : index
    %c2_159 = arith.constant 2 : index
    %c0_160 = arith.constant 0 : index
    %215 = vector.load %arg11[%c10_158, %c2_159, %c0_160] : memref<18x18x24xbf16, #tpu.memory_space<vmem>>, vector<8x16x24xbf16>
    %216 = arith.extf %215 : vector<8x16x24xbf16> to vector<8x16x24xf32>
    %c2_161 = arith.constant 2 : index
    %c2_162 = arith.constant 2 : index
    %c0_163 = arith.constant 0 : index
    %217 = vector.load %arg6[%c2_161, %c2_162, %c0_163] : memref<3x3x24xf32, #tpu.memory_space<vmem>>, vector<1x1x24xf32>
    %218 = vector.shape_cast %217 : vector<1x1x24xf32> to vector<24xf32>
    %219 = vector.shape_cast %218 : vector<24xf32> to vector<1x1x24xf32>
    %220 = vector.broadcast %219 : vector<1x1x24xf32> to vector<8x16x24xf32>
    %221 = arith.mulf %216, %220 : vector<8x16x24xf32>
    %222 = arith.addf %214, %221 : vector<8x16x24xf32>
    %223 = vector.shape_cast %57 : vector<1x24xf32> to vector<1x1x24xf32>
    %224 = vector.broadcast %223 : vector<1x1x24xf32> to vector<8x16x24xf32>
    %225 = arith.addf %222, %224 : vector<8x16x24xf32>
    %cst_164 = arith.constant 0.000000e+00 : f32
    %226 = vector.broadcast %cst_164 : f32 to vector<8x16x24xf32>
    %227 = arith.maximumf %225, %226 : vector<8x16x24xf32>
    %228 = vector.shape_cast %227 : vector<8x16x24xf32> to vector<128x24xf32>
    %229 = arith.truncf %228 : vector<128x24xf32> to vector<128x24xbf16>
    %cst_165 = arith.constant dense<0.000000e+00> : vector<4x128xf32>
    %230 = tpu.matmul %59, %229, %cst_165 {dimension_numbers = #tpu.dot_dimension_numbers<[1], [1], [0], [0], [0, 0, 1, 0], [], []>} : vector<4x24xbf16>, vector<128x24xbf16>, vector<4x128xf32> -> vector<4x128xf32>
    %231 = vector.broadcast %58 : vector<4x1xf32> to vector<4x128xf32>
    %232 = arith.addf %230, %231 : vector<4x128xf32>
    %c0_166 = arith.constant 0 : index
    %c0_167 = arith.constant 0 : index
    %c128 = arith.constant 128 : index
    %233 = vector.load %arg3[%c0_166, %c0_167, %c128] : memref<1x4x256xbf16, #tpu.memory_space<vmem>>, vector<1x4x128xbf16>
    %234 = vector.shape_cast %233 : vector<1x4x128xbf16> to vector<4x128xbf16>
    %235 = arith.extf %234 : vector<4x128xbf16> to vector<4x128xf32>
    %236 = arith.addf %232, %235 : vector<4x128xf32>
    %c0_168 = arith.constant 0 : index
    %c0_169 = arith.constant 0 : index
    %c128_170 = arith.constant 128 : index
    %237 = vector.load %arg10[%c0_168, %c0_169, %c128_170] : memref<1x4x256xf32, #tpu.memory_space<vmem>>, vector<1x4x128xf32>
    %238 = vector.shape_cast %237 : vector<1x4x128xf32> to vector<4x128xf32>
    %239 = vector.shape_cast %236 : vector<4x128xf32> to vector<1x4x128xf32>
    tpu.vector_store %arg10[%c0_168, %c0_169, %c128_170], %239 {strides = array<i32>} : memref<1x4x256xf32, #tpu.memory_space<vmem>>, vector<1x4x128xf32>,
    return
  }
  func.func @transform_0(%arg0: i32, %arg1: i32) -> (i32, i32, i32, i32) {
    %c0_i32 = arith.constant 0 : i32
    %c0_i32_0 = arith.constant 0 : i32
    %c0_i32_1 = arith.constant 0 : i32
    %c0_i32_2 = arith.constant 0 : i32
    return %arg0, %c0_i32, %c0_i32_0, %c0_i32_1 : i32, i32, i32, i32
  }
  func.func @transform_1(%arg0: i32, %arg1: i32) -> (i32, i32, i32) {
    %c0_i32 = arith.constant 0 : i32
    %c0_i32_0 = arith.constant 0 : i32
    return %arg0, %c0_i32, %arg1 : i32, i32, i32
  }
  func.func @transform_2(%arg0: i32, %arg1: i32) -> (i32, i32) {
    %c0_i32 = arith.constant 0 : i32
    %c0_i32_0 = arith.constant 0 : i32
    %c0_i32_1 = arith.constant 0 : i32
    return %c0_i32, %c0_i32_0 : i32, i32
  }
  func.func @transform_3(%arg0: i32, %arg1: i32) -> (i32, i32) {
    %c0_i32 = arith.constant 0 : i32
    %c0_i32_0 = arith.constant 0 : i32
    %c0_i32_1 = arith.constant 0 : i32
    return %c0_i32, %c0_i32_0 : i32, i32
  }
  func.func @transform_4(%arg0: i32, %arg1: i32) -> (i32, i32, i32) {
    %c0_i32 = arith.constant 0 : i32
    %c0_i32_0 = arith.constant 0 : i32
    %c0_i32_1 = arith.constant 0 : i32
    %c0_i32_2 = arith.constant 0 : i32
    return %c0_i32, %c0_i32_0, %c0_i32_1 : i32, i32, i32
  }
  func.func @transform_5(%arg0: i32, %arg1: i32) -> (i32, i32) {
    %c0_i32 = arith.constant 0 : i32
    %c0_i32_0 = arith.constant 0 : i32
    %c0_i32_1 = arith.constant 0 : i32
    return %c0_i32, %c0_i32_0 : i32, i32
  }
  func.func @transform_6(%arg0: i32, %arg1: i32) -> (i32, i32) {
    %c0_i32 = arith.constant 0 : i32
    %c0_i32_0 = arith.constant 0 : i32
    %c0_i32_1 = arith.constant 0 : i32
    return %c0_i32, %c0_i32_0 : i32, i32
  }
  func.func @transform_7(%arg0: i32, %arg1: i32) -> (i32, i32) {
    %c0_i32 = arith.constant 0 : i32
    %c0_i32_0 = arith.constant 0 : i32
    %c0_i32_1 = arith.constant 0 : i32
    return %c0_i32, %c0_i32_0 : i32, i32
  }
  func.func @transform_8(%arg0: i32, %arg1: i32) -> (i32, i32, i32) {
    %c0_i32 = arith.constant 0 : i32
    %c0_i32_0 = arith.constant 0 : i32
    return %arg0, %c0_i32, %arg1 : i32, i32, i32
  }
}

</mosaic_0001>

<bundles_post_ra>
// kernel: inverted_residual_forward.1
= control target key start
LH: loop header
LB: loop body
LE: loop exit
PB: predicated region body
PF: predicated region fallthrough
CT: control target
= control target key end

     0   :  { %s4615_s27 = smov 0   ;;  %s4617_s28 = smov 0   ;;  %s6070_s0 = inlined_call_operand.vmem [shape: bf16[2,18,16,4], index: 0, kind: input, shape index: {}]   ;;  %s6071_s1 = inlined_call_operand.vmem [shape: bf16[2,4,256], index: 1, kind: input, shape index: {}]   ;;  %s6072_s2 = inlined_call_operand.vmem [shape: bf16[4,24], index: 2, kind: input, shape index: {}]   ;;  %s6073_s3 = inlined_call_operand.vmem [shape: f32[1,24], index: 3, kind: input, shape index: {}]   ;;  %s6074_s4 = inlined_call_operand.vmem [shape: f32[3,3,24], index: 4, kind: input, shape index: {}]   ;;  %s6075_s5 = inlined_call_operand.vmem [shape: f32[1,24], index: 5, kind: input, shape index: {}]   ;;  %s6076_s6 = inlined_call_operand.vmem [shape: bf16[4,24], index: 6, kind: input, shape index: {}]   ;;  %s6077_s7 = inlined_call_operand.vmem [shape: f32[4,1], index: 7, kind: input, shape index: {}]   ;;  %s6078_s8 = inlined_call_operand.vmem [shape: f32[2,4,256], index: 8, kind: output, shape index: {}]  }
   0x1   :  { %s4619_s29 = smov 0  }
   0x2 LB: > { %s30_s30 = sadd.s32 1, %s4561_s28  ;;  %p4059_p0 = scmp.ge.s32.totalorder %s4565_s29, 1  ;;  %s4565_s29 = sphi %s4619_s29, %s18_s29   ;;  %s4561_s28 = sphi %s4617_s28, %s6088_s28   ;;  %s4557_s27 = sphi %s4615_s27, %s6087_s27  }
   0x3   : > { %p32_p1 = scmp.ge.s32.totalorder %s30_s30, 2  ;;  %p293_p2 = scmp.lt.s32.totalorder %s4565_s29, 3 }
   0x5   : > { %s6090_s30 = smov (%p32_p1, %s30_s30), 0  ;;  %p294_p3 = pnand %p4059_p0, %p293_p2 }
   0x6   : > { %v386_v0 = vld [vmem:[%s6072_s2] sm:$0x3] (!%p294_p3)  ;;  %vm459_vm0 = vcmask (!%p294_p3), 1041408   ;;  %p340_p4 = scmp.lt.s32.totalorder (!%p294_p3), %s4557_s27, 1  ;;  %vm434_vm1 = vcmask (!%p294_p3), 31744   ;;  %v4567_v24 = vmov (!%p294_p3), 0  }
   0x7   : > { %297 = sbr.rel (%p294_p3) target bundleno = 911 (0x38f), region = 52  ;;  %4473 = vmatprep.subr.msk.bf16.mxu1 (!%p294_p3), %vm459_vm0, %v386_v0  ;;  %4472 = vmatprep.subr.msk.bf16.mxu0 (!%p294_p3), %vm459_vm0, %v386_v0  ;;  %v461_v1 = vsel (!%p294_p3), %vm459_vm0, %v386_v0, 0  ;;  %v869_v2 = vld [vmem:[%s6072_s2] sm:$0x3] (!%p294_p3)  ;;  %v4568_v25 = vmov (!%p294_p3), 0.0   ;;  %vm787_vm2 = vcmask (!%p294_p3), 191488  }
   0x8   : > { %v1330_v3 = vld [vmem:[%s6072_s2] sm:$0x3] (!%p294_p3)  ;;  %4471 = vmatpush3.bf16.msra.mxu1 (!%p294_p3), %v461_v1  ;;  %4389 = vmatpush3.bf16.msra.mxu0 (!%p294_p3), %v461_v1  ;;  %v942_v9 = vsel (!%p294_p3), %vm459_vm0, %v869_v2, 0  ;;  %vm624_vm3 = vsmask.f32 (!%p294_p3), 256  ;;  %vm795_vm5 = vcmask (!%p294_p3), 188416  }
   0x9   : > { %4474 = vmatprep.subr.msk.bf16.mxu1 (!%p294_p3), %vm459_vm0, %v869_v2  ;;  %4475 = vmatprep.subr.msk.bf16.mxu0 (!%p294_p3), %vm459_vm0, %v1330_v3  ;;  %v1355_v7 = vsel (!%p294_p3), %vm459_vm0, %v1330_v3, 0  ;;  %v4699_v26 = vld [vmem:[%s6073_s3] ss:$0 sm:$0xff] (!%p294_p3)  ;;  %vm788_vm4 = vsmask.f32 (!%p294_p3), 7938  ;;  %vm4740_vm8 = vmand (!%p294_p3), %vm795_vm5, %vm624_vm3  ;;  %vm1739_vm11 = vcmask (!%p294_p3), 1046528  }
   0xa   : > { %4504 = vset.pattern.permute.xlu0 (!%p294_p3), %v4567_v24  ;;  %vm625_vm6 = vsmask.f32 (!%p294_p3), 4368  ;;  %v800_v57 = vld [vmem:[#allocation2 + $0xc] sm:$0xf] (!%p294_p3)  ;;  %v828_v0 = vld [vmem:[#allocation2 + $0x3c] sm:$0xf] (!%p294_p3)  ;;  %vm4716_vm7 = vmand (!%p294_p3), %vm787_vm2, %vm788_vm4 }
   0xb   : > { %v790_v1 = vld [vmem:[#allocation2] sm:$0xf] (!%p294_p3)  ;;  %vm4754_vm9 = vmor (!%p294_p3), %vm624_vm3, %vm625_vm6  ;;  %vm1881_vm12 = vcmask (!%p294_p3), 1045504   ;;  %vm2711_vm13 = vcmask (!%p294_p3), 195584   ;;  %vm4569_vm14 = vmmov (!%p294_p3), 0  }
   0xc   : > { %vm4797_vm10 = vmand (!%p294_p3), %vm795_vm5, %vm788_vm4 }
   0xe   : > { %s6092_s27 = smov (!%p340_p4, %s4557_s27), 1 }
   0xf   : > { %s4476_s15 = smul.u32 144, %s6092_s27  ;;  %s4196_s19 = sshll.u32 %s6092_s27, 3 }
  0x10   : > { %s363_s22 = scalar_lea.vmem %s6078_s8, %s4196_s19 }
  0x11   : > { %s4653_s18 = scalar_lea.vmem %s6070_s0, %s4476_s15  ;;  %s4195_s15 = sshll.u32 %s6092_s27, 2 }
  0x12   : > { %v4505_v4 = vld [vmem:[%s4653_s18] sm:$0xff]   ;;  %v4507_v6 = vld [vmem:[%s4653_s18 + $0x8] sm:$0xff]   ;;  %v4509_v10 = vld [vmem:[%s4653_s18 + $0x10] sm:$0xff]  }
  0x13   : > { %v4506_v5 = vld [vmem:[%s4653_s18 + $0x20] sm:$0xff]   ;;  %4390 = vmatprep.mubr.msk.bf16.mxu0 %vm434_vm1, %v4505_v4  ;;  %v4508_v8 = vld [vmem:[%s4653_s18 + $0x28] sm:$0xff]   ;;  %v4510_v11 = vld [vmem:[%s4653_s18 + $0x30] sm:$0xff]  }
  0x14   : > { %4398 = vmatprep.mubr.msk.bf16.mxu1 %vm434_vm1, %v4506_v5  ;;  %4391 = vmatmul.mubr.msk.bf16.vlgmr.msra.gmra.mrb[0].mxu0 %vm434_vm1, %v4507_v6  ;;  %v4511_v12 = vld [vmem:[%s4653_s18 + $0x18] sm:$0xff]   ;;  %v4513_v14 = vld [vmem:[%s4653_s18 + $0x40] sm:$0xff]   ;;  %v4514_v15 = vld [vmem:[%s4653_s18 + $0x48] sm:$0xff]  }
  0x15   : > { %4399 = vmatmul.mubr.msk.bf16.vlgmr.msra.gmra.mrb[0].mxu1 %vm434_vm1, %v4508_v8  ;;  %4425 = vmatpush3.bf16.msra.mxu0 %v1355_v7  ;;  %v4512_v13 = vld [vmem:[%s4653_s18 + $0x38] sm:$0xff]   ;;  %v4521_v16 = vld [vmem:[%s4653_s18 + $0x80] sm:$0xff]   ;;  %v4522_v17 = vld [vmem:[%s4653_s18 + $0x88] sm:$0xff]  }
  0x16   : > { %4407 = vmatpush3.bf16.msra.mxu1 %v942_v9  ;;  %4394 = vmatprep.mubr.msk.bf16.mxu0 %vm434_vm1, %v4509_v10  ;;  %v4515_v18 = vld [vmem:[%s4653_s18 + $0x50] sm:$0xff]   ;;  %v4516_v19 = vld [vmem:[%s4653_s18 + $0x58] sm:$0xff]   ;;  %v4517_v20 = vld [vmem:[%s4653_s18 + $0x60] sm:$0xff]  }
  0x17   : > { %4402 = vmatprep.mubr.msk.bf16.mxu1 %vm434_vm1, %v4510_v11  ;;  %v4518_v21 = vld [vmem:[%s4653_s18 + $0x68] sm:$0xff]   ;;  %v4519_v22 = vld [vmem:[%s4653_s18 + $0x70] sm:$0xff]   ;;  %v4520_v23 = vld [vmem:[%s4653_s18 + $0x78] sm:$0xff]   ;;  %4430 = vmatprep.subr.bf16.mxu1 %v4568_v25  ;;  %s353_s18 = scalar_lea.vmem %s6071_s1, %s4195_s15 }
  0x18   : > { %4450 = vmatprep.subr.bf16.mxu0 %v4568_v25 }
  0x1c   : > { %4395 = vmatmul.mubr.msk.bf16.gmra.mrb[4].mxu0 %vm434_vm1, %v4511_v12 }
  0x1d   : > { %4403 = vmatmul.mubr.msk.bf16.gmra.mrb[4].mxu1 %vm434_vm1, %v4512_v13  ;;  %4426 = vmatprep.mubr.msk.bf16.mxu0 %vm434_vm1, %v4521_v16 }
  0x1e   : > { %4408 = vmatprep.mubr.msk.bf16.mxu1 %vm434_vm1, %v4513_v14 }
  0x24   : > { %4427 = vmatmul.mubr.msk.bf16.vlgmr.msra.gmra.mrb[8].mxu0 %vm434_vm1, %v4522_v17 }
  0x25   : > { %4409 = vmatmul.mubr.msk.bf16.vlgmr.msra.gmra.mrb[8].mxu1 %vm434_vm1, %v4514_v15  ;;  %4466 = vmatprep.mubr.msk.bf16.mxu0 %vm4569_vm14, %v4568_v25 }
  0x26   : > { %4412 = vmatprep.mubr.msk.bf16.mxu1 %vm434_vm1, %v4515_v18 }
  0x2d   : > { %4413 = vmatmul.mubr.msk.bf16.gmra.mrb[12].mxu1 %vm434_vm1, %v4516_v19 }
  0x2e   : > { %4416 = vmatprep.mubr.msk.bf16.mxu1 %vm434_vm1, %v4517_v20 }
  0x35   : > { %4417 = vmatmul.mubr.msk.bf16.gmra.mrb[16].mxu1 %vm434_vm1, %v4518_v21 }
  0x36   : > { %4420 = vmatprep.mubr.msk.bf16.mxu1 %vm434_vm1, %v4519_v22 }
  0x3d   : > { %4421 = vmatmul.mubr.msk.bf16.gmra.mrb[20].mxu1 %vm434_vm1, %v4520_v23 }
  0x3e   : > { %4446 = vmatprep.mubr.msk.bf16.mxu1 %vm4569_vm14, %v4568_v25 }
  0xe7   : > { %v4392_v27 = vpop.f32.mrb[0].mxu0 }
  0xe8   : > { %v506_v28 = vadd.f32 %v4392_v27, %v4699_v26  ;;  %v4400_v29 = vpop.f32.mrb[0].mxu1  ;;  %v497_v30 = vpop.f32.mrb[1].mxu0  ;;  %v821_v27 = vld [vmem:[#allocation2 + $0x30] sm:$0xf] }
  0xe9   : > { %v538_v31 = vadd.f32 %v4400_v29, %v4699_v26  ;;  %v498_v32 = vadd.f32 %v4699_v26, %v497_v30  ;;  %v529_v33 = vpop.f32.mrb[1].mxu1  ;;  %v4393_v34 = vpop.f32.mrb[2].mxu0 }
  0xea   : > { %v562_v35 = vmax.f32 %v506_v28, 0.0  ;;  %v530_v36 = vadd.f32 %v4699_v26, %v529_v33  ;;  %v509_v37 = vadd.f32 %v4393_v34, %v4699_v26  ;;  %v4401_v38 = vpop.f32.mrb[2].mxu1  ;;  %v500_v39 = vpop.f32.mrb[3].mxu0  ;;  %v804_v34 = vld [vmem:[#allocation2 + $0x14] sm:$0x1] }
  0xeb   : > { %v570_v40 = vmax.f32 %v538_v31, 0.0  ;;  %v560_v41 = vmax.f32 %v498_v32, 0.0  ;;  %v541_v42 = vadd.f32 %v4401_v38, %v4699_v26  ;;  %v4708_v43 = vadd.f32 %v4699_v26, %v500_v39  ;;  %v532_v44 = vpop.f32.mrb[3].mxu1 }
  0xec   : > { %v4199_v45 = vpack.c.bf16 %v562_v35, %v562_v35  ;;  %v568_v46 = vmax.f32 %v530_v36, 0.0  ;;  %v563_v47 = vmax.f32 %v509_v37, 0.0  ;;  %v4711_v48 = vadd.f32 %v4699_v26, %v532_v44 }
  0xed   : > { %v4207_v49 = vpack.c.bf16 %v570_v40, %v570_v40  ;;  %v4197_v50 = vpack.c.bf16 %v560_v41, %v560_v41  ;;  %v571_v51 = vmax.f32 %v541_v42, 0.0  ;;  %v561_v52 = vmax.f32 %v4708_v43, 0.0 }
  0xee   : > { %v645_v53 = vshrl.u32 %v4199_v45, 16  ;;  %v648_v54 = vshll.u32 %v4199_v45, 16  ;;  %v4205_v55 = vpack.c.bf16 %v568_v46, %v568_v46  ;;  %v4200_v56 = vpack.c.bf16 %v563_v47, %v563_v47 }
  0xef   : > { %v713_v58 = vshrl.u32 %v4207_v49, 16  ;;  %v716_v59 = vshll.u32 %v4207_v49, 16  ;;  %v628_v60 = vshrl.u32 %v4197_v50, 16  ;;  %v631_v61 = vshll.u32 %v4197_v50, 16  ;;  %v4396_v62 = vpop.f32.mrb[4].mxu0 }
  0xf0   : > { %v647_v63 = vrot.slane %v645_v53, 7  ;;  %v696_v2 = vshrl.u32 %v4205_v55, 16  ;;  %v699_v3 = vshll.u32 %v4205_v55, 16  ;;  %v653_v4 = vshrl.u32 %v4200_v56, 16  ;;  %v4404_v5 = vpop.f32.mrb[4].mxu1  ;;  %v513_v6 = vpop.f32.mrb[5].mxu0 }
  0xf1   : > { %v4720_v8 = vrot.slane %v713_v58, 7  ;;  %v4722_v9 = vrot.slane %v628_v60, 7  ;;  %v656_v10 = vshll.u32 %v4200_v56, 16  ;;  %v4208_v11 = vpack.c.bf16 %v571_v51, %v571_v51  ;;  %v545_v12 = vpop.f32.mrb[5].mxu1  ;;  %v4724_v13 = vpop.f32.mrb[6].mxu0 }
  0xf2   : > { %v650_v14 = vor.u32 %v648_v54, %v647_v63  ;;  %v651_v15 = vrot.slane %v647_v63, 4  ;;  %v4726_v16 = vrot.slane %v696_v2, 7  ;;  %v655_v17 = vrot.slane %v653_v4, 7  ;;  %v4728_v18 = vpop.f32.mrb[6].mxu1  ;;  %v4730_v19 = vpop.f32.mrb[7].mxu0 }
  0xf3   : > { %v718_v20 = vor.u32 %v716_v59, %v4720_v8  ;;  %v719_v21 = vrot.slane %v4720_v8, 4  ;;  %v633_v22 = vor.u32 %v631_v61, %v4722_v9  ;;  %v634_v23 = vrot.slane %v4722_v9, 4  ;;  %v4736_v28 = vpop.f32.mrb[7].mxu1  ;;  %v832_v50 = vld [vmem:[#allocation2 + $0x44] sm:$0x1] }
  0xf4   : > { %v801_v30 = vsel %vm4716_vm7, %v650_v14, %v800_v57  ;;  %v701_v31 = vor.u32 %v699_v3, %v4726_v16  ;;  %v702_v32 = vrot.slane %v4726_v16, 4  ;;  %v658_v33 = vor.u32 %v656_v10, %v655_v17 }
  0xf5   : > { %802 = vst [vmem:[#allocation2 + $0xc] sm:$0xf] %v801_v30  ;;  %v829_v35 = vsel %vm4716_vm7, %v718_v20, %v828_v0  ;;  %v791_v36 = vsel %vm4716_vm7, %v633_v22, %v790_v1  ;;  %v660_v38 = vrot.slane %v655_v17, 4  ;;  %v721_v39 = vshrl.u32 %v4208_v11, 16 }
  0xf6   : > { %830 = vst [vmem:[#allocation2 + $0x3c] sm:$0xf] %v829_v35  ;;  %792 = vst [vmem:[#allocation2] sm:$0xf] %v791_v36  ;;  %v822_v40 = vsel %vm4716_vm7, %v701_v31, %v821_v27  ;;  %v659_v41 = vsel %vm4754_vm9, %v651_v15, %v658_v33  ;;  %v724_v42 = vshll.u32 %v4208_v11, 16  ;;  %v4198_v43 = vpack.c.bf16 %v561_v52, %v561_v52 }
  0xf7   : > { %823 = vst [vmem:[#allocation2 + $0x30] sm:$0xf] %v822_v40  ;;  %803 = vst.msk [vmem:[#allocation2 + $0x10] sm:$0xf] %vm787_vm2, %v659_v41  ;;  %v805_v44 = vsel %vm4740_vm8, %v660_v38, %v804_v34  ;;  %v723_v45 = vrot.slane %v721_v39, 7  ;;  %v569_v46 = vmax.f32 %v4711_v48, 0.0  ;;  %v522_v47 = vadd.f32 %v4396_v62, %v4699_v26 }
  0xf8   : > { %v4767_v49 = vpop.f32.mrb[8].mxu0  ;;  %806 = vst [vmem:[#allocation2 + $0x14] sm:$0x1] %v805_v44  ;;  %v636_v51 = vshrl.u32 %v4198_v43, 16  ;;  %v639_v53 = vshll.u32 %v4198_v43, 16  ;;  %v554_v54 = vadd.f32 %v4404_v5, %v4699_v26  ;;  %v514_v52 = vadd.f32 %v4699_v26, %v513_v6  ;;  %v4771_v55 = vpop.f32.mrb[8].mxu1 }
  0xf9   : > { %v4773_v56 = vpop.f32.mrb[9].mxu0  ;;  %v726_v57 = vor.u32 %v724_v42, %v723_v45  ;;  %v728_v58 = vrot.slane %v723_v45, 4  ;;  %v4206_v59 = vpack.c.bf16 %v569_v46, %v569_v46  ;;  %v566_v48 = vmax.f32 %v522_v47, 0.0  ;;  %v4775_v60 = vpop.f32.mrb[9].mxu1  ;;  %v797_v6 = vld [vmem:[#allocation2 + $0x8] sm:$0x1] }
  0xfa   : > { %v4777_v61 = vpop.f32.mrb[10].mxu0  ;;  %v638_v62 = vrot.slane %v636_v51, 7  ;;  %v574_v63 = vmax.f32 %v554_v54, 0.0  ;;  %v564_v0 = vmax.f32 %v514_v52, 0.0  ;;  %v4780_v1 = vadd.f32 %v4699_v26, %v545_v12  ;;  %v4782_v2 = vpop.f32.mrb[10].mxu1 }
  0xfb   : > { %v4784_v3 = vpop.f32.mrb[11].mxu0  ;;  %v727_v4 = vsel %vm4754_vm9, %v719_v21, %v726_v57  ;;  %v833_v5 = vsel %vm4740_vm8, %v728_v58, %v832_v50  ;;  %v704_v8 = vshrl.u32 %v4206_v59, 16  ;;  %v707_v10 = vshll.u32 %v4206_v59, 16  ;;  %v4790_v11 = vpop.f32.mrb[11].mxu1  ;;  %v825_v41 = vld [vmem:[#allocation2 + $0x38] sm:$0x1] }
  0xfc   : > { %v1480_v14 = vld [vmem:[#allocation2 + $0xc] sm:$0x1]  ;;  %831 = vst.msk [vmem:[#allocation2 + $0x40] sm:$0xf] %vm787_vm2, %v727_v4  ;;  %834 = vst [vmem:[#allocation2 + $0x44] sm:$0x1] %v833_v5  ;;  %v641_v12 = vor.u32 %v639_v53, %v638_v62  ;;  %v4203_v17 = vpack.c.bf16 %v566_v48, %v566_v48  ;;  %v4211_v20 = vpack.c.bf16 %v574_v63, %v574_v63 }
  0xfd   : > { %v643_v15 = vrot.slane %v638_v62, 4  ;;  %v1481_v22 = vsel %vm4740_vm8, 0, %v1480_v14  ;;  %v1492_v21 = vld [vmem:[#allocation2 + $0x3c] sm:$0x1]  ;;  %v1477_v27 = vld [vmem:[#allocation2] sm:$0x1]  ;;  %v4201_v33 = vpack.c.bf16 %v564_v0, %v564_v0  ;;  %v525_v34 = vadd.f32 %v4724_v13, %v4699_v26 }
  0xfe   : > { %v706_v31 = vrot.slane %v704_v8, 7  ;;  %1482 = vst [vmem:[#allocation2 + $0xc] sm:$0x1] %v1481_v22  ;;  %v1493_v35 = vsel %vm4740_vm8, 0, %v1492_v21  ;;  %v1478_v36 = vsel %vm4740_vm8, 0, %v1477_v27  ;;  %v642_v39 = vsel %vm4754_vm9, %v634_v23, %v641_v12 }
  0xff   : > { %v1489_v38 = vld [vmem:[#allocation2 + $0x30] sm:$0x1]  ;;  %v798_v40 = vsel %vm4740_vm8, %v643_v15, %v797_v6  ;;  %1494 = vst [vmem:[#allocation2 + $0x3c] sm:$0x1] %v1493_v35  ;;  %1479 = vst [vmem:[#allocation2] sm:$0x1] %v1478_v36  ;;  %v557_v8 = vadd.f32 %v4728_v18, %v4699_v26 }
 0x100   : > { %v1490_v13 = vsel %vm4740_vm8, 0, %v1489_v38  ;;  %v1535_v42 = vld [vmem:[#allocation2 + $0x14] sm:$0x1]  ;;  %794 = vst.msk [vmem:[#allocation2 + $0x4] sm:$0xf] %vm787_vm2, %v642_v39  ;;  %v709_v43 = vor.u32 %v707_v10, %v706_v31  ;;  %v711_v44 = vrot.slane %v706_v31, 4 }
 0x101   : > { %799 = vst [vmem:[#allocation2 + $0x8] sm:$0x1] %v798_v40  ;;  %v679_v45 = vshrl.u32 %v4203_v17, 16  ;;  %1590 = vst.msk [vmem:[#allocation2] sm:$0xf] %vm787_vm2, %v4567_v24  ;;  %v1536_v9 = vsel %vm4797_vm10, 0, %v1535_v42  ;;  %v517_v42 = vadd.f32 %v4699_v26, %v4730_v19  ;;  %v4878_v19 = vadd.f32 %v4782_v2, %v4699_v26 }
 0x102   : > { %1491 = vst [vmem:[#allocation2 + $0x30] sm:$0x1] %v1490_v13  ;;  %1591 = vst.msk [vmem:[#allocation2 + $0x4] sm:$0xf] %vm787_vm2, %v4567_v24  ;;  %v682_v23 = vshll.u32 %v4203_v17, 16  ;;  %v747_v47 = vshrl.u32 %v4211_v20, 16  ;;  %v710_v53 = vsel %vm4754_vm9, %v702_v32, %v709_v43  ;;  %v826_v54 = vsel %vm4740_vm8, %v711_v44, %v825_v41 }
 0x103   : > { %v814_v46 = vld [vmem:[#allocation2 + $0x24] sm:$0xf]  ;;  %v750_v50 = vshll.u32 %v4211_v20, 16  ;;  %v4822_v51 = vpop.f32.mrb[12].mxu1  ;;  %1537 = vst [vmem:[#allocation2 + $0x14] sm:$0x1] %v1536_v9  ;;  %v549_v43 = vadd.f32 %v4699_v26, %v4736_v28 }
 0x104   : > { %v4830_v52 = vrot.slane %v679_v45, 7  ;;  %v842_v57 = vld [vmem:[#allocation2 + $0x54] sm:$0xf]  ;;  %v662_v58 = vshrl.u32 %v4201_v33, 16  ;;  %v4832_v59 = vpop.f32.mrb[13].mxu1  ;;  %v4835_v48 = vrot.slane %v747_v47, 7  ;;  %v979_v47 = vadd.f32 %v4699_v26, %v4775_v60 }
 0x105   : > { %824 = vst.msk [vmem:[#allocation2 + $0x34] sm:$0xf] %vm787_vm2, %v710_v53  ;;  %827 = vst [vmem:[#allocation2 + $0x38] sm:$0x1] %v826_v54  ;;  %v665_v62 = vshll.u32 %v4201_v33, 16  ;;  %v572_v16 = vmax.f32 %v4780_v1, 0.0 }
 0x106   : > { %v567_v63 = vmax.f32 %v525_v34, 0.0  ;;  %v4838_v0 = vpop.f32.mrb[14].mxu1  ;;  %v1547_v32 = vld [vmem:[#allocation2 + $0x44] sm:$0x1]  ;;  %v684_v4 = vor.u32 %v682_v23, %v4830_v52  ;;  %v685_v5 = vrot.slane %v4830_v52, 4  ;;  %v4842_v6 = vrot.slane %v662_v58, 7 }
 0x107   : > { %v4846_v10 = vpop.f32.mrb[15].mxu1  ;;  %v1548_v14 = vsel %vm4797_vm10, 0, %v1547_v32  ;;  %v752_v1 = vor.u32 %v750_v50, %v4835_v48  ;;  %v753_v12 = vrot.slane %v4835_v48, 4  ;;  %v807_v15 = vld [vmem:[#allocation2 + $0x18] sm:$0xf]  ;;  %v4209_v17 = vpack.c.bf16 %v572_v16, %v572_v16 }
 0x108   : > { %1549 = vst [vmem:[#allocation2 + $0x44] sm:$0x1] %v1548_v14  ;;  %v815_v20 = vsel %vm4716_vm7, %v684_v4, %v814_v46  ;;  %v667_v22 = vor.u32 %v665_v62, %v4842_v6  ;;  %v668_v21 = vrot.slane %v4842_v6, 4  ;;  %v4204_v18 = vpack.c.bf16 %v567_v63, %v567_v63  ;;  %v1532_v27 = vld [vmem:[#allocation2 + $0x8] sm:$0x1]  ;;  %v4868_v44 = vpop.f32.mrb[16].mxu1 }
 0x109   : > { %816 = vst [vmem:[#allocation2 + $0x24] sm:$0xf] %v815_v20  ;;  %v843_v31 = vsel %vm4716_vm7, %v752_v1, %v842_v57  ;;  %v730_v33 = vshrl.u32 %v4209_v17, 16  ;;  %v733_v34 = vshll.u32 %v4209_v17, 16  ;;  %v575_v35 = vmax.f32 %v557_v8, 0.0  ;;  %v4880_v50 = vpop.f32.mrb[17].mxu1 }
 0x10a   : > { %v1533_v36 = vsel %vm4797_vm10, 0, %v1532_v27  ;;  %844 = vst [vmem:[#allocation2 + $0x54] sm:$0xf] %v843_v31  ;;  %v808_v38 = vsel %vm4716_vm7, %v667_v22, %v807_v15  ;;  %v687_v39 = vshrl.u32 %v4204_v18, 16  ;;  %v690_v40 = vshll.u32 %v4204_v18, 16  ;;  %v4886_v58 = vpop.f32.mrb[18].mxu1 }
 0x10b   : > { %1534 = vst [vmem:[#allocation2 + $0x8] sm:$0x1] %v1533_v36  ;;  %809 = vst [vmem:[#allocation2 + $0x18] sm:$0xf] %v808_v38  ;;  %v4862_v41 = vrot.slane %v730_v33, 7  ;;  %v4212_v13 = vpack.c.bf16 %v575_v35, %v575_v35  ;;  %v987_v46 = vadd.f32 %v4771_v55, %v4699_v26  ;;  %v565_v16 = vmax.f32 %v517_v42, 0.0 }
 0x10c   : > { %1593 = vst.msk [vmem:[#allocation2 + $0x8] sm:$0x1] %vm795_vm5, %v4567_v24  ;;  %v1544_v45 = vld [vmem:[#allocation2 + $0x38] sm:$0x1]  ;;  %v835_v9 = vld [vmem:[#allocation2 + $0x48] sm:$0xf] }
 0x10d   : > { %v689_v23 = vrot.slane %v687_v39, 7  ;;  %v1545_v28 = vsel %vm4797_vm10, 0, %v1544_v45  ;;  %v735_v53 = vor.u32 %v733_v34, %v4862_v41  ;;  %v736_v54 = vrot.slane %v4862_v41, 4  ;;  %v818_v52 = vld [vmem:[#allocation2 + $0x2c] sm:$0x1]  ;;  %v4888_v2 = vpop.f32.mrb[19].mxu1 }
 0x10e   : > { %v755_v57 = vshrl.u32 %v4212_v13, 16  ;;  %1546 = vst [vmem:[#allocation2 + $0x38] sm:$0x1] %v1545_v28  ;;  %v758_v62 = vshll.u32 %v4212_v13, 16  ;;  %v573_v4 = vmax.f32 %v549_v43, 0.0  ;;  %v1043_v8 = vmax.f32 %v987_v46, 0.0 }
 0x10f   : > { %v692_v55 = vor.u32 %v690_v40, %v689_v23  ;;  %v694_v60 = vrot.slane %v689_v23, 4  ;;  %v836_v63 = vsel %vm4716_vm7, %v735_v53, %v835_v9  ;;  %v846_v17 = vld [vmem:[#allocation2 + $0x5c] sm:$0x1]  ;;  %v4202_v20 = vpack.c.bf16 %v565_v16, %v565_v16  ;;  %v811_v43 = vld [vmem:[#allocation2 + $0x20] sm:$0x1] }
 0x110   : > { %v757_v32 = vrot.slane %v755_v57, 7  ;;  %v1486_v14 = vld [vmem:[#allocation2 + $0x24] sm:$0x1]  ;;  %837 = vst [vmem:[#allocation2 + $0x48] sm:$0xf] %v836_v63  ;;  %v1041_v22 = vmax.f32 %v979_v47, 0.0  ;;  %v4210_v34 = vpack.c.bf16 %v573_v4, %v573_v4  ;;  %v4215_v39 = vpack.c.bf16 %v1043_v8, %v1043_v8 }
 0x111   : > { %v693_v1 = vsel %vm4754_vm9, %v685_v5, %v692_v55  ;;  %v819_v15 = vsel %vm4740_vm8, %v694_v60, %v818_v52  ;;  %v1487_v18 = vsel %vm4740_vm8, 0, %v1486_v14  ;;  %v1498_v27 = vld [vmem:[#allocation2 + $0x54] sm:$0x1]  ;;  %v670_v36 = vshrl.u32 %v4202_v20, 16  ;;  %v4909_v9 = vpop.f32.mrb[20].mxu1 }
 0x112   : > { %817 = vst.msk [vmem:[#allocation2 + $0x28] sm:$0xf] %vm787_vm2, %v693_v1  ;;  %820 = vst [vmem:[#allocation2 + $0x2c] sm:$0x1] %v819_v15  ;;  %v760_v31 = vor.u32 %v758_v62, %v757_v32  ;;  %v762_v33 = vrot.slane %v757_v32, 4  ;;  %v1499_v5 = vsel %vm4740_vm8, 0, %v1498_v27  ;;  %v982_v55 = vadd.f32 %v4699_v26, %v4790_v11 }
 0x113   : > { %1488 = vst [vmem:[#allocation2 + $0x24] sm:$0x1] %v1487_v18  ;;  %v1483_v35 = vld [vmem:[#allocation2 + $0x18] sm:$0x1]  ;;  %v673_v38 = vshll.u32 %v4202_v20, 16  ;;  %v738_v45 = vshrl.u32 %v4210_v34, 16  ;;  %v1003_v4 = vadd.f32 %v4822_v51, %v4699_v26 }
 0x114   : > { %1500 = vst [vmem:[#allocation2 + $0x54] sm:$0x1] %v1499_v5  ;;  %v1484_v40 = vsel %vm4740_vm8, 0, %v1483_v35  ;;  %v761_v13 = vsel %vm4754_vm9, %v753_v12, %v760_v31  ;;  %v847_v42 = vsel %vm4740_vm8, %v762_v33, %v846_v17  ;;  %v672_v23 = vrot.slane %v670_v36, 7  ;;  %v4912_v53 = vpop.f32.mrb[21].mxu1 }
 0x115   : > { %1485 = vst [vmem:[#allocation2 + $0x18] sm:$0x1] %v1484_v40  ;;  %845 = vst.msk [vmem:[#allocation2 + $0x58] sm:$0xf] %vm787_vm2, %v761_v13  ;;  %v741_v46 = vshll.u32 %v4210_v34, 16  ;;  %v1123_v47 = vshrl.u32 %v4215_v39, 16  ;;  %v4213_v12 = vpack.c.bf16 %v1041_v22, %v1041_v22  ;;  %v998_v40 = vadd.f32 %v4699_v26, %v4846_v10 }
 0x116   : > { %848 = vst [vmem:[#allocation2 + $0x5c] sm:$0x1] %v847_v42  ;;  %v1126_v28 = vshll.u32 %v4215_v39, 16  ;;  %v740_v48 = vrot.slane %v738_v45, 7  ;;  %v839_v52 = vld [vmem:[#allocation2 + $0x50] sm:$0x1]  ;;  %v675_v62 = vor.u32 %v673_v38, %v672_v23  ;;  %v1006_v39 = vadd.f32 %v4838_v0, %v4699_v26 }
 0x117   : > { %v1044_v57 = vmax.f32 %v4878_v19, 0.0  ;;  %v4917_v60 = vpop.f32.mrb[22].mxu1  ;;  %v677_v16 = vrot.slane %v672_v23, 4  ;;  %v4919_v63 = vrot.slane %v1123_v47, 7  ;;  %v1273_v32 = vld [vmem:[#allocation2 + $0x6c] sm:$0xf] }
 0x118   : > { %v4923_v8 = vpop.f32.mrb[23].mxu1  ;;  %v1495_v14 = vld [vmem:[#allocation2 + $0x48] sm:$0x1]  ;;  %v743_v1 = vor.u32 %v741_v46, %v740_v48  ;;  %v745_v15 = vrot.slane %v740_v48, 4  ;;  %v1106_v17 = vshrl.u32 %v4213_v12, 16  ;;  %v1109_v19 = vshll.u32 %v4213_v12, 16 }
 0x119   : > { %v1496_v11 = vsel %vm4740_vm8, 0, %v1495_v14  ;;  %v1541_v20 = vld [vmem:[#allocation2 + $0x2c] sm:$0x1]  ;;  %v676_v22 = vsel %vm4754_vm9, %v668_v21, %v675_v62  ;;  %v812_v18 = vsel %vm4740_vm8, %v677_v16, %v811_v43  ;;  %v1128_v51 = vor.u32 %v1126_v28, %v4919_v63  ;;  %v1266_v41 = vld [vmem:[#allocation2 + $0x60] sm:$0xf] }
 0x11a   : > { %1497 = vst [vmem:[#allocation2 + $0x48] sm:$0x1] %v1496_v11  ;;  %v1542_v27 = vsel %vm4797_vm10, 0, %v1541_v20  ;;  %810 = vst.msk [vmem:[#allocation2 + $0x1c] sm:$0xf] %vm787_vm2, %v676_v22  ;;  %v744_v6 = vsel %vm4754_vm9, %v736_v54, %v743_v1  ;;  %v840_v21 = vsel %vm4740_vm8, %v745_v15, %v839_v52  ;;  %v1129_v31 = vrot.slane %v4919_v63, 4 }
 0x11b   : > { %813 = vst [vmem:[#allocation2 + $0x20] sm:$0x1] %v812_v18  ;;  %1543 = vst [vmem:[#allocation2 + $0x2c] sm:$0x1] %v1542_v27  ;;  %v1274_v33 = vsel %vm4716_vm7, %v1128_v51, %v1273_v32  ;;  %v1108_v34 = vrot.slane %v1106_v17, 7  ;;  %v4216_v5 = vpack.c.bf16 %v1044_v57, %v1044_v57  ;;  %v1042_v35 = vmax.f32 %v982_v55, 0.0 }
 0x11c   : > { %838 = vst.msk [vmem:[#allocation2 + $0x4c] sm:$0xf] %vm787_vm2, %v744_v6  ;;  %841 = vst [vmem:[#allocation2 + $0x50] sm:$0x1] %v840_v21  ;;  %v1047_v38 = vmax.f32 %v1003_v4, 0.0  ;;  %v995_v54 = vadd.f32 %v4699_v26, %v4832_v59  ;;  %v1048_v52 = vmax.f32 %v1006_v39, 0.0 }
 0x11d   : > { %v1553_v36 = vld [vmem:[#allocation2 + $0x5c] sm:$0x1]  ;;  %1275 = vst [vmem:[#allocation2 + $0x6c] sm:$0xf] %v1274_v33  ;;  %v1111_v42 = vor.u32 %v1109_v19, %v1108_v34  ;;  %v1112_v43 = vrot.slane %v1108_v34, 4  ;;  %v1131_v45 = vshrl.u32 %v4216_v5, 16  ;;  %v4214_v46 = vpack.c.bf16 %v1042_v35, %v1042_v35 }
 0x11e   : > { %v1554_v13 = vsel %vm4797_vm10, 0, %v1553_v36  ;;  %v1134_v23 = vshll.u32 %v4216_v5, 16  ;;  %v4219_v47 = vpack.c.bf16 %v1047_v38, %v1047_v38  ;;  %v1045_v28 = vmax.f32 %v995_v54, 0.0  ;;  %v1277_v12 = vld [vmem:[#allocation2 + $0x74] sm:$0x1] }
 0x11f   : > { %1555 = vst [vmem:[#allocation2 + $0x5c] sm:$0x1] %v1554_v13  ;;  %v1267_v59 = vsel %vm4716_vm7, %v1111_v42, %v1266_v41  ;;  %v1133_v48 = vrot.slane %v1131_v45, 7  ;;  %v1046_v0 = vmax.f32 %v998_v40, 0.0  ;;  %v1114_v10 = vshrl.u32 %v4214_v46, 16 }
 0x120   : > { %1268 = vst [vmem:[#allocation2 + $0x60] sm:$0xf] %v1267_v59  ;;  %v1117_v57 = vshll.u32 %v4214_v46, 16  ;;  %v1157_v55 = vshrl.u32 %v4219_v47, 16  ;;  %v1160_v62 = vshll.u32 %v4219_v47, 16  ;;  %v4217_v14 = vpack.c.bf16 %v1045_v28, %v1045_v28 }
 0x121   : > { %v1136_v63 = vor.u32 %v1134_v23, %v1133_v48  ;;  %v1138_v32 = vrot.slane %v1133_v48, 4  ;;  %v1270_v4 = vld [vmem:[#allocation2 + $0x68] sm:$0x1]  ;;  %v4220_v1 = vpack.c.bf16 %v1048_v52, %v1048_v52  ;;  %v1116_v19 = vrot.slane %v1114_v10, 7  ;;  %v1287_v6 = vld [vmem:[#allocation2 + $0x84] sm:$0xf] }
 0x122   : > { %v1538_v16 = vld [vmem:[#allocation2 + $0x20] sm:$0x1]  ;;  %v1159_v11 = vrot.slane %v1157_v55, 7  ;;  %v4218_v20 = vpack.c.bf16 %v1046_v0, %v1046_v0  ;;  %v1140_v21 = vshrl.u32 %v4217_v14, 16  ;;  %v1143_v38 = vshll.u32 %v4217_v14, 16 }
 0x123   : > { %v1539_v15 = vsel %vm4797_vm10, 0, %v1538_v16  ;;  %v1550_v17 = vld [vmem:[#allocation2 + $0x50] sm:$0x1]  ;;  %v1137_v51 = vsel %vm4754_vm9, %v1129_v31, %v1136_v63  ;;  %v1278_v27 = vsel %vm4740_vm8, %v1138_v32, %v1277_v12  ;;  %v1119_v34 = vor.u32 %v1117_v57, %v1116_v19  ;;  %v1280_v13 = vld [vmem:[#allocation2 + $0x78] sm:$0xf] }
 0x124   : > { %1540 = vst [vmem:[#allocation2 + $0x20] sm:$0x1] %v1539_v15  ;;  %v1551_v22 = vsel %vm4797_vm10, 0, %v1550_v17  ;;  %v1504_v18 = vld [vmem:[#allocation2 + $0x6c] sm:$0x1]  ;;  %v1121_v5 = vrot.slane %v1116_v19, 4  ;;  %v1162_v35 = vor.u32 %v1160_v62, %v1159_v11  ;;  %v1019_v52 = vadd.f32 %v4868_v44, %v4699_v26 }
 0x125   : > { %1552 = vst [vmem:[#allocation2 + $0x50] sm:$0x1] %v1551_v22  ;;  %v1505_v33 = vsel %vm4740_vm8, 0, %v1504_v18  ;;  %1276 = vst.msk [vmem:[#allocation2 + $0x70] sm:$0xf] %vm787_vm2, %v1137_v51  ;;  %v1163_v36 = vrot.slane %v1159_v11, 4  ;;  %v1120_v54 = vsel %vm4754_vm9, %v1112_v43, %v1119_v34  ;;  %v1011_v0 = vadd.f32 %v4699_v26, %v4880_v50 }
 0x126   : > { %1279 = vst [vmem:[#allocation2 + $0x74] sm:$0x1] %v1278_v27  ;;  %1506 = vst [vmem:[#allocation2 + $0x6c] sm:$0x1] %v1505_v33  ;;  %v1142_v41 = vrot.slane %v1140_v21, 7  ;;  %v1165_v31 = vshrl.u32 %v4220_v1, 16  ;;  %v1271_v39 = vsel %vm4740_vm8, %v1121_v5, %v1270_v4  ;;  %v1288_v40 = vsel %vm4716_vm7, %v1162_v35, %v1287_v6 }
 0x127   : > { %v1168_v42 = vshll.u32 %v4220_v1, 16  ;;  %v1501_v45 = vld [vmem:[#allocation2 + $0x60] sm:$0x1]  ;;  %1269 = vst.msk [vmem:[#allocation2 + $0x64] sm:$0xf] %vm787_vm2, %v1120_v54  ;;  %v1148_v28 = vshrl.u32 %v4218_v20, 16  ;;  %v1022_v32 = vadd.f32 %v4886_v58, %v4699_v26  ;;  %v1014_v44 = vadd.f32 %v4699_v26, %v4888_v2 }
 0x128   : > { %1272 = vst [vmem:[#allocation2 + $0x68] sm:$0x1] %v1271_v39  ;;  %1289 = vst [vmem:[#allocation2 + $0x84] sm:$0xf] %v1288_v40  ;;  %v1145_v23 = vor.u32 %v1143_v38, %v1142_v41  ;;  %v1146_v46 = vrot.slane %v1142_v41, 4  ;;  %v1167_v47 = vrot.slane %v1165_v31, 7  ;;  %v1035_v18 = vadd.f32 %v4909_v9, %v4699_v26 }
 0x129   : > { %v1502_v43 = vsel %vm4740_vm8, 0, %v1501_v45  ;;  %v1291_v59 = vld [vmem:[#allocation2 + $0x8c] sm:$0x1]  ;;  %v1151_v48 = vshll.u32 %v4218_v20, 16  ;;  %v1150_v55 = vrot.slane %v1148_v28, 7  ;;  %v1051_v16 = vmax.f32 %v1019_v52, 0.0 }
 0x12a   : > { %1503 = vst [vmem:[#allocation2 + $0x60] sm:$0x1] %v1502_v43  ;;  %v1281_v12 = vsel %vm4716_vm7, %v1145_v23, %v1280_v13  ;;  %v1170_v10 = vor.u32 %v1168_v42, %v1167_v47  ;;  %v1172_v57 = vrot.slane %v1167_v47, 4  ;;  %v1284_v62 = vld [vmem:[#allocation2 + $0x80] sm:$0x1]  ;;  %v1049_v63 = vmax.f32 %v1011_v0, 0.0 }
 0x12b   : > { %1282 = vst [vmem:[#allocation2 + $0x78] sm:$0xf] %v1281_v12  ;;  %v1153_v1 = vor.u32 %v1151_v48, %v1150_v55  ;;  %v1155_v15 = vrot.slane %v1150_v55, 4  ;;  %v4223_v19 = vpack.c.bf16 %v1051_v16, %v1051_v16  ;;  %v1052_v11 = vmax.f32 %v1022_v32, 0.0  ;;  %v1294_v31 = vld [vmem:[#allocation2 + $0x90] sm:$0xf] }
 0x12c   : > { %v1171_v50 = vsel %vm4754_vm9, %v1163_v36, %v1170_v10  ;;  %v1292_v14 = vsel %vm4740_vm8, %v1172_v57, %v1291_v59  ;;  %v4221_v58 = vpack.c.bf16 %v1049_v63, %v1049_v63  ;;  %v1050_v22 = vmax.f32 %v1014_v44, 0.0  ;;  %v1301_v36 = vld [vmem:[#allocation2 + $0x9c] sm:$0xf]  ;;  %v1305_v59 = vld [vmem:[#allocation2 + $0xa4] sm:$0x1] }
 0x12d   : > { %v1559_v4 = vld [vmem:[#allocation2 + $0x74] sm:$0x1]  ;;  %1290 = vst.msk [vmem:[#allocation2 + $0x88] sm:$0xf] %vm787_vm2, %v1171_v50  ;;  %1293 = vst [vmem:[#allocation2 + $0x8c] sm:$0x1] %v1292_v14  ;;  %v1154_v2 = vsel %vm4754_vm9, %v1146_v46, %v1153_v1  ;;  %v1285_v20 = vsel %vm4740_vm8, %v1155_v15, %v1284_v62  ;;  %v4224_v33 = vpack.c.bf16 %v1052_v11, %v1052_v11 }
 0x12e   : > { %v1560_v17 = vsel %vm4797_vm10, 0, %v1559_v4  ;;  %1283 = vst.msk [vmem:[#allocation2 + $0x7c] sm:$0xf] %vm787_vm2, %v1154_v2  ;;  %1286 = vst [vmem:[#allocation2 + $0x80] sm:$0x1] %v1285_v20  ;;  %v1191_v6 = vshrl.u32 %v4223_v19, 16  ;;  %v1027_v34 = vadd.f32 %v4699_v26, %v4912_v53  ;;  %v4222_v40 = vpack.c.bf16 %v1050_v22, %v1050_v22 }
 0x12f   : > { %1561 = vst [vmem:[#allocation2 + $0x74] sm:$0x1] %v1560_v17  ;;  %v1556_v51 = vld [vmem:[#allocation2 + $0x68] sm:$0x1]  ;;  %v1510_v27 = vld [vmem:[#allocation2 + $0x84] sm:$0x1]  ;;  %v1038_v23 = vadd.f32 %v4917_v60, %v4699_v26 }
 0x130   : > { %v1194_v21 = vshll.u32 %v4223_v19, 16  ;;  %v1557_v5 = vsel %vm4797_vm10, 0, %v1556_v51  ;;  %v1511_v35 = vsel %vm4740_vm8, 0, %v1510_v27  ;;  %v1174_v41 = vshrl.u32 %v4221_v58, 16  ;;  %v1298_v15 = vld [vmem:[#allocation2 + $0x98] sm:$0x1] }
 0x131   : > { %v1177_v9 = vshll.u32 %v4221_v58, 16  ;;  %1558 = vst [vmem:[#allocation2 + $0x68] sm:$0x1] %v1557_v5  ;;  %1512 = vst [vmem:[#allocation2 + $0x84] sm:$0x1] %v1511_v35  ;;  %v1193_v38 = vrot.slane %v1191_v6, 7  ;;  %v1030_v51 = vadd.f32 %v4699_v26, %v4923_v8 }
 0x132   : > { %v1199_v54 = vshrl.u32 %v4224_v33, 16  ;;  %v1202_v39 = vshll.u32 %v4224_v33, 16  ;;  %v1507_v13 = vld [vmem:[#allocation2 + $0x78] sm:$0x1]  ;;  %v1176_v42 = vrot.slane %v1174_v41, 7  ;;  %v1055_v45 = vmax.f32 %v1035_v18, 0.0 }
 0x133   : > { %v1053_v53 = vmax.f32 %v1027_v34, 0.0  ;;  %v1508_v46 = vsel %vm4740_vm8, 0, %v1507_v13  ;;  %v1196_v47 = vor.u32 %v1194_v21, %v1193_v38  ;;  %v1197_v28 = vrot.slane %v1193_v38, 4  ;;  %v4151_v27 = vld [vmem:[%s6073_s3] ss:$0 sm:$0xff] }
 0x134   : > { %v1201_v43 = vrot.slane %v1199_v54, 7  ;;  %1509 = vst [vmem:[#allocation2 + $0x78] sm:$0x1] %v1508_v46  ;;  %v1565_v48 = vld [vmem:[#allocation2 + $0x8c] sm:$0x1]  ;;  %v1179_v52 = vor.u32 %v1177_v9, %v1176_v42  ;;  %v1180_v0 = vrot.slane %v1176_v42, 4  ;;  %v4227_v44 = vpack.c.bf16 %v1055_v45, %v1055_v45 }
 0x135   : > { %v1182_v12 = vshrl.u32 %v4222_v40, 16  ;;  %v1185_v10 = vshll.u32 %v4222_v40, 16  ;;  %v1566_v57 = vsel %vm4797_vm10, 0, %v1565_v48  ;;  %v1302_v55 = vsel %vm4716_vm7, %v1196_v47, %v1301_v36  ;;  %v1562_v16 = vld [vmem:[#allocation2 + $0x80] sm:$0x1] }
 0x136   : > { %v1204_v60 = vor.u32 %v1202_v39, %v1201_v43  ;;  %v1206_v62 = vrot.slane %v1201_v43, 4  ;;  %1567 = vst [vmem:[#allocation2 + $0x8c] sm:$0x1] %v1566_v57  ;;  %1303 = vst [vmem:[#allocation2 + $0x9c] sm:$0xf] %v1302_v55  ;;  %v1295_v63 = vsel %vm4716_vm7, %v1179_v52, %v1294_v31  ;;  %v4225_v4 = vpack.c.bf16 %v1053_v53, %v1053_v53  ;;  %v4234_v55 = vld [vmem:[#allocation2] sm:$0xff]  }
 0x137   : > { %v1184_v32 = vrot.slane %v1182_v12, 7  ;;  %v1563_v50 = vsel %vm4797_vm10, 0, %v1562_v16  ;;  %1296 = vst [vmem:[#allocation2 + $0x90] sm:$0xf] %v1295_v63  ;;  %v1056_v17 = vmax.f32 %v1038_v23, 0.0  ;;  %v1225_v11 = vshrl.u32 %v4227_v44, 16 }
 0x138   : > { %v1205_v14 = vsel %vm4754_vm9, %v1197_v28, %v1204_v60  ;;  %v1306_v1 = vsel %vm4740_vm8, %v1206_v62, %v1305_v59  ;;  %1564 = vst [vmem:[#allocation2 + $0x80] sm:$0x1] %v1563_v50  ;;  %v1228_v2 = vshll.u32 %v4227_v44, 16  ;;  %v1208_v20 = vshrl.u32 %v4225_v4, 16  ;;  %v1315_v5 = vld [vmem:[#allocation2 + $0xb4] sm:$0xf] }
 0x139   : > { %1304 = vst.msk [vmem:[#allocation2 + $0xa0] sm:$0xf] %vm787_vm2, %v1205_v14  ;;  %1307 = vst [vmem:[#allocation2 + $0xa4] sm:$0x1] %v1306_v1  ;;  %v1187_v19 = vor.u32 %v1185_v10, %v1184_v32  ;;  %v1189_v58 = vrot.slane %v1184_v32, 4  ;;  %v1211_v22 = vshll.u32 %v4225_v4, 16  ;;  %v4228_v18 = vpack.c.bf16 %v1056_v17, %v1056_v17 }
 0x13a   : > { %v1227_v33 = vrot.slane %v1225_v11, 7  ;;  %v1400_v34 = vadd.f32 %v4767_v49, %v4151_v27  ;;  %v5035_v35 = vrot.slane %v1208_v20, 7  ;;  %v1054_v36 = vmax.f32 %v1030_v51, 0.0  ;;  %v1308_v38 = vld [vmem:[#allocation2 + $0xa8] sm:$0xf] }
 0x13b   : > { %v1188_v6 = vsel %vm4754_vm9, %v1180_v0, %v1187_v19  ;;  %v1299_v21 = vsel %vm4740_vm8, %v1189_v58, %v1298_v15  ;;  %v1233_v26 = vshrl.u32 %v4228_v18, 16  ;;  %v1236_v8 = vshll.u32 %v4228_v18, 16  ;;  %v1319_v46 = vld [vmem:[#allocation2 + $0xbc] sm:$0x1]  ;;  %v1312_v4 = vld [vmem:[#allocation2 + $0xb0] sm:$0x1] }
 0x13c   : > { %1297 = vst.msk [vmem:[#allocation2 + $0x94] sm:$0xf] %vm787_vm2, %v1188_v6  ;;  %1300 = vst [vmem:[#allocation2 + $0x98] sm:$0x1] %v1299_v21  ;;  %v1230_v41 = vor.u32 %v1228_v2, %v1227_v33  ;;  %v1231_v9 = vrot.slane %v1227_v33, 4  ;;  %v1408_v31 = vmax.f32 %v1400_v34, 0.0  ;;  %v1392_v54 = vadd.f32 %v4151_v27, %v4773_v56 }
 0x13d   : > { %v1516_v39 = vld [vmem:[#allocation2 + $0x9c] sm:$0x1]  ;;  %v1213_v40 = vor.u32 %v1211_v22, %v5035_v35  ;;  %v1214_v49 = vrot.slane %v5035_v35, 4  ;;  %v1235_v13 = vrot.slane %v1233_v26, 7  ;;  %v4226_v42 = vpack.c.bf16 %v1054_v36, %v1054_v36  ;;  %v1470_v17 = vld [vmem:[#allocation2 + $0xcc] sm:$0xf] }
 0x13e   : > { %v1517_v45 = vsel %vm4740_vm8, 0, %v1516_v39  ;;  %v1513_v53 = vld [vmem:[#allocation2 + $0x90] sm:$0x1]  ;;  %v1316_v23 = vsel %vm4716_vm7, %v1230_v41, %v1315_v5  ;;  %v4231_v47 = vpack.c.bf16 %v1408_v31, %v1408_v31  ;;  %v1406_v28 = vmax.f32 %v1392_v54, 0.0  ;;  %v1670_v21 = vld [vmem:[#allocation2 + $0x8] sm:$0x1] }
 0x13f   : > { %1518 = vst [vmem:[#allocation2 + $0x9c] sm:$0x1] %v1517_v45  ;;  %v1514_v56 = vsel %vm4740_vm8, 0, %v1513_v53  ;;  %1317 = vst [vmem:[#allocation2 + $0xb4] sm:$0xf] %v1316_v23  ;;  %v1309_v59 = vsel %vm4716_vm7, %v1213_v40, %v1308_v38  ;;  %v1238_v48 = vor.u32 %v1236_v8, %v1235_v13  ;;  %v1240_v52 = vrot.slane %v1235_v13, 4 }
 0x140   : > { %v1571_v43 = vld [vmem:[#allocation2 + $0xa4] sm:$0x1]  ;;  %1515 = vst [vmem:[#allocation2 + $0x90] sm:$0x1] %v1514_v56  ;;  %1310 = vst [vmem:[#allocation2 + $0xa8] sm:$0xf] %v1309_v59  ;;  %v4229_v63 = vpack.c.bf16 %v1406_v28, %v1406_v28  ;;  %v1403_v14 = vadd.f32 %v4777_v61, %v4151_v27  ;;  %v1395_v1 = vadd.f32 %v4151_v27, %v4784_v3  ;;  %v4235_v11 = vunpack.c.l.bf16 %v4234_v55 }
 0x141   : > { %v1572_v0 = vsel %vm4797_vm10, 0, %v1571_v43  ;;  %v1216_v12 = vshrl.u32 %v4226_v42, 16  ;;  %v1219_v10 = vshll.u32 %v4226_v42, 16  ;;  %v1440_v57 = vshrl.u32 %v4231_v47, 16  ;;  %v5066_v61 = vld [vmem:[%s6074_s4] ss:$0 sm:$0xff] }
 0x142   : > { %1573 = vst [vmem:[#allocation2 + $0xa4] sm:$0x1] %v1572_v0  ;;  %v1239_v60 = vsel %vm4754_vm9, %v1231_v9, %v1238_v48  ;;  %v1320_v62 = vsel %vm4740_vm8, %v1240_v52, %v1319_v46  ;;  %v1443_v16 = vshll.u32 %v4231_v47, 16  ;;  %v1423_v19 = vshrl.u32 %v4229_v63, 16  ;;  %v1463_v26 = vld [vmem:[#allocation2 + $0xc0] sm:$0xf] }
 0x143   : > { %v1568_v32 = vld [vmem:[#allocation2 + $0x98] sm:$0x1]  ;;  %1318 = vst.msk [vmem:[#allocation2 + $0xb8] sm:$0xf] %vm787_vm2, %v1239_v60  ;;  %1321 = vst [vmem:[#allocation2 + $0xbc] sm:$0x1] %v1320_v62  ;;  %v4236_v6 = vunpack.c.h.bf16 %v4234_v55  ;;  %v5077_v8 = vmul.f32 %v4235_v11, %v5066_v61 }
 0x144   : > { %v1218_v44 = vrot.slane %v1216_v12, 7  ;;  %v5055_v50 = vrot.slane %v1440_v57, 7  ;;  %v1569_v15 = vsel %vm4797_vm10, 0, %v1568_v32  ;;  %v1426_v58 = vshll.u32 %v4229_v63, 16  ;;  %v5090_v13 = vld [vmem:[%s6074_s4 + $0x1] ss:$0 sm:$0xff] }
 0x145   : > { %1570 = vst [vmem:[#allocation2 + $0x98] sm:$0x1] %v1569_v15  ;;  %v5068_v3 = vrot.slane %v1423_v19, 7  ;;  %v1409_v51 = vmax.f32 %v1403_v14, 0.0  ;;  %v1407_v27 = vmax.f32 %v1395_v1, 0.0  ;;  %v1639_v40 = vmul.f32 %v4236_v6, %v5066_v61  ;;  %v1955_v14 = vld [vmem:[#allocation2 + $0xc] sm:$0xff]  }
 0x146   : > { %v1221_v2 = vor.u32 %v1219_v10, %v1218_v44  ;;  %v1223_v20 = vrot.slane %v1218_v44, 4  ;;  %v1445_v22 = vor.u32 %v1443_v16, %v5055_v50  ;;  %v1446_v18 = vrot.slane %v5055_v50, 4  ;;  %v1522_v33 = vld [vmem:[#allocation2 + $0xb4] sm:$0x1]  ;;  %v1812_v42 = vld [vmem:[#allocation2] sm:$0xe] }
 0x147   : > { %v1523_v36 = vsel %vm4740_vm8, 0, %v1522_v33  ;;  %v1519_v41 = vld [vmem:[#allocation2 + $0xa8] sm:$0x1]  ;;  %v1428_v9 = vor.u32 %v1426_v58, %v5068_v3  ;;  %v1429_v38 = vrot.slane %v5068_v3, 4  ;;  %v4232_v31 = vpack.c.bf16 %v1409_v51, %v1409_v51  ;;  %v5102_v12 = vld [vmem:[%s6074_s4 + $0x2] ss:$0 sm:$0xff] }
 0x148   : > { %v1222_v34 = vsel %vm4754_vm9, %v1214_v49, %v1221_v2  ;;  %v1313_v5 = vsel %vm4740_vm8, %v1223_v20, %v1312_v4  ;;  %v1471_v35 = vsel %vm4716_vm7, %v1445_v22, %v1470_v17  ;;  %1524 = vst [vmem:[#allocation2 + $0xb4] sm:$0x1] %v1523_v36  ;;  %v1520_v54 = vsel %vm4740_vm8, 0, %v1519_v41  ;;  %v1474_v10 = vld [vmem:[#allocation2 + $0xd4] sm:$0x1] }
 0x149   : > { %1311 = vst.msk [vmem:[#allocation2 + $0xac] sm:$0xf] %vm787_vm2, %v1222_v34  ;;  %1314 = vst [vmem:[#allocation2 + $0xb0] sm:$0x1] %v1313_v5  ;;  %v4230_v39 = vpack.c.bf16 %v1407_v27, %v1407_v27  ;;  %v1678_v49 = vunpack.c.l.bf16 %v1670_v21  ;;  %v1464_v53 = vsel %vm4716_vm7, %v1428_v9, %v1463_v26  ;;  %v1448_v23 = vshrl.u32 %v4232_v31, 16 }
 0x14a   : > { %1472 = vst [vmem:[#allocation2 + $0xcc] sm:$0xf] %v1471_v35  ;;  %1521 = vst [vmem:[#allocation2 + $0xa8] sm:$0x1] %v1520_v54  ;;  %v1577_v45 = vld [vmem:[#allocation2 + $0xbc] sm:$0x1]  ;;  %v1691_v47 = vmul.f32 %v4235_v11, %v5090_v13  ;;  %v1692_v59 = vmul.f32 %v4236_v6, %v5090_v13  ;;  %v1820_v7 = vunpack.c.l.bf16 %v1812_v42  ;;  %v1834_v60 = vmul.f32 %v4236_v6, %v5102_v12 }
 0x14b   : > { %v1451_v46 = vshll.u32 %v4232_v31, 16  ;;  %v1578_v28 = vsel %vm4797_vm10, 0, %v1577_v45  ;;  %1465 = vst [vmem:[#allocation2 + $0xc0] sm:$0xf] %v1464_v53  ;;  %v1431_v56 = vshrl.u32 %v4230_v39, 16  ;;  %v1434_v43 = vshll.u32 %v4230_v39, 16 }
 0x14c   : > { %1579 = vst [vmem:[#allocation2 + $0xbc] sm:$0x1] %v1578_v28  ;;  %v1450_v48 = vrot.slane %v1448_v23, 7  ;;  %v1693_v52 = vmul.f32 %v5090_v13, %v1678_v49  ;;  %v1740_v0 = vrot.slane %v1691_v47, 1  ;;  %v1741_v55 = vrot.slane %v1692_v59, 1  ;;  %v4266_v23 = vld [vmem:[#allocation2 + $0x18] sm:$0xff]  }
 0x14d   : > { %v1433_v57 = vrot.slane %v1431_v56, 7  ;;  %v1835_v62 = vmul.f32 %v5102_v12, %v1678_v49  ;;  %v1467_v32 = vld [vmem:[#allocation2 + $0xc8] sm:$0x1]  ;;  %v1833_v4 = vmul.f32 %v5102_v12, %v1820_v7  ;;  %v1883_v11 = vrot.slane %v1834_v60, 2  ;;  %v2025_v51 = vld [vmem:[#allocation2 + $0x14] sm:$0x1] }
 0x14e   : > { %v1453_v16 = vor.u32 %v1451_v46, %v1450_v48  ;;  %v1455_v63 = vrot.slane %v1450_v48, 4  ;;  %v1743_v44 = vrot.slane %v1693_v52, 1  ;;  %v1742_v58 = vsel %vm1739_vm11, %v1740_v0, %v1741_v55  ;;  %v2166_v27 = vld [vmem:[#allocation2 + $0xc] sm:$0xe]  ;;  %v5140_v9 = vld [vmem:[%s6074_s4 + $0x5] ss:$0 sm:$0xff] }
 0x14f   : > { %v1436_v17 = vor.u32 %v1434_v43, %v1433_v57  ;;  %v1438_v19 = vrot.slane %v1433_v57, 4  ;;  %v1882_v37 = vrot.slane %v1833_v4, 2  ;;  %v1885_v5 = vrot.slane %v1835_v62, 2  ;;  %v5151_v53 = vld [vmem:[%s6074_s4 + $0x6] ss:$0 sm:$0xff] }
 0x150   : > { %v1574_v1 = vld [vmem:[#allocation2 + $0xb0] sm:$0x1]  ;;  %v1454_v22 = vsel %vm4754_vm9, %v1446_v18, %v1453_v16  ;;  %v1475_v3 = vsel %vm4740_vm8, %v1455_v63, %v1474_v10  ;;  %v1744_v50 = vsel %vm1739_vm11, %v1741_v55, %v1743_v44  ;;  %v1796_v18 = vadd.f32 %v1742_v58, %v5077_v8  ;;  %v5135_v8 = vld [vmem:[%s6074_s4 + $0x4] ss:$0 sm:$0xff]  ;;  %v2378_v44 = vld [vmem:[#allocation2 + $0x20] sm:$0x1] }
 0x151   : > { %v1528_v15 = vld [vmem:[#allocation2 + $0xcc] sm:$0x1]  ;;  %v1575_v2 = vsel %vm4797_vm10, 0, %v1574_v1  ;;  %1473 = vst.msk [vmem:[#allocation2 + $0xd0] sm:$0xf] %vm787_vm2, %v1454_v22  ;;  %v1437_v6 = vsel %vm4754_vm9, %v1429_v38, %v1436_v17  ;;  %v1468_v21 = vsel %vm4740_vm8, %v1438_v19, %v1467_v32  ;;  %v1797_v34 = vadd.f32 %v1744_v50, %v1639_v40 }
 0x152   : > { %v1529_v20 = vsel %vm4740_vm8, 0, %v1528_v15  ;;  %1576 = vst [vmem:[#allocation2 + $0xb0] sm:$0x1] %v1575_v2  ;;  %1476 = vst [vmem:[#allocation2 + $0xd4] sm:$0x1] %v1475_v3  ;;  %v1971_v35 = vunpack.c.l.bf16 %v1955_v14  ;;  %v1972_v36 = vunpack.c.h.bf16 %v1955_v14  ;;  %v2033_v41 = vunpack.c.l.bf16 %v2025_v51  ;;  %v1603_v58 = vld [vmem:[#allocation2 + $0xc] sm:$0xff]  }
 0x153   : > { %1530 = vst [vmem:[#allocation2 + $0xcc] sm:$0x1] %v1529_v20  ;;  %v1525_v33 = vld [vmem:[#allocation2 + $0xc0] sm:$0x1]  ;;  %1596 = vst.msk [vmem:[#allocation2 + $0xd0] sm:$0xf] %vm787_vm2, %v4567_v24  ;;  %v2174_v38 = vunpack.c.l.bf16 %v2166_v27  ;;  %v1884_v31 = vsel %vm1881_vm12, %v1882_v37, %v1883_v11  ;;  %v1886_v54 = vsel %vm1881_vm12, %v1883_v11, %v1885_v5  ;;  %v5157_v55 = vunpack.c.l.bf16 %v4266_v23 }
 0x154   : > { %1595 = vst.msk [vmem:[#allocation2 + $0xcc] sm:$0xf] %vm787_vm2, %v4567_v24  ;;  %1466 = vst.msk [vmem:[#allocation2 + $0xc4] sm:$0xf] %vm787_vm2, %v1437_v6  ;;  %v1526_v26 = vsel %vm4740_vm8, 0, %v1525_v33  ;;  %v1993_v29 = vmul.f32 %v5135_v8, %v1971_v35  ;;  %v2046_v39 = vmul.f32 %v5140_v9, %v1971_v35  ;;  %v1938_v40 = vadd.f32 %v1884_v31, %v1796_v18 }
 0x155   : > { %1469 = vst [vmem:[#allocation2 + $0xc8] sm:$0x1] %v1468_v21  ;;  %1527 = vst [vmem:[#allocation2 + $0xc0] sm:$0x1] %v1526_v26  ;;  %v1939_v49 = vadd.f32 %v1886_v54, %v1797_v34  ;;  %v1994_v42 = vmul.f32 %v5135_v8, %v1972_v36  ;;  %v2047_v45 = vmul.f32 %v5140_v9, %v1972_v36  ;;  %v5162_v32 = vunpack.c.h.bf16 %v4266_v23  ;;  %v5171_v17 = vld [vmem:[%s6074_s4 + $0x8] ss:$0 sm:$0xff] }
 0x156   : > { %v2048_v46 = vmul.f32 %v5140_v9, %v2033_v41  ;;  %v2094_v47 = vrot.slane %v2046_v39, 1  ;;  %v2187_v28 = vmul.f32 %v5151_v53, %v2174_v38  ;;  %v2188_v56 = vmul.f32 %v5151_v53, %v1972_v36  ;;  %v2519_v19 = vld [vmem:[#allocation2 + $0x18] sm:$0xe]  ;;  %v5183_v22 = vld [vmem:[%s6074_s4 + $0x9] ss:$0 sm:$0xff] }
 0x157   : > { %v2009_v43 = vadd.f32 %v1993_v29, %v1938_v40  ;;  %v2010_v59 = vadd.f32 %v1994_v42, %v1939_v49  ;;  %v2095_v48 = vrot.slane %v2047_v45, 1  ;;  %v2189_v52 = vmul.f32 %v5151_v53, %v2033_v41  ;;  %v5192_v6 = vld [vmem:[%s6074_s4 + $0xa] ss:$0 sm:$0xff]  ;;  %v1671_v26 = vld [vmem:[#allocation2 + $0x14] sm:$0x1] }
 0x158   : > { %v2097_v7 = vrot.slane %v2048_v46, 1  ;;  %v2235_v10 = vrot.slane %v2187_v28, 2  ;;  %v2236_v57 = vrot.slane %v2188_v56, 2  ;;  %v2346_v2 = vmul.f32 %v5157_v55, %v5171_v17  ;;  %v1813_v46 = vld [vmem:[#allocation2 + $0xc] sm:$0xe] }
 0x159   : > { %v1583_v0 = vld [vmem:[#allocation2 + $0xd4] sm:$0x1]  ;;  %v2096_v16 = vsel %vm1739_vm11, %v2094_v47, %v2095_v48  ;;  %v2238_v63 = vrot.slane %v2189_v52, 2  ;;  %v2347_v20 = vmul.f32 %v5162_v32, %v5171_v17  ;;  %v2386_v51 = vunpack.c.l.bf16 %v2378_v44 }
 0x15a   : > { %v1584_v60 = vsel %vm4797_vm10, 0, %v1583_v0  ;;  %v2098_v14 = vsel %vm1739_vm11, %v2095_v48, %v2097_v7  ;;  %v2150_v1 = vadd.f32 %v2096_v16, %v2009_v43  ;;  %v2237_v15 = vsel %vm1881_vm12, %v2235_v10, %v2236_v57 }
 0x15b   : > { %1585 = vst [vmem:[#allocation2 + $0xd4] sm:$0x1] %v1584_v60  ;;  %v2151_v11 = vadd.f32 %v2098_v14, %v2010_v59  ;;  %v2239_v30 = vsel %vm1881_vm12, %v2236_v57, %v2238_v63  ;;  %v2400_v27 = vmul.f32 %v5162_v32, %v5183_v22  ;;  %v2527_v50 = vunpack.c.l.bf16 %v2519_v19  ;;  %v5208_v59 = vld [vmem:[%s6075_s5] ss:$0 sm:$0xff] }
 0x15c   : > { %v1580_v62 = vld [vmem:[#allocation2 + $0xc8] sm:$0x1]  ;;  %1597 = vst.msk [vmem:[#allocation2 + $0xd4] sm:$0x1] %vm795_vm5, %v4567_v24  ;;  %v2291_v3 = vadd.f32 %v2237_v15, %v2150_v1  ;;  %v2399_v24 = vmul.f32 %v5157_v55, %v5183_v22  ;;  %v2541_v18 = vmul.f32 %v5162_v32, %v5192_v6  ;;  %v1619_v33 = vunpack.c.l.bf16 %v1603_v58 }
 0x15d   : > { %v1581_v4 = vsel %vm4797_vm10, 0, %v1580_v62  ;;  %v2292_v21 = vadd.f32 %v2239_v30, %v2151_v11  ;;  %v2401_v37 = vmul.f32 %v5183_v22, %v2386_v51  ;;  %v2448_v35 = vrot.slane %v2400_v27, 1 }
 0x15e   : > { %1582 = vst [vmem:[#allocation2 + $0xc8] sm:$0x1] %v1581_v4  ;;  %v2362_v34 = vadd.f32 %v2346_v2, %v2291_v3  ;;  %v2447_v5 = vrot.slane %v2399_v24, 1  ;;  %v2540_v41 = vmul.f32 %v5192_v6, %v2527_v50  ;;  %v2542_v38 = vmul.f32 %v5192_v6, %v2386_v51  ;;  %v2167_v3 = vld [vmem:[#allocation2 + $0x18] sm:$0xe] }
 0x15f   : > { %v2363_v36 = vadd.f32 %v2347_v20, %v2292_v21  ;;  %v2589_v31 = vrot.slane %v2541_v18, 2  ;;  %v2450_v29 = vrot.slane %v2401_v37, 1  ;;  %v1620_v39 = vunpack.c.h.bf16 %v1603_v58  ;;  %v2026_v58 = vld [vmem:[#allocation2 + $0x20] sm:$0x1] }
 0x160   : > { %v2449_v54 = vsel %vm1739_vm11, %v2447_v5, %v2448_v35  ;;  %v1640_v40 = vmul.f32 %v5066_v61, %v1619_v33  ;;  %v2588_v42 = vrot.slane %v2540_v41, 2  ;;  %v2591_v45 = vrot.slane %v2542_v38, 2 }
 0x161   : > { %v2503_v49 = vadd.f32 %v2449_v54, %v2362_v34  ;;  %v1679_v23 = vunpack.c.l.bf16 %v1671_v26  ;;  %v2451_v47 = vsel %vm1739_vm11, %v2448_v35, %v2450_v29  ;;  %v1641_v28 = vmul.f32 %v5066_v61, %v1620_v39 }
 0x162   : > { %v1694_v56 = vmul.f32 %v5090_v13, %v1619_v33  ;;  %v1695_v43 = vmul.f32 %v5090_v13, %v1620_v39  ;;  %v2504_v48 = vadd.f32 %v2451_v47, %v2363_v36  ;;  %v2590_v52 = vsel %vm1881_vm12, %v2588_v42, %v2589_v31  ;;  %v2379_v47 = vld [vmem:[#allocation2 + $0x2c] sm:$0x1] }
 0x163   : > { %v2592_v0 = vsel %vm1881_vm12, %v2589_v31, %v2591_v45  ;;  %v1696_v7 = vmul.f32 %v5090_v13, %v1679_v23  ;;  %v2644_v10 = vadd.f32 %v2590_v52, %v2503_v49  ;;  %v1821_v62 = vunpack.c.l.bf16 %v1813_v46  ;;  %v2310_v49 = vld [vmem:[#allocation2 + $0x24] sm:$0xff]  }
 0x164   : > { %v1745_v57 = vrot.slane %v1694_v56, 1  ;;  %v1746_v60 = vrot.slane %v1695_v43, 1  ;;  %v2645_v16 = vadd.f32 %v2592_v0, %v2504_v48  ;;  %v1837_v44 = vmul.f32 %v5102_v12, %v1620_v39 }
 0x165   : > { %v1748_v63 = vrot.slane %v1696_v7, 1  ;;  %v1838_v4 = vmul.f32 %v5102_v12, %v1679_v23  ;;  %v2666_v14 = vadd.f32 %v5208_v59, %v2644_v10  ;;  %v1836_v15 = vmul.f32 %v5102_v12, %v1821_v62 }
 0x166   : > { %v1747_v1 = vsel %vm1739_vm11, %v1745_v57, %v1746_v60  ;;  %v1995_v19 = vmul.f32 %v5157_v55, %v5135_v8  ;;  %v2667_v11 = vadd.f32 %v5208_v59, %v2645_v16  ;;  %v1888_v20 = vrot.slane %v1837_v44, 2  ;;  %v2520_v57 = vld [vmem:[#allocation2 + $0x24] sm:$0xe] }
 0x167   : > { %v1749_v30 = vsel %vm1739_vm11, %v1746_v60, %v1748_v63  ;;  %v1798_v2 = vadd.f32 %v1747_v1, %v1640_v40  ;;  %v2682_v51 = vmax.f32 %v2666_v14, 0.0  ;;  %v1887_v27 = vrot.slane %v1836_v15, 2 }
 0x168   : > { %v1799_v24 = vadd.f32 %v1749_v30, %v1641_v28  ;;  %v1890_v21 = vrot.slane %v1838_v4, 2  ;;  %v2683_v50 = vmax.f32 %v2667_v11, 0.0  ;;  %v1996_v18 = vmul.f32 %v5162_v32, %v5135_v8  ;;  %v4282_v30 = vld [vmem:[#allocation2 + $0x60] sm:$0xff]  }
 0x169   : > { %v2034_v33 = vunpack.c.l.bf16 %v2026_v58  ;;  %v2049_v34 = vmul.f32 %v5157_v55, %v5140_v9  ;;  %v1889_v37 = vsel %vm1881_vm12, %v1887_v27, %v1888_v20  ;;  %v2050_v35 = vmul.f32 %v5162_v32, %v5140_v9 }
 0x16a   : > { %v1891_v5 = vsel %vm1881_vm12, %v1888_v20, %v1890_v21  ;;  %v2175_v26 = vunpack.c.l.bf16 %v2167_v3  ;;  %v2698_v36 = vpack.c.bf16 %v2683_v50, %v2682_v51  ;;  %v1940_v41 = vadd.f32 %v1889_v37, %v1798_v2 }
 0x16b   : > { %v1941_v38 = vadd.f32 %v1891_v5, %v1799_v24  ;;  %v2051_v31 = vmul.f32 %v5140_v9, %v2034_v33  ;;  %v2099_v54 = vrot.slane %v2049_v34, 1  ;;  %v2100_v29 = vrot.slane %v2050_v35, 1  ;;  %v2852_v5 = vld [vmem:[#allocation2 + $0x68] sm:$0x1] }
 0x16c   : > { %v2190_v39 = vmul.f32 %v5151_v53, %v2175_v26  ;;  %v2191_v40 = vmul.f32 %v5162_v32, %v5151_v53  ;;  %v2716_v42 = vsel %vm2711_vm13, %v2698_v36, 0  ;;  %v2011_v45 = vadd.f32 %v1995_v19, %v1940_v41 }
 0x16d   : > { %v2012_v23 = vadd.f32 %v1996_v18, %v1941_v38  ;;  %v2102_v46 = vrot.slane %v2051_v31, 1  ;;  %4431 = vmatpush3.bf16.xpose.msra.mxu1 %v2716_v42  ;;  %v2101_v28 = vsel %vm1739_vm11, %v2099_v54, %v2100_v29  ;;  %v2192_v56 = vmul.f32 %v5151_v53, %v2034_v33  ;;  %v2993_v38 = vld [vmem:[#allocation2 + $0x60] sm:$0xe] }
 0x16e   : > { %v2240_v43 = vrot.slane %v2190_v39, 2  ;;  %v2241_v48 = vrot.slane %v2191_v40, 2  ;;  %4432 = vmatprep.subr.bf16.mxu1 %v4568_v25  ;;  %v2152_v0 = vadd.f32 %v2101_v28, %v2011_v45  ;;  %v2326_v7 = vunpack.c.l.bf16 %v2310_v49 }
 0x16f   : > { %v2103_v52 = vsel %vm1739_vm11, %v2100_v29, %v2102_v46  ;;  %v2327_v10 = vunpack.c.h.bf16 %v2310_v49  ;;  %v2243_v16 = vrot.slane %v2192_v56, 2  ;;  %v2387_v63 = vunpack.c.l.bf16 %v2379_v47  ;;  %v3135_v56 = vld [vmem:[#allocation2 + $0x6c] sm:$0xff]  }
 0x170   : > { %v2153_v60 = vadd.f32 %v2103_v52, %v2012_v23  ;;  %v2242_v62 = vsel %vm1881_vm12, %v2240_v43, %v2241_v48  ;;  %v2348_v4 = vmul.f32 %v5171_v17, %v2326_v7  ;;  %v2402_v1 = vmul.f32 %v5183_v22, %v2326_v7 }
 0x171   : > { %v2293_v44 = vadd.f32 %v2242_v62, %v2152_v0  ;;  %v2349_v14 = vmul.f32 %v5171_v17, %v2327_v10  ;;  %v2244_v15 = vsel %vm1881_vm12, %v2241_v48, %v2243_v16  ;;  %v2403_v19 = vmul.f32 %v5183_v22, %v2327_v10 }
 0x172   : > { %v2404_v58 = vmul.f32 %v5183_v22, %v2387_v63  ;;  %v2528_v11 = vunpack.c.l.bf16 %v2520_v57  ;;  %v2294_v2 = vadd.f32 %v2244_v15, %v2153_v60  ;;  %v2452_v3 = vrot.slane %v2402_v1, 1 }
 0x173   : > { %v2364_v20 = vadd.f32 %v2348_v4, %v2293_v44  ;;  %v2544_v51 = vmul.f32 %v5192_v6, %v2327_v10  ;;  %v2453_v24 = vrot.slane %v2403_v19, 1  ;;  %v2545_v50 = vmul.f32 %v5192_v6, %v2387_v63  ;;  %v3204_v19 = vld [vmem:[#allocation2 + $0x74] sm:$0x1] }
 0x174   : > { %v2455_v27 = vrot.slane %v2404_v58, 1  ;;  %v2543_v21 = vmul.f32 %v5192_v6, %v2528_v11  ;;  %v2365_v18 = vadd.f32 %v2349_v14, %v2294_v2  ;;  %v4283_v34 = vunpack.c.l.bf16 %v4282_v30 }
 0x175   : > { %v2594_v33 = vrot.slane %v2544_v51, 2  ;;  %v4284_v37 = vunpack.c.h.bf16 %v4282_v30  ;;  %v2454_v35 = vsel %vm1739_vm11, %v2452_v3, %v2453_v24  ;;  %v2596_v41 = vrot.slane %v2545_v50, 2 }
 0x176   : > { %v2456_v26 = vsel %vm1739_vm11, %v2453_v24, %v2455_v27  ;;  %v2593_v36 = vrot.slane %v2543_v21, 2  ;;  %v2505_v31 = vadd.f32 %v2454_v35, %v2364_v20  ;;  %v2820_v29 = vmul.f32 %v4283_v34, %v5066_v61  ;;  %v3345_v20 = vld [vmem:[#allocation2 + $0x6c] sm:$0xe] }
 0x177   : > { %v2506_v54 = vadd.f32 %v2456_v26, %v2365_v18  ;;  %v2821_v39 = vmul.f32 %v4284_v37, %v5066_v61  ;;  %v2597_v49 = vsel %vm1881_vm12, %v2594_v33, %v2596_v41  ;;  %v2860_v42 = vunpack.c.l.bf16 %v2852_v5  ;;  %v4314_v26 = vld [vmem:[#allocation2 + $0x78] sm:$0xff]  }
 0x178   : > { %v2595_v40 = vsel %vm1881_vm12, %v2593_v36, %v2594_v33  ;;  %v2873_v45 = vmul.f32 %v4283_v34, %v5090_v13  ;;  %v2874_v47 = vmul.f32 %v4284_v37, %v5090_v13  ;;  %v3001_v28 = vunpack.c.l.bf16 %v2993_v38 }
 0x179   : > { %v2646_v23 = vadd.f32 %v2595_v40, %v2505_v31  ;;  %v2647_v46 = vadd.f32 %v2597_v49, %v2506_v54  ;;  %v2875_v43 = vmul.f32 %v5090_v13, %v2860_v42  ;;  %v3015_v52 = vmul.f32 %v4284_v37, %v5102_v12  ;;  %v3556_v54 = vld [vmem:[#allocation2 + $0x80] sm:$0x1] }
 0x17a   : > { %v2921_v48 = vrot.slane %v2873_v45, 1  ;;  %v3016_v0 = vmul.f32 %v5102_v12, %v2860_v42  ;;  %v2922_v57 = vrot.slane %v2874_v47, 1  ;;  %v3014_v60 = vmul.f32 %v5102_v12, %v3001_v28 }
 0x17b   : > { %v2668_v7 = vadd.f32 %v5208_v59, %v2646_v23  ;;  %v2669_v10 = vadd.f32 %v5208_v59, %v2647_v46  ;;  %v2924_v62 = vrot.slane %v2875_v43, 1  ;;  %v3063_v16 = vrot.slane %v3015_v52, 2 }
 0x17c   : > { %v3065_v63 = vrot.slane %v3016_v0, 2  ;;  %v3151_v44 = vunpack.c.l.bf16 %v3135_v56  ;;  %v2923_v1 = vsel %vm1739_vm11, %v2921_v48, %v2922_v57  ;;  %v3062_v15 = vrot.slane %v3014_v60, 2  ;;  %v3697_v48 = vld [vmem:[#allocation2 + $0x78] sm:$0xe] }
 0x17d   : > { %v2684_v4 = vmax.f32 %v2668_v7, 0.0  ;;  %v2685_v14 = vmax.f32 %v2669_v10, 0.0  ;;  %v2925_v58 = vsel %vm1739_vm11, %v2922_v57, %v2924_v62  ;;  %v2977_v11 = vadd.f32 %v2923_v1, %v2820_v29 }
 0x17e   : > { %v3066_v30 = vsel %vm1881_vm12, %v3063_v16, %v3065_v63  ;;  %v3152_v2 = vunpack.c.h.bf16 %v3135_v56  ;;  %v2978_v51 = vadd.f32 %v2925_v58, %v2821_v39  ;;  %v3064_v24 = vsel %vm1881_vm12, %v3062_v15, %v3063_v16 }
 0x17f   : > { %v2699_v3 = vpack.c.bf16 %v2685_v14, %v2684_v4  ;;  %v3172_v27 = vmul.f32 %v5135_v8, %v3151_v44  ;;  %v3118_v21 = vadd.f32 %v3064_v24, %v2977_v11  ;;  %v3212_v18 = vunpack.c.l.bf16 %v3204_v19 }
 0x180   : > { %v3173_v50 = vmul.f32 %v5135_v8, %v3152_v2  ;;  %v3225_v33 = vmul.f32 %v5140_v9, %v3151_v44  ;;  %v3119_v37 = vadd.f32 %v3066_v30, %v2978_v51  ;;  %v3226_v5 = vmul.f32 %v5140_v9, %v3152_v2 }
 0x181   : > { %v2719_v34 = vsel %vm2711_vm13, %v2699_v3, 0  ;;  %v3353_v35 = vunpack.c.l.bf16 %v3345_v20  ;;  %v3188_v36 = vadd.f32 %v3172_v27, %v3118_v21  ;;  %v3227_v41 = vmul.f32 %v5140_v9, %v3212_v18  ;;  %v1672_v3 = vld [vmem:[#allocation2 + $0x20] sm:$0x1] }
 0x182   : > { %4433 = vmatpush3.bf16.xpose.msra.mxu1 %v2719_v34  ;;  %v3273_v38 = vrot.slane %v3225_v33, 1  ;;  %v3367_v31 = vmul.f32 %v5151_v53, %v3152_v2  ;;  %v3189_v29 = vadd.f32 %v3173_v50, %v3119_v37  ;;  %v3274_v39 = vrot.slane %v3226_v5, 1  ;;  %v1814_v50 = vld [vmem:[#allocation2 + $0x18] sm:$0xe] }
 0x183   : > { %4434 = vmatprep.subr.bf16.mxu1 %v4568_v25  ;;  %v3366_v40 = vmul.f32 %v5151_v53, %v3353_v35  ;;  %v3368_v49 = vmul.f32 %v5151_v53, %v3212_v18  ;;  %v3276_v42 = vrot.slane %v3227_v41, 1  ;;  %v5277_v23 = vunpack.c.l.bf16 %v4314_v26 }
 0x184   : > { %v3415_v45 = vrot.slane %v3367_v31, 2  ;;  %v5279_v46 = vunpack.c.h.bf16 %v4314_v26  ;;  %v3275_v47 = vsel %vm1739_vm11, %v3273_v38, %v3274_v39  ;;  %v3564_v43 = vunpack.c.l.bf16 %v3556_v54 }
 0x185   : > { %v3414_v28 = vrot.slane %v3366_v40, 2  ;;  %v3417_v56 = vrot.slane %v3368_v49, 2  ;;  %v3277_v52 = vsel %vm1739_vm11, %v3274_v39, %v3276_v42  ;;  %v3329_v0 = vadd.f32 %v3275_v47, %v3188_v36  ;;  %v1959_v42 = vld [vmem:[#allocation2 + $0x24] sm:$0xff]  }
 0x186   : > { %v3524_v7 = vmul.f32 %v5277_v23, %v5171_v17  ;;  %v3525_v10 = vmul.f32 %v5279_v46, %v5171_v17  ;;  %v3330_v57 = vadd.f32 %v3277_v52, %v3189_v29  ;;  %v3577_v16 = vmul.f32 %v5277_v23, %v5183_v22 }
 0x187   : > { %v3416_v60 = vsel %vm1881_vm12, %v3414_v28, %v3415_v45  ;;  %v3418_v62 = vsel %vm1881_vm12, %v3415_v45, %v3417_v56  ;;  %v3578_v44 = vmul.f32 %v5279_v46, %v5183_v22  ;;  %v3579_v4 = vmul.f32 %v5183_v22, %v3564_v43 }
 0x188   : > { %v3470_v63 = vadd.f32 %v3416_v60, %v3329_v0  ;;  %v3705_v14 = vunpack.c.l.bf16 %v3697_v48  ;;  %v3471_v1 = vadd.f32 %v3418_v62, %v3330_v57  ;;  %v3625_v15 = vrot.slane %v3577_v16, 1  ;;  %v2027_v60 = vld [vmem:[#allocation2 + $0x2c] sm:$0x1] }
 0x189   : > { %v3719_v19 = vmul.f32 %v5279_v46, %v5192_v6  ;;  %v3720_v58 = vmul.f32 %v5192_v6, %v3564_v43  ;;  %v3626_v30 = vrot.slane %v3578_v44, 1  ;;  %v3628_v2 = vrot.slane %v3579_v4, 1 }
 0x18a   : > { %v3540_v11 = vadd.f32 %v3524_v7, %v3470_v63  ;;  %v3718_v20 = vmul.f32 %v5192_v6, %v3705_v14  ;;  %v3541_v51 = vadd.f32 %v3525_v10, %v3471_v1  ;;  %v1642_v21 = vmul.f32 %v5157_v55, %v5066_v61 }
 0x18b   : > { %v3767_v24 = vrot.slane %v3719_v19, 2  ;;  %v3769_v27 = vrot.slane %v3720_v58, 2  ;;  %v3627_v18 = vsel %vm1739_vm11, %v3625_v15, %v3626_v30  ;;  %v3629_v33 = vsel %vm1739_vm11, %v3626_v30, %v3628_v2  ;;  %v2168_v15 = vld [vmem:[#allocation2 + $0x24] sm:$0xe] }
 0x18c   : > { %v3766_v34 = vrot.slane %v3718_v20, 2  ;;  %v1643_v37 = vmul.f32 %v5162_v32, %v5066_v61  ;;  %v3681_v5 = vadd.f32 %v3627_v18, %v3540_v11  ;;  %v3682_v35 = vadd.f32 %v3629_v33, %v3541_v51  ;;  %v2380_v33 = vld [vmem:[#allocation2 + $0x38] sm:$0x1] }
 0x18d   : > { %v3770_v26 = vsel %vm1881_vm12, %v3767_v24, %v3769_v27  ;;  %v1680_v36 = vunpack.c.l.bf16 %v1672_v3  ;;  %v1697_v38 = vmul.f32 %v5157_v55, %v5090_v13  ;;  %v1698_v31 = vmul.f32 %v5162_v32, %v5090_v13 }
 0x18e   : > { %v3768_v41 = vsel %vm1881_vm12, %v3766_v34, %v3767_v24  ;;  %v1822_v54 = vunpack.c.l.bf16 %v1814_v50  ;;  %v3823_v39 = vadd.f32 %v3770_v26, %v3682_v35  ;;  %v1840_v49 = vmul.f32 %v5162_v32, %v5102_v12  ;;  %v4336_v24 = vld [vmem:[#allocation2 + $0x30] sm:$0xff]  }
 0x18f   : > { %v3822_v29 = vadd.f32 %v3768_v41, %v3681_v5  ;;  %v1699_v40 = vmul.f32 %v5090_v13, %v1680_v36  ;;  %v1750_v45 = vrot.slane %v1697_v38, 1  ;;  %v1751_v47 = vrot.slane %v1698_v31, 1 }
 0x190   : > { %v1839_v28 = vmul.f32 %v5102_v12, %v1822_v54  ;;  %v1841_v56 = vmul.f32 %v5102_v12, %v1680_v36  ;;  %v3839_v43 = vadd.f32 %v5208_v59, %v3823_v39  ;;  %v1893_v52 = vrot.slane %v1840_v49, 2 }
 0x191   : > { %v3838_v55 = vadd.f32 %v5208_v59, %v3822_v29  ;;  %v1753_v48 = vrot.slane %v1699_v40, 1  ;;  %v1752_v0 = vsel %vm1739_vm11, %v1750_v45, %v1751_v47  ;;  %v1975_v57 = vunpack.c.l.bf16 %v1959_v42 }
 0x192   : > { %v1892_v7 = vrot.slane %v1839_v28, 2  ;;  %v1895_v10 = vrot.slane %v1841_v56, 2  ;;  %v3855_v62 = vmax.f32 %v3839_v43, 0.0  ;;  %v1800_v63 = vadd.f32 %v1752_v0, %v1642_v21 }
 0x193   : > { %v3854_v32 = vmax.f32 %v3838_v55, 0.0  ;;  %v1754_v16 = vsel %vm1739_vm11, %v1751_v47, %v1753_v48  ;;  %v1976_v1 = vunpack.c.h.bf16 %v1959_v42  ;;  %v1997_v11 = vmul.f32 %v5135_v8, %v1975_v57  ;;  %v2521_v47 = vld [vmem:[#allocation2 + $0x30] sm:$0xe] }
 0x194   : > { %v1801_v44 = vadd.f32 %v1754_v16, %v1643_v37  ;;  %v1894_v4 = vsel %vm1881_vm12, %v1892_v7, %v1893_v52  ;;  %v1896_v14 = vsel %vm1881_vm12, %v1893_v52, %v1895_v10  ;;  %v2035_v30 = vunpack.c.l.bf16 %v2027_v60  ;;  %v2785_v10 = vld [vmem:[#allocation2 + $0x6c] sm:$0xff]  }
 0x195   : > { %v3870_v19 = vpack.c.bf16 %v3855_v62, %v3854_v32  ;;  %v1942_v58 = vadd.f32 %v1894_v4, %v1800_v63  ;;  %v1998_v20 = vmul.f32 %v5135_v8, %v1976_v1  ;;  %v2052_v3 = vmul.f32 %v5140_v9, %v1975_v57 }
 0x196   : > { %v1943_v2 = vadd.f32 %v1896_v14, %v1801_v44  ;;  %v2053_v51 = vmul.f32 %v5140_v9, %v1976_v1  ;;  %v2054_v50 = vmul.f32 %v5140_v9, %v2035_v30  ;;  %v2176_v18 = vunpack.c.l.bf16 %v2168_v15 }
 0x197   : > { %v3879_v27 = vsel %vm2711_vm13, %v3870_v19, 0  ;;  %v2013_v21 = vadd.f32 %v1997_v11, %v1942_v58  ;;  %v2104_v37 = vrot.slane %v2052_v3, 1  ;;  %v2194_v35 = vmul.f32 %v5151_v53, %v1976_v1  ;;  %v2853_v58 = vld [vmem:[#allocation2 + $0x74] sm:$0x1] }
 0x198   : > { %4451 = vmatpush3.bf16.xpose.msra.mxu0 %v3879_v27  ;;  %v2014_v34 = vadd.f32 %v1998_v20, %v1943_v2  ;;  %v2105_v5 = vrot.slane %v2053_v51, 1  ;;  %v2107_v26 = vrot.slane %v2054_v50, 1  ;;  %v2193_v36 = vmul.f32 %v5151_v53, %v2176_v18 }
 0x199   : > { %v2195_v41 = vmul.f32 %v5151_v53, %v2035_v30  ;;  %v5330_v38 = vunpack.c.l.bf16 %v4336_v24  ;;  %4452 = vmatprep.subr.bf16.mxu0 %v4568_v25  ;;  %v2246_v54 = vrot.slane %v2194_v35, 2  ;;  %v5334_v29 = vunpack.c.h.bf16 %v4336_v24 }
 0x19a   : > { %v2106_v31 = vsel %vm1739_vm11, %v2104_v37, %v2105_v5  ;;  %v2388_v39 = vunpack.c.l.bf16 %v2380_v33  ;;  %v2108_v40 = vsel %vm1739_vm11, %v2105_v5, %v2107_v26  ;;  %v2245_v42 = vrot.slane %v2193_v36, 2 }
 0x19b   : > { %v2154_v49 = vadd.f32 %v2106_v31, %v2013_v21  ;;  %v2248_v45 = vrot.slane %v2195_v41, 2  ;;  %v2155_v28 = vadd.f32 %v2108_v40, %v2014_v34  ;;  %v2350_v56 = vmul.f32 %v5330_v38, %v5171_v17  ;;  %v2994_v21 = vld [vmem:[#allocation2 + $0x6c] sm:$0xe] }
 0x19c   : > { %v2351_v55 = vmul.f32 %v5334_v29, %v5171_v17  ;;  %v2405_v43 = vmul.f32 %v5330_v38, %v5183_v22  ;;  %v2247_v48 = vsel %vm1881_vm12, %v2245_v42, %v2246_v54  ;;  %v2406_v0 = vmul.f32 %v5334_v29, %v5183_v22 }
 0x19d   : > { %v2249_v52 = vsel %vm1881_vm12, %v2246_v54, %v2248_v45  ;;  %v2407_v7 = vmul.f32 %v5183_v22, %v2388_v39  ;;  %v2295_v57 = vadd.f32 %v2247_v48, %v2154_v49  ;;  %v2529_v62 = vunpack.c.l.bf16 %v2521_v47 }
 0x19e   : > { %v2296_v60 = vadd.f32 %v2249_v52, %v2155_v28  ;;  %v2457_v32 = vrot.slane %v2405_v43, 1  ;;  %v2458_v16 = vrot.slane %v2406_v0, 1  ;;  %v2547_v44 = vmul.f32 %v5334_v29, %v5192_v6 }
 0x19f   : > { %v2460_v63 = vrot.slane %v2407_v7, 1  ;;  %v2548_v4 = vmul.f32 %v5192_v6, %v2388_v39  ;;  %v2366_v14 = vadd.f32 %v2350_v56, %v2295_v57  ;;  %v2546_v15 = vmul.f32 %v5192_v6, %v2529_v62  ;;  %v3205_v56 = vld [vmem:[#allocation2 + $0x80] sm:$0x1]  ;;  %v3346_v57 = vld [vmem:[#allocation2 + $0x78] sm:$0xe] }
 0x1a0   : > { %v2367_v1 = vadd.f32 %v2351_v55, %v2296_v60  ;;  %v2801_v19 = vunpack.c.l.bf16 %v2785_v10  ;;  %v2459_v11 = vsel %vm1739_vm11, %v2457_v32, %v2458_v16  ;;  %v2599_v2 = vrot.slane %v2547_v44, 2 }
 0x1a1   : > { %v2461_v30 = vsel %vm1739_vm11, %v2458_v16, %v2460_v63  ;;  %v2601_v20 = vrot.slane %v2548_v4, 2  ;;  %v2507_v3 = vadd.f32 %v2459_v11, %v2366_v14  ;;  %v2598_v24 = vrot.slane %v2546_v15, 2 }
 0x1a2   : > { %v2508_v51 = vadd.f32 %v2461_v30, %v2367_v1  ;;  %v2802_v27 = vunpack.c.h.bf16 %v2785_v10  ;;  %v2822_v18 = vmul.f32 %v5066_v61, %v2801_v19  ;;  %v2861_v33 = vunpack.c.l.bf16 %v2853_v58  ;;  %v3489_v58 = vld [vmem:[#allocation2 + $0x84] sm:$0xff]  }
 0x1a3   : > { %v2602_v50 = vsel %vm1881_vm12, %v2599_v2, %v2601_v20  ;;  %v2876_v34 = vmul.f32 %v5090_v13, %v2801_v19  ;;  %v2600_v37 = vsel %vm1881_vm12, %v2598_v24, %v2599_v2  ;;  %v3002_v54 = vunpack.c.l.bf16 %v2994_v21  ;;  %v3557_v21 = vld [vmem:[#allocation2 + $0x8c] sm:$0x1] }
 0x1a4   : > { %v2649_v5 = vadd.f32 %v2602_v50, %v2508_v51  ;;  %v2823_v35 = vmul.f32 %v5066_v61, %v2802_v27  ;;  %v2877_v26 = vmul.f32 %v5090_v13, %v2802_v27  ;;  %v2648_v36 = vadd.f32 %v2600_v37, %v2507_v3 }
 0x1a5   : > { %v2878_v41 = vmul.f32 %v5090_v13, %v2861_v33  ;;  %v2926_v31 = vrot.slane %v2876_v34, 1  ;;  %v3018_v49 = vmul.f32 %v5102_v12, %v2802_v27  ;;  %v3019_v42 = vmul.f32 %v5102_v12, %v2861_v33 }
 0x1a6   : > { %v2671_v39 = vadd.f32 %v5208_v59, %v2649_v5  ;;  %v2927_v40 = vrot.slane %v2877_v26, 1  ;;  %v2670_v45 = vadd.f32 %v5208_v59, %v2648_v36  ;;  %v3017_v28 = vmul.f32 %v5102_v12, %v3002_v54  ;;  %v3698_v36 = vld [vmem:[#allocation2 + $0x84] sm:$0xe] }
 0x1a7   : > { %v2929_v47 = vrot.slane %v2878_v41, 1  ;;  %v3174_v61 = vmul.f32 %v5277_v23, %v5135_v8  ;;  %v3068_v43 = vrot.slane %v3018_v49, 2  ;;  %v3070_v48 = vrot.slane %v3019_v42, 2 }
 0x1a8   : > { %v2687_v55 = vmax.f32 %v2671_v39, 0.0  ;;  %v2928_v13 = vsel %vm1739_vm11, %v2926_v31, %v2927_v40  ;;  %v2686_v52 = vmax.f32 %v2670_v45, 0.0  ;;  %v3067_v10 = vrot.slane %v3017_v28, 2 }
 0x1a9   : > { %v2930_v0 = vsel %vm1739_vm11, %v2927_v40, %v2929_v47  ;;  %v2979_v7 = vadd.f32 %v2928_v13, %v2822_v18  ;;  %v3071_v32 = vsel %vm1881_vm12, %v3068_v43, %v3070_v48  ;;  %v3175_v12 = vmul.f32 %v5279_v46, %v5135_v8 }
 0x1aa   : > { %v2980_v60 = vadd.f32 %v2930_v0, %v2823_v35  ;;  %v3213_v62 = vunpack.c.l.bf16 %v3205_v56  ;;  %v2700_v16 = vpack.c.bf16 %v2687_v55, %v2686_v52  ;;  %v3069_v63 = vsel %vm1881_vm12, %v3067_v10, %v3068_v43  ;;  %v1607_v55 = vld [vmem:[#allocation2 + $0x24] sm:$0xff]  }
 0x1ab   : > { %v3228_v44 = vmul.f32 %v5277_v23, %v5140_v9  ;;  %v3229_v4 = vmul.f32 %v5279_v46, %v5140_v9  ;;  %v3120_v14 = vadd.f32 %v3069_v63, %v2979_v7  ;;  %v3354_v19 = vunpack.c.l.bf16 %v3346_v57  ;;  %v1815_v63 = vld [vmem:[#allocation2 + $0x24] sm:$0xe] }
 0x1ac   : > { %v3121_v1 = vadd.f32 %v3071_v32, %v2980_v60  ;;  %v3230_v15 = vmul.f32 %v5140_v9, %v3213_v62  ;;  %v2722_v11 = vsel %vm2711_vm13, %v2700_v16, 0  ;;  %v3370_v20 = vmul.f32 %v5279_v46, %v5151_v53  ;;  %v1673_v60 = vld [vmem:[#allocation2 + $0x2c] sm:$0x1] }
 0x1ad   : > { %v3278_v30 = vrot.slane %v3228_v44, 1  ;;  %v3279_v2 = vrot.slane %v3229_v4, 1  ;;  %4435 = vmatpush3.bf16.xpose.msra.mxu1 %v2722_v11  ;;  %v3190_v3 = vadd.f32 %v3174_v61, %v3120_v14  ;;  %v3369_v27 = vmul.f32 %v5151_v53, %v3354_v19 }
 0x1ae   : > { %v3191_v51 = vadd.f32 %v3175_v12, %v3121_v1  ;;  %v3281_v24 = vrot.slane %v3230_v15, 1  ;;  %4436 = vmatprep.subr.bf16.mxu1 %v4568_v25  ;;  %v3371_v18 = vmul.f32 %v5151_v53, %v3213_v62  ;;  %v3420_v33 = vrot.slane %v3370_v20, 2 }
 0x1af   : > { %v3280_v50 = vsel %vm1739_vm11, %v3278_v30, %v3279_v2  ;;  %v3505_v34 = vunpack.c.l.bf16 %v3489_v58  ;;  %v3419_v35 = vrot.slane %v3369_v27, 2  ;;  %v3506_v26 = vunpack.c.h.bf16 %v3489_v58  ;;  %v5402_v58 = vld [vmem:[%s6074_s4] ss:$0 sm:$0xff] }
 0x1b0   : > { %v3282_v37 = vsel %vm1739_vm11, %v3279_v2, %v3281_v24  ;;  %v3331_v5 = vadd.f32 %v3280_v50, %v3190_v3  ;;  %v3422_v31 = vrot.slane %v3371_v18, 2  ;;  %v3565_v39 = vunpack.c.l.bf16 %v3557_v21  ;;  %v5410_v3 = vld [vmem:[%s6074_s4 + $0x1] ss:$0 sm:$0xff] }
 0x1b1   : > { %v3332_v41 = vadd.f32 %v3282_v37, %v3191_v51  ;;  %v3526_v54 = vmul.f32 %v5171_v17, %v3505_v34  ;;  %v3421_v40 = vsel %vm1881_vm12, %v3419_v35, %v3420_v33  ;;  %v3527_v49 = vmul.f32 %v5171_v17, %v3506_v26  ;;  %v5419_v37 = vld [vmem:[%s6074_s4 + $0x2] ss:$0 sm:$0xff] }
 0x1b2   : > { %v3580_v42 = vmul.f32 %v5183_v22, %v3505_v34  ;;  %v3581_v45 = vmul.f32 %v5183_v22, %v3506_v26  ;;  %v3423_v47 = vsel %vm1881_vm12, %v3420_v33, %v3422_v31  ;;  %v3472_v28 = vadd.f32 %v3421_v40, %v3331_v5 }
 0x1b3   : > { %v3582_v61 = vmul.f32 %v5183_v22, %v3565_v39  ;;  %v3706_v56 = vunpack.c.l.bf16 %v3698_v36  ;;  %v3473_v13 = vadd.f32 %v3423_v47, %v3332_v41  ;;  %v3722_v52 = vmul.f32 %v5192_v6, %v3506_v26 }
 0x1b4   : > { %v3630_v43 = vrot.slane %v3580_v42, 1  ;;  %v3631_v48 = vrot.slane %v3581_v45, 1  ;;  %v3542_v0 = vadd.f32 %v3526_v54, %v3472_v28  ;;  %v3723_v57 = vmul.f32 %v5192_v6, %v3565_v39  ;;  %v2028_v42 = vld [vmem:[#allocation2 + $0x38] sm:$0x1] }
 0x1b5   : > { %v3633_v7 = vrot.slane %v3582_v61, 1  ;;  %v3721_v10 = vmul.f32 %v5192_v6, %v3706_v56  ;;  %v3543_v32 = vadd.f32 %v3527_v49, %v3473_v13  ;;  %v3772_v62 = vrot.slane %v3722_v52, 2  ;;  %v2169_v56 = vld [vmem:[#allocation2 + $0x30] sm:$0xe] }
 0x1b6   : > { %v3632_v12 = vsel %vm1739_vm11, %v3630_v43, %v3631_v48  ;;  %v1623_v16 = vunpack.c.l.bf16 %v1607_v55  ;;  %v3774_v1 = vrot.slane %v3723_v57, 2  ;;  %v1624_v19 = vunpack.c.h.bf16 %v1607_v55 }
 0x1b7   : > { %v3634_v44 = vsel %vm1739_vm11, %v3631_v48, %v3633_v7  ;;  %v3683_v4 = vadd.f32 %v3632_v12, %v3542_v0  ;;  %v3771_v14 = vrot.slane %v3721_v10, 2  ;;  %v1681_v30 = vunpack.c.l.bf16 %v1673_v60 }
 0x1b8   : > { %v3684_v15 = vadd.f32 %v3634_v44, %v3543_v32  ;;  %v1644_v11 = vmul.f32 %v5402_v58, %v1623_v16  ;;  %v3775_v20 = vsel %vm1881_vm12, %v3772_v62, %v3774_v1  ;;  %v1700_v51 = vmul.f32 %v5410_v3, %v1623_v16  ;;  %v2314_v44 = vld [vmem:[#allocation2 + $0x3c] sm:$0xff]  }
 0x1b9   : > { %v3773_v2 = vsel %vm1881_vm12, %v3771_v14, %v3772_v62  ;;  %v1823_v24 = vunpack.c.l.bf16 %v1815_v63  ;;  %v1645_v50 = vmul.f32 %v5402_v58, %v1624_v19  ;;  %v1701_v18 = vmul.f32 %v5410_v3, %v1624_v19 }
 0x1ba   : > { %v3824_v27 = vadd.f32 %v3773_v2, %v3683_v4  ;;  %v3825_v21 = vadd.f32 %v3775_v20, %v3684_v15  ;;  %v1702_v33 = vmul.f32 %v5410_v3, %v1681_v30  ;;  %v1755_v34 = vrot.slane %v1700_v51, 1 }
 0x1bb   : > { %v1842_v5 = vmul.f32 %v5419_v37, %v1823_v24  ;;  %v1843_v35 = vmul.f32 %v5419_v37, %v1624_v19  ;;  %v1756_v41 = vrot.slane %v1701_v18, 1  ;;  %v1844_v31 = vmul.f32 %v5419_v37, %v1681_v30  ;;  %v2381_v19 = vld [vmem:[#allocation2 + $0x44] sm:$0x1] }
 0x1bc   : > { %v3840_v26 = vadd.f32 %v5208_v59, %v3824_v27  ;;  %v3841_v36 = vadd.f32 %v5208_v59, %v3825_v21  ;;  %v1758_v54 = vrot.slane %v1702_v33, 1  ;;  %v1999_v49 = vmul.f32 %v5330_v38, %v5135_v8 }
 0x1bd   : > { %v1897_v39 = vrot.slane %v1842_v5, 2  ;;  %v1898_v40 = vrot.slane %v1843_v35, 2  ;;  %v1757_v28 = vsel %vm1739_vm11, %v1755_v34, %v1756_v41  ;;  %v1900_v61 = vrot.slane %v1844_v31, 2  ;;  %v2522_v34 = vld [vmem:[#allocation2 + $0x3c] sm:$0xe] }
 0x1be   : > { %v3856_v45 = vmax.f32 %v3840_v26, 0.0  ;;  %v3857_v47 = vmax.f32 %v3841_v36, 0.0  ;;  %v1759_v55 = vsel %vm1739_vm11, %v1756_v41, %v1758_v54  ;;  %v1802_v13 = vadd.f32 %v1757_v28, %v1644_v11 }
 0x1bf   : > { %v1899_v43 = vsel %vm1881_vm12, %v1897_v39, %v1898_v40  ;;  %v2000_v48 = vmul.f32 %v5334_v29, %v5135_v8  ;;  %v1803_v0 = vadd.f32 %v1759_v55, %v1645_v50  ;;  %v1901_v7 = vsel %vm1881_vm12, %v1898_v40, %v1900_v61 }
 0x1c0   : > { %v3871_v52 = vpack.c.bf16 %v3857_v47, %v3856_v45  ;;  %v2036_v10 = vunpack.c.l.bf16 %v2028_v42  ;;  %v1944_v57 = vadd.f32 %v1899_v43, %v1802_v13  ;;  %v2055_v60 = vmul.f32 %v5330_v38, %v5140_v9 }
 0x1c1   : > { %v2056_v32 = vmul.f32 %v5334_v29, %v5140_v9  ;;  %v2177_v12 = vunpack.c.l.bf16 %v2169_v56  ;;  %v1945_v16 = vadd.f32 %v1901_v7, %v1803_v0  ;;  %v2197_v8 = vmul.f32 %v5334_v29, %v5151_v53  ;;  %v2854_v56 = vld [vmem:[#allocation2 + $0x80] sm:$0x1]  ;;  %v2995_v7 = vld [vmem:[#allocation2 + $0x78] sm:$0xe] }
 0x1c2   : > { %v3882_v62 = vsel %vm2711_vm13, %v3871_v52, 0  ;;  %v2057_v63 = vmul.f32 %v5140_v9, %v2036_v10  ;;  %v2015_v4 = vadd.f32 %v1999_v49, %v1944_v57  ;;  %v2109_v14 = vrot.slane %v2055_v60, 1 }
 0x1c3   : > { %4453 = vmatpush3.bf16.xpose.msra.mxu0 %v3882_v62  ;;  %v2110_v1 = vrot.slane %v2056_v32, 1  ;;  %v2196_v15 = vmul.f32 %v5151_v53, %v2177_v12  ;;  %v2016_v11 = vadd.f32 %v2000_v48, %v1945_v16  ;;  %v2198_v2 = vmul.f32 %v5151_v53, %v2036_v10 }
 0x1c4   : > { %v2112_v30 = vrot.slane %v2057_v63, 1  ;;  %v2251_v20 = vrot.slane %v2197_v8, 2  ;;  %4454 = vmatprep.subr.bf16.mxu0 %v4568_v25  ;;  %v2330_v24 = vunpack.c.l.bf16 %v2314_v44  ;;  %v2331_v27 = vunpack.c.h.bf16 %v2314_v44 }
 0x1c5   : > { %v2111_v9 = vsel %vm1739_vm11, %v2109_v14, %v2110_v1  ;;  %v2250_v51 = vrot.slane %v2196_v15, 2  ;;  %v2253_v18 = vrot.slane %v2198_v2, 2  ;;  %v2389_v33 = vunpack.c.l.bf16 %v2381_v19  ;;  %v3139_v14 = vld [vmem:[#allocation2 + $0x84] sm:$0xff]  }
 0x1c6   : > { %v2113_v21 = vsel %vm1739_vm11, %v2110_v1, %v2112_v30  ;;  %v2156_v50 = vadd.f32 %v2111_v9, %v2015_v4  ;;  %v2352_v26 = vmul.f32 %v5171_v17, %v2330_v24  ;;  %v2353_v53 = vmul.f32 %v5171_v17, %v2331_v27 }
 0x1c7   : > { %v2157_v5 = vadd.f32 %v2113_v21, %v2016_v11  ;;  %v2252_v35 = vsel %vm1881_vm12, %v2250_v51, %v2251_v20  ;;  %v2254_v36 = vsel %vm1881_vm12, %v2251_v20, %v2253_v18  ;;  %v2408_v31 = vmul.f32 %v5183_v22, %v2330_v24  ;;  %v3206_v21 = vld [vmem:[#allocation2 + $0x8c] sm:$0x1] }
 0x1c8   : > { %v2297_v41 = vadd.f32 %v2252_v35, %v2156_v50  ;;  %v2409_v54 = vmul.f32 %v5183_v22, %v2331_v27  ;;  %v2410_v40 = vmul.f32 %v5183_v22, %v2389_v33  ;;  %v2530_v49 = vunpack.c.l.bf16 %v2522_v34 }
 0x1c9   : > { %v2298_v39 = vadd.f32 %v2254_v36, %v2157_v5  ;;  %v2550_v42 = vmul.f32 %v5192_v6, %v2331_v27  ;;  %v2462_v47 = vrot.slane %v2408_v31, 1  ;;  %v2551_v61 = vmul.f32 %v5192_v6, %v2389_v33 }
 0x1ca   : > { %v2368_v45 = vadd.f32 %v2352_v26, %v2297_v41  ;;  %v2463_v28 = vrot.slane %v2409_v54, 1  ;;  %v2465_v55 = vrot.slane %v2410_v40, 1  ;;  %v2549_v13 = vmul.f32 %v5192_v6, %v2530_v49 }
 0x1cb   : > { %v2369_v17 = vadd.f32 %v2353_v53, %v2298_v39  ;;  %v2604_v43 = vrot.slane %v2550_v42, 2  ;;  %v2606_v52 = vrot.slane %v2551_v61, 2  ;;  %v2824_v22 = vmul.f32 %v5402_v58, %v5277_v23  ;;  %v3347_v53 = vld [vmem:[#allocation2 + $0x84] sm:$0xe] }
 0x1cc   : > { %v2464_v48 = vsel %vm1739_vm11, %v2462_v47, %v2463_v28  ;;  %v2825_v0 = vmul.f32 %v5402_v58, %v5279_v46  ;;  %v2466_v10 = vsel %vm1739_vm11, %v2463_v28, %v2465_v55  ;;  %v2603_v60 = vrot.slane %v2549_v13, 2 }
 0x1cd   : > { %v2509_v57 = vadd.f32 %v2464_v48, %v2368_v45  ;;  %v2862_v32 = vunpack.c.l.bf16 %v2854_v56  ;;  %v2510_v12 = vadd.f32 %v2466_v10, %v2369_v17  ;;  %v2607_v62 = vsel %vm1881_vm12, %v2604_v43, %v2606_v52  ;;  %v5490_v45 = vld [vmem:[%s6074_s4 + $0x5] ss:$0 sm:$0xff]  ;;  %v4346_v17 = vld [vmem:[#allocation2 + $0x90] sm:$0xff]   ;;  %v5499_v48 = vld [vmem:[%s6074_s4 + $0x6] ss:$0 sm:$0xff] }
 0x1ce   : > { %v2879_v6 = vmul.f32 %v5410_v3, %v5277_v23  ;;  %v2880_v16 = vmul.f32 %v5410_v3, %v5279_v46  ;;  %v2605_v63 = vsel %vm1881_vm12, %v2603_v60, %v2604_v43  ;;  %v3003_v44 = vunpack.c.l.bf16 %v2995_v7 }
 0x1cf   : > { %v2881_v8 = vmul.f32 %v5410_v3, %v2862_v32  ;;  %v3021_v4 = vmul.f32 %v5419_v37, %v5279_v46  ;;  %v2650_v1 = vadd.f32 %v2605_v63, %v2509_v57  ;;  %v2651_v15 = vadd.f32 %v2607_v62, %v2510_v12 }
 0x1d0   : > { %v2931_v19 = vrot.slane %v2879_v6, 1  ;;  %v2932_v11 = vrot.slane %v2880_v16, 1  ;;  %v3020_v2 = vmul.f32 %v5419_v37, %v3003_v44  ;;  %v3022_v23 = vmul.f32 %v5419_v37, %v2862_v32  ;;  %v3699_v44 = vld [vmem:[#allocation2 + $0x90] sm:$0xe] }
 0x1d1   : > { %v2934_v30 = vrot.slane %v2881_v8, 1  ;;  %v3073_v20 = vrot.slane %v3021_v4, 2  ;;  %v2672_v9 = vadd.f32 %v5208_v59, %v2650_v1  ;;  %v2673_v51 = vadd.f32 %v5208_v59, %v2651_v15  ;;  %v5483_v59 = vld [vmem:[%s6074_s4 + $0x4] ss:$0 sm:$0xff]  ;;  %v5514_v15 = vld [vmem:[%s6074_s4 + $0x8] ss:$0 sm:$0xff] }
 0x1d2   : > { %v2933_v24 = vsel %vm1739_vm11, %v2931_v19, %v2932_v11  ;;  %v3155_v27 = vunpack.c.l.bf16 %v3139_v14  ;;  %v3072_v18 = vrot.slane %v3020_v2, 2  ;;  %v3075_v33 = vrot.slane %v3022_v23, 2  ;;  %v5524_v2 = vld [vmem:[%s6074_s4 + $0x9] ss:$0 sm:$0xff] }
 0x1d3   : > { %v2935_v46 = vsel %vm1739_vm11, %v2932_v11, %v2934_v30  ;;  %v2981_v50 = vadd.f32 %v2933_v24, %v2824_v22  ;;  %v2688_v34 = vmax.f32 %v2672_v9, 0.0  ;;  %v2689_v5 = vmax.f32 %v2673_v51, 0.0  ;;  %v3558_v22 = vld [vmem:[#allocation2 + $0x98] sm:$0x1] }
 0x1d4   : > { %v2982_v35 = vadd.f32 %v2935_v46, %v2825_v0  ;;  %v3156_v26 = vunpack.c.h.bf16 %v3139_v14  ;;  %v3074_v36 = vsel %vm1881_vm12, %v3072_v18, %v3073_v20  ;;  %v3076_v41 = vsel %vm1881_vm12, %v3073_v20, %v3075_v33  ;;  %v5535_v18 = vld [vmem:[%s6074_s4 + $0xa] ss:$0 sm:$0xff] }
 0x1d5   : > { %v3176_v31 = vmul.f32 %v5483_v59, %v3155_v27  ;;  %v3214_v54 = vunpack.c.l.bf16 %v3206_v21  ;;  %v2701_v39 = vpack.c.bf16 %v2689_v5, %v2688_v34  ;;  %v3122_v40 = vadd.f32 %v3074_v36, %v2981_v50 }
 0x1d6   : > { %v3123_v49 = vadd.f32 %v3076_v41, %v2982_v35  ;;  %v3177_v42 = vmul.f32 %v5483_v59, %v3156_v26  ;;  %v3231_v47 = vmul.f32 %v5490_v45, %v3155_v27  ;;  %v3232_v28 = vmul.f32 %v5490_v45, %v3156_v26 }
 0x1d7   : > { %v3233_v61 = vmul.f32 %v5490_v45, %v3214_v54  ;;  %v3355_v56 = vunpack.c.l.bf16 %v3347_v53  ;;  %v2725_v55 = vsel %vm2711_vm13, %v2701_v39, 0  ;;  %v3192_v13 = vadd.f32 %v3176_v31, %v3122_v40  ;;  %v1674_v53 = vld [vmem:[#allocation2 + $0x38] sm:$0x1]  ;;  %v1816_v39 = vld [vmem:[#allocation2 + $0x30] sm:$0xe] }
 0x1d8   : > { %v3193_v43 = vadd.f32 %v3177_v42, %v3123_v49  ;;  %v3373_v52 = vmul.f32 %v5499_v48, %v3156_v26  ;;  %4437 = vmatpush3.bf16.xpose.msra.mxu1 %v2725_v55  ;;  %v3283_v0 = vrot.slane %v3231_v47, 1  ;;  %v3284_v7 = vrot.slane %v3232_v28, 1 }
 0x1d9   : > { %v3286_v10 = vrot.slane %v3233_v61, 1  ;;  %v3372_v57 = vmul.f32 %v5499_v48, %v3355_v56  ;;  %4438 = vmatprep.subr.bf16.mxu1 %v4568_v25  ;;  %v3374_v60 = vmul.f32 %v5499_v48, %v3214_v54  ;;  %v5505_v12 = vunpack.c.l.bf16 %v4346_v17 }
 0x1da   : > { %v3425_v32 = vrot.slane %v3373_v52, 2  ;;  %v5507_v62 = vunpack.c.h.bf16 %v4346_v17  ;;  %v3285_v6 = vsel %vm1739_vm11, %v3283_v0, %v3284_v7  ;;  %v3566_v8 = vunpack.c.l.bf16 %v3558_v22  ;;  %v1963_v22 = vld [vmem:[#allocation2 + $0x3c] sm:$0xff]  }
 0x1db   : > { %v3287_v16 = vsel %vm1739_vm11, %v3284_v7, %v3286_v10  ;;  %v3424_v63 = vrot.slane %v3372_v57, 2  ;;  %v3333_v4 = vadd.f32 %v3285_v6, %v3192_v13  ;;  %v3427_v1 = vrot.slane %v3374_v60, 2 }
 0x1dc   : > { %v3334_v14 = vadd.f32 %v3287_v16, %v3193_v43  ;;  %v3528_v19 = vmul.f32 %v5514_v15, %v5505_v12  ;;  %v3529_v30 = vmul.f32 %v5514_v15, %v5507_v62  ;;  %v3583_v23 = vmul.f32 %v5524_v2, %v5505_v12  ;;  %v5561_v16 = vld [vmem:[%s6075_s5] ss:$0 sm:$0xff] }
 0x1dd   : > { %v3426_v11 = vsel %vm1881_vm12, %v3424_v63, %v3425_v32  ;;  %v3584_v20 = vmul.f32 %v5524_v2, %v5507_v62  ;;  %v3428_v9 = vsel %vm1881_vm12, %v3425_v32, %v3427_v1  ;;  %v3585_v24 = vmul.f32 %v5524_v2, %v3566_v8 }
 0x1de   : > { %v3474_v51 = vadd.f32 %v3426_v11, %v3333_v4  ;;  %v3707_v27 = vunpack.c.l.bf16 %v3699_v44  ;;  %v3475_v21 = vadd.f32 %v3428_v9, %v3334_v14  ;;  %v3635_v46 = vrot.slane %v3583_v23, 1 }
 0x1df   : > { %v3636_v50 = vrot.slane %v3584_v20, 1  ;;  %v3725_v33 = vmul.f32 %v5535_v18, %v5507_v62  ;;  %v3638_v5 = vrot.slane %v3585_v24, 1  ;;  %v3726_v26 = vmul.f32 %v5535_v18, %v3566_v8 }
 0x1e0   : > { %v3544_v34 = vadd.f32 %v3528_v19, %v3474_v51  ;;  %v3724_v35 = vmul.f32 %v5535_v18, %v3707_v27  ;;  %v3545_v36 = vadd.f32 %v3529_v30, %v3475_v21  ;;  %v1646_v54 = vmul.f32 %v5402_v58, %v5330_v38  ;;  %v2029_v30 = vld [vmem:[#allocation2 + $0x44] sm:$0x1] }
 0x1e1   : > { %v3637_v41 = vsel %vm1739_vm11, %v3635_v46, %v3636_v50  ;;  %v3777_v31 = vrot.slane %v3725_v33, 2  ;;  %v3639_v40 = vsel %vm1739_vm11, %v3636_v50, %v3638_v5  ;;  %v3779_v47 = vrot.slane %v3726_v26, 2  ;;  %v2170_v46 = vld [vmem:[#allocation2 + $0x3c] sm:$0xe] }
 0x1e2   : > { %v3685_v49 = vadd.f32 %v3637_v41, %v3544_v34  ;;  %v3776_v42 = vrot.slane %v3724_v35, 2  ;;  %v3686_v28 = vadd.f32 %v3639_v40, %v3545_v36  ;;  %v1647_v61 = vmul.f32 %v5402_v58, %v5334_v29  ;;  %v4337_v41 = vld [vmem:[#allocation2 + $0x48] sm:$0xff]  }
 0x1e3   : > { %v1682_v56 = vunpack.c.l.bf16 %v1674_v53  ;;  %v1703_v17 = vmul.f32 %v5410_v3, %v5330_v38  ;;  %v3780_v13 = vsel %vm1881_vm12, %v3777_v31, %v3779_v47  ;;  %v1704_v43 = vmul.f32 %v5410_v3, %v5334_v29 }
 0x1e4   : > { %v3778_v55 = vsel %vm1881_vm12, %v3776_v42, %v3777_v31  ;;  %v1824_v52 = vunpack.c.l.bf16 %v1816_v39  ;;  %v3827_v7 = vadd.f32 %v3780_v13, %v3686_v28  ;;  %v1846_v38 = vmul.f32 %v5419_v37, %v5334_v29 }
 0x1e5   : > { %v3826_v0 = vadd.f32 %v3778_v55, %v3685_v49  ;;  %v1705_v10 = vmul.f32 %v5410_v3, %v1682_v56  ;;  %v1760_v57 = vrot.slane %v1703_v17, 1  ;;  %v1761_v60 = vrot.slane %v1704_v43, 1  ;;  %v2382_v49 = vld [vmem:[#allocation2 + $0x50] sm:$0x1] }
 0x1e6   : > { %v1845_v32 = vmul.f32 %v5419_v37, %v1824_v52  ;;  %v1847_v6 = vmul.f32 %v5419_v37, %v1682_v56  ;;  %v3843_v8 = vadd.f32 %v5561_v16, %v3827_v7  ;;  %v1979_v4 = vunpack.c.l.bf16 %v1963_v22 }
 0x1e7   : > { %v3842_v63 = vadd.f32 %v5561_v16, %v3826_v0  ;;  %v1763_v44 = vrot.slane %v1705_v10, 1  ;;  %v1762_v14 = vsel %vm1739_vm11, %v1760_v57, %v1761_v60  ;;  %v1903_v19 = vrot.slane %v1846_v38, 2 }
 0x1e8   : > { %v1902_v1 = vrot.slane %v1845_v32, 2  ;;  %v1905_v11 = vrot.slane %v1847_v6, 2  ;;  %v3859_v23 = vmax.f32 %v3843_v8, 0.0  ;;  %v1804_v9 = vadd.f32 %v1762_v14, %v1646_v54  ;;  %v2523_v32 = vld [vmem:[#allocation2 + $0x48] sm:$0xe] }
 0x1e9   : > { %v3858_v29 = vmax.f32 %v3842_v63, 0.0  ;;  %v1764_v20 = vsel %vm1739_vm11, %v1761_v60, %v1763_v44  ;;  %v1980_v21 = vunpack.c.h.bf16 %v1963_v22  ;;  %v2001_v34 = vmul.f32 %v5483_v59, %v1979_v4 }
 0x1ea   : > { %v1805_v51 = vadd.f32 %v1764_v20, %v1647_v61  ;;  %v1904_v24 = vsel %vm1881_vm12, %v1902_v1, %v1903_v19  ;;  %v1906_v27 = vsel %vm1881_vm12, %v1903_v19, %v1905_v11  ;;  %v2037_v5 = vunpack.c.l.bf16 %v2029_v30  ;;  %v2789_v19 = vld [vmem:[#allocation2 + $0x84] sm:$0xff]  }
 0x1eb   : > { %v3872_v50 = vpack.c.bf16 %v3859_v23, %v3858_v29  ;;  %v1946_v33 = vadd.f32 %v1904_v24, %v1804_v9  ;;  %v2002_v26 = vmul.f32 %v5483_v59, %v1980_v21  ;;  %v2058_v53 = vmul.f32 %v5490_v45, %v1979_v4 }
 0x1ec   : > { %v1947_v35 = vadd.f32 %v1906_v27, %v1805_v51  ;;  %v2059_v36 = vmul.f32 %v5490_v45, %v1980_v21  ;;  %v2060_v39 = vmul.f32 %v5490_v45, %v2037_v5  ;;  %v2178_v40 = vunpack.c.l.bf16 %v2170_v46 }
 0x1ed   : > { %v3885_v31 = vsel %vm2711_vm13, %v3872_v50, 0  ;;  %v2017_v54 = vadd.f32 %v2001_v34, %v1946_v33  ;;  %v2114_v47 = vrot.slane %v2058_v53, 1  ;;  %v2200_v61 = vmul.f32 %v5499_v48, %v1980_v21  ;;  %v2855_v33 = vld [vmem:[#allocation2 + $0x8c] sm:$0x1] }
 0x1ee   : > { %4455 = vmatpush3.bf16.xpose.msra.mxu0 %v3885_v31  ;;  %v2018_v42 = vadd.f32 %v2002_v26, %v1947_v35  ;;  %v2115_v28 = vrot.slane %v2059_v36, 1  ;;  %v2117_v56 = vrot.slane %v2060_v39, 1  ;;  %v2199_v17 = vmul.f32 %v5499_v48, %v2178_v40 }
 0x1ef   : > { %v2201_v55 = vmul.f32 %v5499_v48, %v2037_v5  ;;  %v5578_v13 = vunpack.c.l.bf16 %v4337_v41  ;;  %4456 = vmatprep.subr.bf16.mxu0 %v4568_v25  ;;  %v2256_v52 = vrot.slane %v2200_v61, 2  ;;  %v5582_v22 = vunpack.c.h.bf16 %v4337_v41 }
 0x1f0   : > { %v2116_v43 = vsel %vm1739_vm11, %v2114_v47, %v2115_v28  ;;  %v2390_v0 = vunpack.c.l.bf16 %v2382_v49  ;;  %v2118_v7 = vsel %vm1739_vm11, %v2115_v28, %v2117_v56  ;;  %v2255_v57 = vrot.slane %v2199_v17, 2 }
 0x1f1   : > { %v2158_v10 = vadd.f32 %v2116_v43, %v2017_v54  ;;  %v2258_v60 = vrot.slane %v2201_v55, 2  ;;  %v2159_v38 = vadd.f32 %v2118_v7, %v2018_v42  ;;  %v2354_v6 = vmul.f32 %v5514_v15, %v5578_v13  ;;  %v2996_v54 = vld [vmem:[#allocation2 + $0x84] sm:$0xe] }
 0x1f2   : > { %v2355_v63 = vmul.f32 %v5514_v15, %v5582_v22  ;;  %v2411_v8 = vmul.f32 %v5524_v2, %v5578_v13  ;;  %v2257_v44 = vsel %vm1881_vm12, %v2255_v57, %v2256_v52  ;;  %v2412_v14 = vmul.f32 %v5524_v2, %v5582_v22 }
 0x1f3   : > { %v2259_v4 = vsel %vm1881_vm12, %v2256_v52, %v2258_v60  ;;  %v2413_v1 = vmul.f32 %v5524_v2, %v2390_v0  ;;  %v2299_v11 = vadd.f32 %v2257_v44, %v2158_v10  ;;  %v2531_v23 = vunpack.c.l.bf16 %v2523_v32 }
 0x1f4   : > { %v2300_v30 = vadd.f32 %v2259_v4, %v2159_v38  ;;  %v2467_v29 = vrot.slane %v2411_v8, 1  ;;  %v2468_v20 = vrot.slane %v2412_v14, 1  ;;  %v2553_v51 = vmul.f32 %v5535_v18, %v5582_v22 }
 0x1f5   : > { %v2470_v9 = vrot.slane %v2413_v1, 1  ;;  %v2554_v24 = vmul.f32 %v5535_v18, %v2390_v0  ;;  %v2370_v27 = vadd.f32 %v2354_v6, %v2299_v11  ;;  %v2552_v46 = vmul.f32 %v5535_v18, %v2531_v23 }
 0x1f6   : > { %v2371_v21 = vadd.f32 %v2355_v63, %v2300_v30  ;;  %v2805_v50 = vunpack.c.l.bf16 %v2789_v19  ;;  %v2469_v34 = vsel %vm1739_vm11, %v2467_v29, %v2468_v20  ;;  %v2609_v35 = vrot.slane %v2553_v51, 2  ;;  %v3207_v63 = vld [vmem:[#allocation2 + $0x98] sm:$0x1]  ;;  %v3348_v29 = vld [vmem:[#allocation2 + $0x90] sm:$0xe] }
 0x1f7   : > { %v2471_v5 = vsel %vm1739_vm11, %v2468_v20, %v2470_v9  ;;  %v2611_v26 = vrot.slane %v2554_v24, 2  ;;  %v2511_v53 = vadd.f32 %v2469_v34, %v2370_v27  ;;  %v2608_v41 = vrot.slane %v2552_v46, 2 }
 0x1f8   : > { %v2512_v36 = vadd.f32 %v2471_v5, %v2371_v21  ;;  %v2806_v31 = vunpack.c.h.bf16 %v2789_v19  ;;  %v2826_v40 = vmul.f32 %v5402_v58, %v2805_v50  ;;  %v2863_v49 = vunpack.c.l.bf16 %v2855_v33 }
 0x1f9   : > { %v2612_v39 = vsel %vm1881_vm12, %v2609_v35, %v2611_v26  ;;  %v2882_v42 = vmul.f32 %v5410_v3, %v2805_v50  ;;  %v2610_v47 = vsel %vm1881_vm12, %v2608_v41, %v2609_v35  ;;  %v3004_v52 = vunpack.c.l.bf16 %v2996_v54  ;;  %v3493_v35 = vld [vmem:[#allocation2 + $0x9c] sm:$0xff]  }
 0x1fa   : > { %v2653_v28 = vadd.f32 %v2612_v39, %v2512_v36  ;;  %v2827_v61 = vmul.f32 %v5402_v58, %v2806_v31  ;;  %v2883_v56 = vmul.f32 %v5410_v3, %v2806_v31  ;;  %v2652_v17 = vadd.f32 %v2610_v47, %v2511_v53 }
 0x1fb   : > { %v2884_v55 = vmul.f32 %v5410_v3, %v2863_v49  ;;  %v2936_v43 = vrot.slane %v2882_v42, 1  ;;  %v3024_v10 = vmul.f32 %v5419_v37, %v2806_v31  ;;  %v3025_v57 = vmul.f32 %v5419_v37, %v2863_v49  ;;  %v3559_v49 = vld [vmem:[#allocation2 + $0xa4] sm:$0x1] }
 0x1fc   : > { %v2675_v0 = vadd.f32 %v5561_v16, %v2653_v28  ;;  %v2937_v7 = vrot.slane %v2883_v56, 1  ;;  %v2674_v60 = vadd.f32 %v5561_v16, %v2652_v17  ;;  %v3023_v38 = vmul.f32 %v5419_v37, %v3004_v52  ;;  %v3700_v52 = vld [vmem:[#allocation2 + $0x9c] sm:$0xe] }
 0x1fd   : > { %v2939_v32 = vrot.slane %v2884_v55, 1  ;;  %v3178_v6 = vmul.f32 %v5483_v59, %v5505_v12  ;;  %v3078_v4 = vrot.slane %v3024_v10, 2  ;;  %v3080_v14 = vrot.slane %v3025_v57, 2 }
 0x1fe   : > { %v2691_v8 = vmax.f32 %v2675_v0, 0.0  ;;  %v2938_v44 = vsel %vm1739_vm11, %v2936_v43, %v2937_v7  ;;  %v2690_v1 = vmax.f32 %v2674_v60, 0.0  ;;  %v3077_v30 = vrot.slane %v3023_v38, 2 }
 0x1ff   : > { %v2940_v19 = vsel %vm1739_vm11, %v2937_v7, %v2939_v32  ;;  %v2983_v11 = vadd.f32 %v2938_v44, %v2826_v40  ;;  %v3081_v20 = vsel %vm1881_vm12, %v3078_v4, %v3080_v14  ;;  %v3179_v9 = vmul.f32 %v5483_v59, %v5507_v62  ;;  %v1611_v14 = vld [vmem:[#allocation2 + $0x3c] sm:$0xff]  }
 0x200   : > { %v2984_v23 = vadd.f32 %v2940_v19, %v2827_v61  ;;  %v3215_v51 = vunpack.c.l.bf16 %v3207_v63  ;;  %v2702_v24 = vpack.c.bf16 %v2691_v8, %v2690_v1  ;;  %v3079_v27 = vsel %vm1881_vm12, %v3077_v30, %v3078_v4 }
 0x201   : > { %v3234_v21 = vmul.f32 %v5490_v45, %v5505_v12  ;;  %v3235_v46 = vmul.f32 %v5490_v45, %v5507_v62  ;;  %v3124_v50 = vadd.f32 %v3079_v27, %v2983_v11  ;;  %v3356_v5 = vunpack.c.l.bf16 %v3348_v29 }
 0x202   : > { %v3125_v33 = vadd.f32 %v3081_v20, %v2984_v23  ;;  %v3236_v34 = vmul.f32 %v5490_v45, %v3215_v51  ;;  %v2728_v26 = vsel %vm2711_vm13, %v2702_v24, 0  ;;  %v3376_v41 = vmul.f32 %v5499_v48, %v5507_v62 }
 0x203   : > { %v3288_v53 = vrot.slane %v3234_v21, 1  ;;  %v3289_v36 = vrot.slane %v3235_v46, 1  ;;  %4439 = vmatpush3.bf16.xpose.msra.mxu1 %v2728_v26  ;;  %v3194_v31 = vadd.f32 %v3178_v6, %v3124_v50  ;;  %v3375_v40 = vmul.f32 %v5499_v48, %v3356_v5  ;;  %v1817_v50 = vld [vmem:[#allocation2 + $0x3c] sm:$0xe] }
 0x204   : > { %v3195_v54 = vadd.f32 %v3179_v9, %v3125_v33  ;;  %v3291_v39 = vrot.slane %v3236_v34, 1  ;;  %4440 = vmatprep.subr.bf16.mxu1 %v4568_v25  ;;  %v3377_v47 = vmul.f32 %v5499_v48, %v3215_v51  ;;  %v3430_v28 = vrot.slane %v3376_v41, 2  ;;  %v1675_v51 = vld [vmem:[#allocation2 + $0x44] sm:$0x1] }
 0x205   : > { %v3290_v42 = vsel %vm1739_vm11, %v3288_v53, %v3289_v36  ;;  %v3509_v61 = vunpack.c.l.bf16 %v3493_v35  ;;  %v3429_v55 = vrot.slane %v3375_v40, 2  ;;  %v3510_v43 = vunpack.c.h.bf16 %v3493_v35 }
 0x206   : > { %v3292_v56 = vsel %vm1739_vm11, %v3289_v36, %v3291_v39  ;;  %v3335_v17 = vadd.f32 %v3290_v42, %v3194_v31  ;;  %v3432_v7 = vrot.slane %v3377_v47, 2  ;;  %v3567_v57 = vunpack.c.l.bf16 %v3559_v49 }
 0x207   : > { %v3336_v0 = vadd.f32 %v3292_v56, %v3195_v54  ;;  %v3530_v10 = vmul.f32 %v5514_v15, %v3509_v61  ;;  %v3431_v60 = vsel %vm1881_vm12, %v3429_v55, %v3430_v28  ;;  %v3531_v32 = vmul.f32 %v5514_v15, %v3510_v43 }
 0x208   : > { %v3586_v38 = vmul.f32 %v5524_v2, %v3509_v61  ;;  %v3587_v6 = vmul.f32 %v5524_v2, %v3510_v43  ;;  %v3433_v63 = vsel %vm1881_vm12, %v3430_v28, %v3432_v7  ;;  %v3476_v8 = vadd.f32 %v3431_v60, %v3335_v17 }
 0x209   : > { %v3588_v44 = vmul.f32 %v5524_v2, %v3567_v57  ;;  %v3708_v4 = vunpack.c.l.bf16 %v3700_v52  ;;  %v3477_v1 = vadd.f32 %v3433_v63, %v3336_v0  ;;  %v3728_v30 = vmul.f32 %v5535_v18, %v3510_v43 }
 0x20a   : > { %v3640_v19 = vrot.slane %v3586_v38, 1  ;;  %v3641_v11 = vrot.slane %v3587_v6, 1  ;;  %v3546_v29 = vadd.f32 %v3530_v10, %v3476_v8  ;;  %v3729_v9 = vmul.f32 %v5535_v18, %v3567_v57  ;;  %v2030_v38 = vld [vmem:[#allocation2 + $0x50] sm:$0x1] }
 0x20b   : > { %v3643_v23 = vrot.slane %v3588_v44, 1  ;;  %v3727_v20 = vmul.f32 %v5535_v18, %v3708_v4  ;;  %v3547_v24 = vadd.f32 %v3531_v32, %v3477_v1  ;;  %v3782_v21 = vrot.slane %v3728_v30, 2  ;;  %v2171_v4 = vld [vmem:[#allocation2 + $0x48] sm:$0xe] }
 0x20c   : > { %v3642_v27 = vsel %vm1739_vm11, %v3640_v19, %v3641_v11  ;;  %v1627_v46 = vunpack.c.l.bf16 %v1611_v14  ;;  %v3784_v35 = vrot.slane %v3729_v9, 2  ;;  %v1628_v53 = vunpack.c.h.bf16 %v1611_v14 }
 0x20d   : > { %v3644_v33 = vsel %vm1739_vm11, %v3641_v11, %v3643_v23  ;;  %v3687_v34 = vadd.f32 %v3642_v27, %v3546_v29  ;;  %v3781_v5 = vrot.slane %v3727_v20, 2  ;;  %v1683_v41 = vunpack.c.l.bf16 %v1675_v51 }
 0x20e   : > { %v3688_v26 = vadd.f32 %v3644_v33, %v3547_v24  ;;  %v1648_v36 = vmul.f32 %v5402_v58, %v1627_v46  ;;  %v3785_v54 = vsel %vm1881_vm12, %v3782_v21, %v3784_v35  ;;  %v1706_v39 = vmul.f32 %v5410_v3, %v1627_v46 }
 0x20f   : > { %v3783_v31 = vsel %vm1881_vm12, %v3781_v5, %v3782_v21  ;;  %v1825_v40 = vunpack.c.l.bf16 %v1817_v50  ;;  %v1649_v47 = vmul.f32 %v5402_v58, %v1628_v53  ;;  %v1707_v28 = vmul.f32 %v5410_v3, %v1628_v53 }
 0x210   : > { %v3828_v49 = vadd.f32 %v3783_v31, %v3687_v34  ;;  %v3829_v42 = vadd.f32 %v3785_v54, %v3688_v26  ;;  %v1708_v61 = vmul.f32 %v5410_v3, %v1683_v41  ;;  %v1765_v56 = vrot.slane %v1706_v39, 1  ;;  %v2318_v34 = vld [vmem:[#allocation2 + $0x54] sm:$0xff]  }
 0x211   : > { %v1848_v17 = vmul.f32 %v5419_v37, %v1825_v40  ;;  %v1849_v55 = vmul.f32 %v5419_v37, %v1628_v53  ;;  %v1766_v0 = vrot.slane %v1707_v28, 1  ;;  %v1850_v7 = vmul.f32 %v5419_v37, %v1683_v41 }
 0x212   : > { %v3844_v43 = vadd.f32 %v5561_v16, %v3828_v49  ;;  %v3845_v52 = vadd.f32 %v5561_v16, %v3829_v42  ;;  %v1768_v10 = vrot.slane %v1708_v61, 1  ;;  %v2003_v32 = vmul.f32 %v5483_v59, %v5578_v13 }
 0x213   : > { %v1907_v57 = vrot.slane %v1848_v17, 2  ;;  %v1908_v60 = vrot.slane %v1849_v55, 2  ;;  %v1767_v8 = vsel %vm1739_vm11, %v1765_v56, %v1766_v0  ;;  %v1910_v44 = vrot.slane %v1850_v7, 2  ;;  %v2524_v55 = vld [vmem:[#allocation2 + $0x54] sm:$0xe] }
 0x214   : > { %v3860_v6 = vmax.f32 %v3844_v43, 0.0  ;;  %v3861_v63 = vmax.f32 %v3845_v52, 0.0  ;;  %v1769_v14 = vsel %vm1739_vm11, %v1766_v0, %v1768_v10  ;;  %v1806_v1 = vadd.f32 %v1767_v8, %v1648_v36  ;;  %v2383_v36 = vld [vmem:[#allocation2 + $0x5c] sm:$0x1] }
 0x215   : > { %v1909_v19 = vsel %vm1881_vm12, %v1907_v57, %v1908_v60  ;;  %v2004_v11 = vmul.f32 %v5483_v59, %v5582_v22  ;;  %v1807_v29 = vadd.f32 %v1769_v14, %v1649_v47  ;;  %v1911_v23 = vsel %vm1881_vm12, %v1908_v60, %v1910_v44 }
 0x216   : > { %v3873_v30 = vpack.c.bf16 %v3861_v63, %v3860_v6  ;;  %v2038_v20 = vunpack.c.l.bf16 %v2030_v38  ;;  %v1948_v9 = vadd.f32 %v1909_v19, %v1806_v1  ;;  %v2061_v51 = vmul.f32 %v5490_v45, %v5578_v13  ;;  %v2856_v19 = vld [vmem:[#allocation2 + $0x98] sm:$0x1] }
 0x217   : > { %v2062_v24 = vmul.f32 %v5490_v45, %v5582_v22  ;;  %v2179_v27 = vunpack.c.l.bf16 %v2171_v4  ;;  %v1949_v46 = vadd.f32 %v1911_v23, %v1807_v29  ;;  %v2203_v33 = vmul.f32 %v5499_v48, %v5582_v22 }
 0x218   : > { %v3888_v21 = vsel %vm2711_vm13, %v3873_v30, 0  ;;  %v2063_v50 = vmul.f32 %v5490_v45, %v2038_v20  ;;  %v2019_v5 = vadd.f32 %v2003_v32, %v1948_v9  ;;  %v2119_v35 = vrot.slane %v2061_v51, 1 }
 0x219   : > { %4457 = vmatpush3.bf16.xpose.msra.mxu0 %v3888_v21  ;;  %v2120_v26 = vrot.slane %v2062_v24, 1  ;;  %v2202_v53 = vmul.f32 %v5499_v48, %v2179_v27  ;;  %v2020_v41 = vadd.f32 %v2004_v11, %v1949_v46  ;;  %v2204_v54 = vmul.f32 %v5499_v48, %v2038_v20  ;;  %v2997_v27 = vld [vmem:[#allocation2 + $0x90] sm:$0xe] }
 0x21a   : > { %v2122_v31 = vrot.slane %v2063_v50, 1  ;;  %v2261_v39 = vrot.slane %v2203_v33, 2  ;;  %4458 = vmatprep.subr.bf16.mxu0 %v4568_v25  ;;  %v2334_v42 = vunpack.c.l.bf16 %v2318_v34  ;;  %v2335_v47 = vunpack.c.h.bf16 %v2318_v34 }
 0x21b   : > { %v2121_v40 = vsel %vm1739_vm11, %v2119_v35, %v2120_v26  ;;  %v2260_v49 = vrot.slane %v2202_v53, 2  ;;  %v2263_v56 = vrot.slane %v2204_v54, 2  ;;  %v2391_v17 = vunpack.c.l.bf16 %v2383_v36 }
 0x21c   : > { %v2123_v28 = vsel %vm1739_vm11, %v2120_v26, %v2122_v31  ;;  %v2160_v61 = vadd.f32 %v2121_v40, %v2019_v5  ;;  %v2356_v0 = vmul.f32 %v5514_v15, %v2334_v42  ;;  %v2357_v7 = vmul.f32 %v5514_v15, %v2335_v47  ;;  %v3143_v31 = vld [vmem:[#allocation2 + $0x9c] sm:$0xff]  }
 0x21d   : > { %v2161_v43 = vadd.f32 %v2123_v28, %v2020_v41  ;;  %v2262_v52 = vsel %vm1881_vm12, %v2260_v49, %v2261_v39  ;;  %v2264_v10 = vsel %vm1881_vm12, %v2261_v39, %v2263_v56  ;;  %v2414_v60 = vmul.f32 %v5524_v2, %v2334_v42 }
 0x21e   : > { %v2301_v57 = vadd.f32 %v2262_v52, %v2160_v61  ;;  %v2415_v32 = vmul.f32 %v5524_v2, %v2335_v47  ;;  %v2416_v6 = vmul.f32 %v5524_v2, %v2391_v17  ;;  %v2532_v63 = vunpack.c.l.bf16 %v2524_v55  ;;  %v3208_v55 = vld [vmem:[#allocation2 + $0xa4] sm:$0x1] }
 0x21f   : > { %v2302_v38 = vadd.f32 %v2264_v10, %v2161_v43  ;;  %v2556_v8 = vmul.f32 %v5535_v18, %v2335_v47  ;;  %v2472_v4 = vrot.slane %v2414_v60, 1  ;;  %v2557_v1 = vmul.f32 %v5535_v18, %v2391_v17 }
 0x220   : > { %v2372_v44 = vadd.f32 %v2356_v0, %v2301_v57  ;;  %v2473_v14 = vrot.slane %v2415_v32, 1  ;;  %v2475_v30 = vrot.slane %v2416_v6, 1  ;;  %v2555_v29 = vmul.f32 %v5535_v18, %v2532_v63  ;;  %v3349_v32 = vld [vmem:[#allocation2 + $0x9c] sm:$0xe] }
 0x221   : > { %v2373_v11 = vadd.f32 %v2357_v7, %v2302_v38  ;;  %v2614_v23 = vrot.slane %v2556_v8, 2  ;;  %v2616_v9 = vrot.slane %v2557_v1, 2  ;;  %v2828_v51 = vmul.f32 %v5402_v58, %v5505_v12 }
 0x222   : > { %v2474_v20 = vsel %vm1739_vm11, %v2472_v4, %v2473_v14  ;;  %v2829_v24 = vmul.f32 %v5402_v58, %v5507_v62  ;;  %v2476_v21 = vsel %vm1739_vm11, %v2473_v14, %v2475_v30  ;;  %v2613_v50 = vrot.slane %v2555_v29, 2  ;;  %v4347_v29 = vld [vmem:[#allocation2 + $0xa8] sm:$0xff]  }
 0x223   : > { %v2513_v46 = vadd.f32 %v2474_v20, %v2372_v44  ;;  %v2864_v33 = vunpack.c.l.bf16 %v2856_v19  ;;  %v2514_v34 = vadd.f32 %v2476_v21, %v2373_v11  ;;  %v2617_v5 = vsel %vm1881_vm12, %v2614_v23, %v2616_v9 }
 0x224   : > { %v2885_v35 = vmul.f32 %v5410_v3, %v5505_v12  ;;  %v2886_v26 = vmul.f32 %v5410_v3, %v5507_v62  ;;  %v2615_v53 = vsel %vm1881_vm12, %v2613_v50, %v2614_v23  ;;  %v3005_v58 = vunpack.c.l.bf16 %v2997_v27 }
 0x225   : > { %v2887_v36 = vmul.f32 %v5410_v3, %v2864_v33  ;;  %v3027_v41 = vmul.f32 %v5419_v37, %v5507_v62  ;;  %v2654_v54 = vadd.f32 %v2615_v53, %v2513_v46  ;;  %v2655_v39 = vadd.f32 %v2617_v5, %v2514_v34 }
 0x226   : > { %v2941_v40 = vrot.slane %v2885_v35, 1  ;;  %v2942_v49 = vrot.slane %v2886_v26, 1  ;;  %v3026_v47 = vmul.f32 %v5419_v37, %v3005_v58  ;;  %v3028_v12 = vmul.f32 %v5419_v37, %v2864_v33 }
 0x227   : > { %v2944_v42 = vrot.slane %v2887_v36, 1  ;;  %v3083_v28 = vrot.slane %v3027_v41, 2  ;;  %v2676_v61 = vadd.f32 %v5561_v16, %v2654_v54  ;;  %v2677_v56 = vadd.f32 %v5561_v16, %v2655_v39  ;;  %v3701_v41 = vld [vmem:[#allocation2 + $0xa8] sm:$0xe] }
 0x228   : > { %v2943_v3 = vsel %vm1739_vm11, %v2941_v40, %v2942_v49  ;;  %v3159_v17 = vunpack.c.l.bf16 %v3143_v31  ;;  %v3082_v52 = vrot.slane %v3026_v47, 2  ;;  %v3085_v0 = vrot.slane %v3028_v12, 2 }
 0x229   : > { %v2945_v62 = vsel %vm1739_vm11, %v2942_v49, %v2944_v42  ;;  %v2985_v43 = vadd.f32 %v2943_v3, %v2828_v51  ;;  %v2692_v7 = vmax.f32 %v2676_v61, 0.0  ;;  %v2693_v10 = vmax.f32 %v2677_v56, 0.0 }
 0x22a   : > { %v2986_v57 = vadd.f32 %v2945_v62, %v2829_v24  ;;  %v3160_v60 = vunpack.c.h.bf16 %v3143_v31  ;;  %v3084_v37 = vsel %vm1881_vm12, %v3082_v52, %v3083_v28  ;;  %v3086_v38 = vsel %vm1881_vm12, %v3083_v28, %v3085_v0  ;;  %v3560_v24 = vld [vmem:[#allocation2 + $0xb0] sm:$0x1] }
 0x22b   : > { %v3180_v6 = vmul.f32 %v5483_v59, %v3159_v17  ;;  %v3216_v63 = vunpack.c.l.bf16 %v3208_v55  ;;  %v2703_v8 = vpack.c.bf16 %v2693_v10, %v2692_v7  ;;  %v3126_v44 = vadd.f32 %v3084_v37, %v2985_v43 }
 0x22c   : > { %v3127_v4 = vadd.f32 %v3086_v38, %v2986_v57  ;;  %v3181_v14 = vmul.f32 %v5483_v59, %v3160_v60  ;;  %v3237_v1 = vmul.f32 %v5490_v45, %v3159_v17  ;;  %v3238_v19 = vmul.f32 %v5490_v45, %v3160_v60  ;;  %v1676_v57 = vld [vmem:[#allocation2 + $0x50] sm:$0x1]  ;;  %v5748_v38 = vld [vmem:[%s6074_s4] ss:$0 sm:$0xff] }
 0x22d   : > { %v3239_v11 = vmul.f32 %v5490_v45, %v3216_v63  ;;  %v3357_v30 = vunpack.c.l.bf16 %v3349_v32  ;;  %v2731_v23 = vsel %vm2711_vm13, %v2703_v8, 0  ;;  %v3196_v20 = vadd.f32 %v3180_v6, %v3126_v44  ;;  %v1599_v8 = vld [vmem:[%s6077_s7] sm:$0xf] }
 0x22e   : > { %v3197_v9 = vadd.f32 %v3181_v14, %v3127_v4  ;;  %v3379_v51 = vmul.f32 %v5499_v48, %v3160_v60  ;;  %4441 = vmatpush3.bf16.xpose.msra.mxu1 %v2731_v23  ;;  %v3293_v27 = vrot.slane %v3237_v1, 1  ;;  %v3294_v21 = vrot.slane %v3238_v19, 1  ;;  %2708 = vperm.xlu0 %4504, %v1599_v8  }
 0x22f   : > { %v3296_v46 = vrot.slane %v3239_v11, 1  ;;  %v3378_v50 = vmul.f32 %v5499_v48, %v3357_v30  ;;  %4442 = vmatprep.subr.bf16.mxu1 %v4568_v25  ;;  %v3380_v33 = vmul.f32 %v5499_v48, %v3216_v63  ;;  %v5723_v5 = vunpack.c.l.bf16 %v4347_v29  ;;  %v1818_v63 = vld [vmem:[#allocation2 + $0x48] sm:$0xe] }
 0x230   : > { %v3435_v34 = vrot.slane %v3379_v51, 2  ;;  %v5725_v35 = vunpack.c.h.bf16 %v4347_v29  ;;  %v3295_v26 = vsel %vm1739_vm11, %v3293_v27, %v3294_v21  ;;  %v3568_v58 = vunpack.c.l.bf16 %v3560_v24  ;;  %v5761_v29 = vld [vmem:[%s6074_s4 + $0x1] ss:$0 sm:$0xff]  ;;  %v1967_v27 = vld [vmem:[#allocation2 + $0x54] sm:$0xff]  }
 0x231   : > { %v3297_v53 = vsel %vm1739_vm11, %v3294_v21, %v3296_v46  ;;  %v3434_v36 = vrot.slane %v3378_v50, 2  ;;  %v3337_v31 = vadd.f32 %v3295_v26, %v3196_v20  ;;  %v3437_v39 = vrot.slane %v3380_v33, 2  ;;  %v5773_v26 = vld [vmem:[%s6074_s4 + $0x2] ss:$0 sm:$0xff] }
 0x232   : > { %v3338_v54 = vadd.f32 %v3297_v53, %v3197_v9  ;;  %v3532_v40 = vmul.f32 %v5514_v15, %v5723_v5  ;;  %v3533_v42 = vmul.f32 %v5514_v15, %v5725_v35  ;;  %v3589_v47 = vmul.f32 %v5524_v2, %v5723_v5 }
 0x233   : > { %v3436_v49 = vsel %vm1881_vm12, %v3434_v36, %v3435_v34  ;;  %v3590_v12 = vmul.f32 %v5524_v2, %v5725_v35  ;;  %v3438_v28 = vsel %vm1881_vm12, %v3435_v34, %v3437_v39  ;;  %v3591_v56 = vmul.f32 %v5524_v2, %v3568_v58 }
 0x234   : > { %v3478_v61 = vadd.f32 %v3436_v49, %v3337_v31  ;;  %v3709_v3 = vunpack.c.l.bf16 %v3701_v41  ;;  %v3479_v17 = vadd.f32 %v3438_v28, %v3338_v54  ;;  %v3645_v55 = vrot.slane %v3589_v47, 1  ;;  %v2031_v47 = vld [vmem:[#allocation2 + $0x5c] sm:$0x1] }
 0x235   : > { %v3646_v62 = vrot.slane %v3590_v12, 1  ;;  %v3731_v43 = vmul.f32 %v5535_v18, %v5725_v35  ;;  %v3648_v0 = vrot.slane %v3591_v56, 1  ;;  %v3732_v10 = vmul.f32 %v5535_v18, %v3568_v58 }
 0x236   : > { %v3548_v52 = vadd.f32 %v3532_v40, %v3478_v61  ;;  %v3730_v7 = vmul.f32 %v5535_v18, %v3709_v3  ;;  %v3549_v60 = vadd.f32 %v3533_v42, %v3479_v17  ;;  %v1650_v6 = vmul.f32 %v5748_v38, %v5578_v13 }
 0x237   : > { %v3647_v32 = vsel %vm1739_vm11, %v3645_v55, %v3646_v62  ;;  %v3787_v37 = vrot.slane %v3731_v43, 2  ;;  %v3649_v44 = vsel %vm1739_vm11, %v3646_v62, %v3648_v0  ;;  %v3789_v1 = vrot.slane %v3732_v10, 2  ;;  %v2172_v62 = vld [vmem:[#allocation2 + $0x54] sm:$0xe] }
 0x238   : > { %v3689_v4 = vadd.f32 %v3647_v32, %v3548_v52  ;;  %v3786_v14 = vrot.slane %v3730_v7, 2  ;;  %v3690_v19 = vadd.f32 %v3649_v44, %v3549_v60  ;;  %v1651_v11 = vmul.f32 %v5748_v38, %v5582_v22 }
 0x239   : > { %v1684_v30 = vunpack.c.l.bf16 %v1676_v57  ;;  %v1709_v23 = vmul.f32 %v5761_v29, %v5578_v13  ;;  %v3790_v9 = vsel %vm1881_vm12, %v3787_v37, %v3789_v1  ;;  %v1710_v51 = vmul.f32 %v5761_v29, %v5582_v22 }
 0x23a   : > { %v3788_v20 = vsel %vm1881_vm12, %v3786_v14, %v3787_v37  ;;  %v1826_v24 = vunpack.c.l.bf16 %v1818_v63  ;;  %v3831_v46 = vadd.f32 %v3790_v9, %v3690_v19  ;;  %v1852_v53 = vmul.f32 %v5773_v26, %v5582_v22  ;;  %v4338_v37 = vld [vmem:[#allocation2 + $0x60] sm:$0xff]  }
 0x23b   : > { %v3830_v21 = vadd.f32 %v3788_v20, %v3689_v4  ;;  %v1711_v50 = vmul.f32 %v5761_v29, %v1684_v30  ;;  %v1770_v33 = vrot.slane %v1709_v23, 1  ;;  %v1771_v34 = vrot.slane %v1710_v51, 1  ;;  %v2384_v4 = vld [vmem:[#allocation2 + $0x68] sm:$0x1] }
 0x23c   : > { %v1851_v13 = vmul.f32 %v5773_v26, %v1826_v24  ;;  %v1853_v36 = vmul.f32 %v5773_v26, %v1684_v30  ;;  %v3847_v41 = vadd.f32 %v5561_v16, %v3831_v46  ;;  %v1983_v54 = vunpack.c.l.bf16 %v1967_v27 }
 0x23d   : > { %v3846_v58 = vadd.f32 %v5561_v16, %v3830_v21  ;;  %v1773_v31 = vrot.slane %v1711_v50, 1  ;;  %v1772_v39 = vsel %vm1739_vm11, %v1770_v33, %v1771_v34  ;;  %v1913_v49 = vrot.slane %v1852_v53, 2  ;;  %v2525_v33 = vld [vmem:[#allocation2 + $0x60] sm:$0xe] }
 0x23e   : > { %v1912_v40 = vrot.slane %v1851_v13, 2  ;;  %v1915_v42 = vrot.slane %v1853_v36, 2  ;;  %v3863_v28 = vmax.f32 %v3847_v41, 0.0  ;;  %v1808_v56 = vadd.f32 %v1772_v39, %v1650_v6 }
 0x23f   : > { %v3862_v12 = vmax.f32 %v3846_v58, 0.0  ;;  %v1774_v61 = vsel %vm1739_vm11, %v1771_v34, %v1773_v31  ;;  %v1984_v55 = vunpack.c.h.bf16 %v1967_v27  ;;  %v2005_v0 = vmul.f32 %v5483_v59, %v1983_v54 }
 0x240   : > { %v1809_v22 = vadd.f32 %v1774_v61, %v1651_v11  ;;  %v1914_v3 = vsel %vm1881_vm12, %v1912_v40, %v1913_v49  ;;  %v1916_v17 = vsel %vm1881_vm12, %v1913_v49, %v1915_v42  ;;  %v2039_v7 = vunpack.c.l.bf16 %v2031_v47 }
 0x241   : > { %v3874_v43 = vpack.c.bf16 %v3863_v28, %v3862_v12  ;;  %v1950_v52 = vadd.f32 %v1914_v3, %v1808_v56  ;;  %v2006_v57 = vmul.f32 %v5483_v59, %v1984_v55  ;;  %v2064_v60 = vmul.f32 %v5490_v45, %v1983_v54  ;;  %v2793_v54 = vld [vmem:[#allocation2 + $0x9c] sm:$0xff]  }
 0x242   : > { %v1951_v10 = vadd.f32 %v1916_v17, %v1809_v22  ;;  %v2065_v32 = vmul.f32 %v5490_v45, %v1984_v55  ;;  %v2066_v8 = vmul.f32 %v5490_v45, %v2039_v7  ;;  %v2180_v44 = vunpack.c.l.bf16 %v2172_v62  ;;  %v2857_v17 = vld [vmem:[#allocation2 + $0xa4] sm:$0x1] }
 0x243   : > { %v3891_v6 = vsel %vm2711_vm13, %v3874_v43, 0  ;;  %v2021_v63 = vadd.f32 %v2005_v0, %v1950_v52  ;;  %v2124_v1 = vrot.slane %v2064_v60, 1  ;;  %v2206_v11 = vmul.f32 %v5499_v48, %v1984_v55 }
 0x244   : > { %4459 = vmatpush3.bf16.xpose.msra.mxu0 %v3891_v6  ;;  %v2022_v14 = vadd.f32 %v2006_v57, %v1951_v10  ;;  %v2125_v19 = vrot.slane %v2065_v32, 1  ;;  %v2127_v30 = vrot.slane %v2066_v8, 1  ;;  %v2205_v59 = vmul.f32 %v5499_v48, %v2180_v44  ;;  %v2998_v57 = vld [vmem:[#allocation2 + $0x9c] sm:$0xe] }
 0x245   : > { %v2207_v23 = vmul.f32 %v5499_v48, %v2039_v7  ;;  %v5794_v20 = vunpack.c.l.bf16 %v4338_v37  ;;  %4460 = vmatprep.subr.bf16.mxu0 %v4568_v25  ;;  %v2266_v45 = vrot.slane %v2206_v11, 2  ;;  %v5798_v51 = vunpack.c.h.bf16 %v4338_v37 }
 0x246   : > { %v2126_v9 = vsel %vm1739_vm11, %v2124_v1, %v2125_v19  ;;  %v2392_v24 = vunpack.c.l.bf16 %v2384_v4  ;;  %v2128_v27 = vsel %vm1739_vm11, %v2125_v19, %v2127_v30  ;;  %v2265_v46 = vrot.slane %v2205_v59, 2 }
 0x247   : > { %v2162_v21 = vadd.f32 %v2126_v9, %v2021_v63  ;;  %v2268_v50 = vrot.slane %v2207_v23, 2  ;;  %v2163_v34 = vadd.f32 %v2128_v27, %v2022_v14  ;;  %v2358_v48 = vmul.f32 %v5514_v15, %v5794_v20  ;;  %v5833_v27 = vld [vmem:[%s6074_s4 + $0x4] ss:$0 sm:$0xff] }
 0x248   : > { %v2359_v13 = vmul.f32 %v5514_v15, %v5798_v51  ;;  %v2417_v53 = vmul.f32 %v5524_v2, %v5794_v20  ;;  %v2267_v36 = vsel %vm1881_vm12, %v2265_v46, %v2266_v45  ;;  %v2418_v41 = vmul.f32 %v5524_v2, %v5798_v51  ;;  %v3209_v46 = vld [vmem:[#allocation2 + $0xb0] sm:$0x1] }
 0x249   : > { %v2269_v58 = vsel %vm1881_vm12, %v2266_v45, %v2268_v50  ;;  %v2419_v31 = vmul.f32 %v5524_v2, %v2392_v24  ;;  %v2303_v39 = vadd.f32 %v2267_v36, %v2162_v21  ;;  %v2533_v42 = vunpack.c.l.bf16 %v2525_v33 }
 0x24a   : > { %v2304_v40 = vadd.f32 %v2269_v58, %v2163_v34  ;;  %v2477_v49 = vrot.slane %v2417_v53, 1  ;;  %v2478_v47 = vrot.slane %v2418_v41, 1  ;;  %v2559_v15 = vmul.f32 %v5535_v18, %v5798_v51  ;;  %v3350_v58 = vld [vmem:[#allocation2 + $0xa8] sm:$0xe] }
 0x24b   : > { %v2480_v12 = vrot.slane %v2419_v31, 1  ;;  %v2560_v28 = vmul.f32 %v5535_v18, %v2392_v24  ;;  %v2374_v61 = vadd.f32 %v2358_v48, %v2303_v39  ;;  %v2558_v22 = vmul.f32 %v5535_v18, %v2533_v42  ;;  %v5846_v42 = vld [vmem:[%s6074_s4 + $0x5] ss:$0 sm:$0xff] }
 0x24c   : > { %v2375_v56 = vadd.f32 %v2359_v13, %v2304_v40  ;;  %v2809_v3 = vunpack.c.l.bf16 %v2793_v54  ;;  %v2479_v2 = vsel %vm1739_vm11, %v2477_v49, %v2478_v47  ;;  %v2619_v62 = vrot.slane %v2559_v15, 2 }
 0x24d   : > { %v2481_v55 = vsel %vm1739_vm11, %v2478_v47, %v2480_v12  ;;  %v2621_v43 = vrot.slane %v2560_v28, 2  ;;  %v2515_v52 = vadd.f32 %v2479_v2, %v2374_v61  ;;  %v2618_v7 = vrot.slane %v2558_v22, 2  ;;  %v3497_v22 = vld [vmem:[#allocation2 + $0xb4] sm:$0xff]  }
 0x24e   : > { %v2516_v0 = vadd.f32 %v2481_v55, %v2375_v56  ;;  %v2810_v10 = vunpack.c.h.bf16 %v2793_v54  ;;  %v2830_v32 = vmul.f32 %v5748_v38, %v2809_v3  ;;  %v2865_v37 = vunpack.c.l.bf16 %v2857_v17  ;;  %v5857_v55 = vld [vmem:[%s6074_s4 + $0x6] ss:$0 sm:$0xff] }
 0x24f   : > { %v2622_v60 = vsel %vm1881_vm12, %v2619_v62, %v2621_v43  ;;  %v2888_v18 = vmul.f32 %v5761_v29, %v2809_v3  ;;  %v2620_v6 = vsel %vm1881_vm12, %v2618_v7, %v2619_v62  ;;  %v3006_v19 = vunpack.c.l.bf16 %v2998_v57 }
 0x250   : > { %v2657_v63 = vadd.f32 %v2622_v60, %v2516_v0  ;;  %v2831_v8 = vmul.f32 %v5748_v38, %v2810_v10  ;;  %v2889_v44 = vmul.f32 %v5761_v29, %v2810_v10  ;;  %v2656_v4 = vadd.f32 %v2620_v6, %v2515_v52 }
 0x251   : > { %v2890_v14 = vmul.f32 %v5761_v29, %v2865_v37  ;;  %v2946_v1 = vrot.slane %v2888_v18, 1  ;;  %v3030_v59 = vmul.f32 %v5773_v26, %v2810_v10  ;;  %v3031_v23 = vmul.f32 %v5773_v26, %v2865_v37  ;;  %v3561_v10 = vld [vmem:[#allocation2 + $0xbc] sm:$0x1] }
 0x252   : > { %v2679_v11 = vadd.f32 %v5561_v16, %v2657_v63  ;;  %v2947_v30 = vrot.slane %v2889_v44, 1  ;;  %v2678_v9 = vadd.f32 %v5561_v16, %v2656_v4  ;;  %v3029_v24 = vmul.f32 %v5773_v26, %v3006_v19  ;;  %v3702_v44 = vld [vmem:[#allocation2 + $0xb4] sm:$0xe] }
 0x253   : > { %v2949_v45 = vrot.slane %v2890_v14, 1  ;;  %v3182_v21 = vmul.f32 %v5833_v27, %v5723_v5  ;;  %v3088_v34 = vrot.slane %v3030_v59, 2  ;;  %v3090_v48 = vrot.slane %v3031_v23, 2  ;;  %v5877_v23 = vld [vmem:[%s6074_s4 + $0x9] ss:$0 sm:$0xff] }
 0x254   : > { %v2695_v50 = vmax.f32 %v2679_v11, 0.0  ;;  %v2948_v33 = vsel %vm1739_vm11, %v2946_v1, %v2947_v30  ;;  %v2694_v13 = vmax.f32 %v2678_v9, 0.0  ;;  %v3087_v36 = vrot.slane %v3029_v24, 2  ;;  %v5869_v1 = vld [vmem:[%s6074_s4 + $0x8] ss:$0 sm:$0xff] }
 0x255   : > { %v2950_v16 = vsel %vm1739_vm11, %v2947_v30, %v2949_v45  ;;  %v2987_v53 = vadd.f32 %v2948_v33, %v2830_v32  ;;  %v3091_v31 = vsel %vm1881_vm12, %v3088_v34, %v3090_v48  ;;  %v3183_v54 = vmul.f32 %v5833_v27, %v5725_v35  ;;  %v1615_v33 = vld [vmem:[#allocation2 + $0x54] sm:$0xff]  }
 0x256   : > { %v2988_v41 = vadd.f32 %v2950_v16, %v2831_v8  ;;  %v3217_v39 = vunpack.c.l.bf16 %v3209_v46  ;;  %v2704_v40 = vpack.c.bf16 %v2695_v50, %v2694_v13  ;;  %v3089_v49 = vsel %vm1881_vm12, %v3087_v36, %v3088_v34  ;;  %v5886_v16 = vld [vmem:[%s6074_s4 + $0xa] ss:$0 sm:$0xff] }
 0x257   : > { %v3240_v47 = vmul.f32 %v5846_v42, %v5723_v5  ;;  %v3241_v12 = vmul.f32 %v5846_v42, %v5725_v35  ;;  %v3128_v15 = vadd.f32 %v3089_v49, %v2987_v53  ;;  %v3358_v56 = vunpack.c.l.bf16 %v3350_v58 }
 0x258   : > { %v3129_v28 = vadd.f32 %v3091_v31, %v2988_v41  ;;  %v3242_v61 = vmul.f32 %v5846_v42, %v3217_v39  ;;  %v2734_v3 = vsel %vm2711_vm13, %v2704_v40, 0  ;;  %v3382_v62 = vmul.f32 %v5857_v55, %v5725_v35 }
 0x259   : > { %v3298_v17 = vrot.slane %v3240_v47, 1  ;;  %v3299_v2 = vrot.slane %v3241_v12, 1  ;;  %4443 = vmatpush3.bf16.xpose.msra.mxu1 %v2734_v3  ;;  %v3198_v43 = vadd.f32 %v3182_v21, %v3128_v15  ;;  %v3381_v7 = vmul.f32 %v5857_v55, %v3358_v56  ;;  %v1819_v12 = vld [vmem:[#allocation2 + $0x54] sm:$0xe] }
 0x25a   : > { %v3199_v52 = vadd.f32 %v3183_v54, %v3129_v28  ;;  %v3301_v0 = vrot.slane %v3242_v61, 1  ;;  %4444 = vmatprep.subr.bf16.mxu1 %v4568_v25  ;;  %v3383_v60 = vmul.f32 %v5857_v55, %v3217_v39  ;;  %v3440_v32 = vrot.slane %v3382_v62, 2  ;;  %v1677_v54 = vld [vmem:[#allocation2 + $0x5c] sm:$0x1] }
 0x25b   : > { %v3300_v57 = vsel %vm1739_vm11, %v3298_v17, %v3299_v2  ;;  %v3513_v37 = vunpack.c.l.bf16 %v3497_v22  ;;  %v3439_v63 = vrot.slane %v3381_v7, 2  ;;  %v3514_v8 = vunpack.c.h.bf16 %v3497_v22 }
 0x25c   : > { %v3302_v18 = vsel %vm1739_vm11, %v3299_v2, %v3301_v0  ;;  %v3339_v6 = vadd.f32 %v3300_v57, %v3198_v43  ;;  %v3442_v14 = vrot.slane %v3383_v60, 2  ;;  %v3569_v11 = vunpack.c.l.bf16 %v3561_v10 }
 0x25d   : > { %v3340_v4 = vadd.f32 %v3302_v18, %v3199_v52  ;;  %v3534_v19 = vmul.f32 %v5869_v1, %v3513_v37  ;;  %v3441_v30 = vsel %vm1881_vm12, %v3439_v63, %v3440_v32  ;;  %v3535_v59 = vmul.f32 %v5869_v1, %v3514_v8  ;;  %v5905_v63 = vld [vmem:[%s6075_s5] ss:$0 sm:$0xff] }
 0x25e   : > { %v3592_v9 = vmul.f32 %v5877_v23, %v3513_v37  ;;  %v3593_v45 = vmul.f32 %v5877_v23, %v3514_v8  ;;  %v3443_v24 = vsel %vm1881_vm12, %v3440_v32, %v3442_v14  ;;  %v3480_v21 = vadd.f32 %v3441_v30, %v3339_v6 }
 0x25f   : > { %v3594_v46 = vmul.f32 %v5877_v23, %v3569_v11  ;;  %v3710_v50 = vunpack.c.l.bf16 %v3702_v44  ;;  %v3481_v34 = vadd.f32 %v3443_v24, %v3340_v4  ;;  %v3734_v53 = vmul.f32 %v5886_v16, %v3514_v8 }
 0x260   : > { %v3650_v48 = vrot.slane %v3592_v9, 1  ;;  %v3651_v13 = vrot.slane %v3593_v45, 1  ;;  %v3550_v36 = vadd.f32 %v3534_v19, %v3480_v21  ;;  %v3735_v31 = vmul.f32 %v5886_v16, %v3569_v11  ;;  %v2032_v9 = vld [vmem:[#allocation2 + $0x68] sm:$0x1] }
 0x261   : > { %v3653_v58 = vrot.slane %v3594_v46, 1  ;;  %v3733_v41 = vmul.f32 %v5886_v16, %v3710_v50  ;;  %v3551_v39 = vadd.f32 %v3535_v59, %v3481_v34  ;;  %v3792_v49 = vrot.slane %v3734_v53, 2  ;;  %v2173_v50 = vld [vmem:[#allocation2 + $0x60] sm:$0xe] }
 0x262   : > { %v3652_v40 = vsel %vm1739_vm11, %v3650_v48, %v3651_v13  ;;  %v1631_v47 = vunpack.c.l.bf16 %v1615_v33  ;;  %v3794_v56 = vrot.slane %v3735_v31, 2  ;;  %v1632_v3 = vunpack.c.h.bf16 %v1615_v33 }
 0x263   : > { %v3654_v15 = vsel %vm1739_vm11, %v3651_v13, %v3653_v58  ;;  %v3691_v28 = vadd.f32 %v3652_v40, %v3550_v36  ;;  %v3791_v61 = vrot.slane %v3733_v41, 2  ;;  %v1685_v2 = vunpack.c.l.bf16 %v1677_v54 }
 0x264   : > { %v3692_v22 = vadd.f32 %v3654_v15, %v3551_v39  ;;  %v1652_v17 = vmul.f32 %v5748_v38, %v1631_v47  ;;  %v3795_v43 = vsel %vm1881_vm12, %v3792_v49, %v3794_v56  ;;  %v1712_v52 = vmul.f32 %v5761_v29, %v1631_v47 }
 0x265   : > { %v3793_v62 = vsel %vm1881_vm12, %v3791_v61, %v3792_v49  ;;  %v1827_v0 = vunpack.c.l.bf16 %v1819_v12  ;;  %v1653_v57 = vmul.f32 %v5748_v38, %v1632_v3  ;;  %v1713_v60 = vmul.f32 %v5761_v29, %v1632_v3 }
 0x266   : > { %v3832_v7 = vadd.f32 %v3793_v62, %v3691_v28  ;;  %v3833_v10 = vadd.f32 %v3795_v43, %v3692_v22  ;;  %v1714_v32 = vmul.f32 %v5761_v29, %v1685_v2  ;;  %v1775_v37 = vrot.slane %v1712_v52, 1  ;;  %v2322_v28 = vld [vmem:[#allocation2 + $0x6c] sm:$0xff]  }
 0x267   : > { %v1854_v18 = vmul.f32 %v5773_v26, %v1827_v0  ;;  %v1855_v6 = vmul.f32 %v5773_v26, %v1632_v3  ;;  %v1776_v4 = vrot.slane %v1713_v60, 1  ;;  %v1856_v14 = vmul.f32 %v5773_v26, %v1685_v2 }
 0x268   : > { %v3848_v8 = vadd.f32 %v5905_v63, %v3832_v7  ;;  %v3849_v44 = vadd.f32 %v5905_v63, %v3833_v10  ;;  %v1778_v19 = vrot.slane %v1714_v32, 1  ;;  %v2007_v59 = vmul.f32 %v5833_v27, %v5794_v20 }
 0x269   : > { %v1917_v11 = vrot.slane %v1854_v18, 2  ;;  %v1918_v30 = vrot.slane %v1855_v6, 2  ;;  %v1777_v21 = vsel %vm1739_vm11, %v1775_v37, %v1776_v4  ;;  %v1920_v46 = vrot.slane %v1856_v14, 2  ;;  %v2526_v37 = vld [vmem:[#allocation2 + $0x6c] sm:$0xe] }
 0x26a   : > { %v3864_v45 = vmax.f32 %v3848_v8, 0.0  ;;  %v3865_v24 = vmax.f32 %v3849_v44, 0.0  ;;  %v1779_v33 = vsel %vm1739_vm11, %v1776_v4, %v1778_v19  ;;  %v1810_v34 = vadd.f32 %v1777_v21, %v1652_v17 }
 0x26b   : > { %v1919_v48 = vsel %vm1881_vm12, %v1917_v11, %v1918_v30  ;;  %v2008_v13 = vmul.f32 %v5833_v27, %v5798_v51  ;;  %v1811_v36 = vadd.f32 %v1779_v33, %v1653_v57  ;;  %v1921_v58 = vsel %vm1881_vm12, %v1918_v30, %v1920_v46  ;;  %v2858_v33 = vld [vmem:[#allocation2 + $0xb0] sm:$0x1] }
 0x26c   : > { %v3875_v53 = vpack.c.bf16 %v3865_v24, %v3864_v45  ;;  %v2040_v41 = vunpack.c.l.bf16 %v2032_v9  ;;  %v1952_v31 = vadd.f32 %v1919_v48, %v1810_v34  ;;  %v2067_v54 = vmul.f32 %v5846_v42, %v5794_v20  ;;  %v2385_v20 = vld [vmem:[#allocation2 + $0x74] sm:$0x1] }
 0x26d   : > { %v2068_v39 = vmul.f32 %v5846_v42, %v5798_v51  ;;  %v2181_v40 = vunpack.c.l.bf16 %v2173_v50  ;;  %v1953_v47 = vadd.f32 %v1921_v58, %v1811_v36  ;;  %v2209_v15 = vmul.f32 %v5857_v55, %v5798_v51 }
 0x26e   : > { %v3894_v49 = vsel %vm2711_vm13, %v3875_v53, 0  ;;  %v2069_v12 = vmul.f32 %v5846_v42, %v2040_v41  ;;  %v2023_v61 = vadd.f32 %v2007_v59, %v1952_v31  ;;  %v2129_v56 = vrot.slane %v2067_v54, 1  ;;  %v2999_v54 = vld [vmem:[#allocation2 + $0xa8] sm:$0xe] }
 0x26f   : > { %4461 = vmatpush3.bf16.xpose.msra.mxu0 %v3894_v49  ;;  %v2130_v22 = vrot.slane %v2068_v39, 1  ;;  %v2208_v3 = vmul.f32 %v5857_v55, %v2181_v40  ;;  %v2024_v17 = vadd.f32 %v2008_v13, %v1953_v47  ;;  %v2210_v62 = vmul.f32 %v5857_v55, %v2040_v41 }
 0x270   : > { %v2132_v2 = vrot.slane %v2069_v12, 1  ;;  %v2271_v43 = vrot.slane %v2209_v15, 2  ;;  %4462 = vmatprep.subr.bf16.mxu0 %v4568_v25  ;;  %v2338_v7 = vunpack.c.l.bf16 %v2322_v28  ;;  %v2339_v51 = vunpack.c.h.bf16 %v2322_v28 }
 0x271   : > { %v2131_v52 = vsel %vm1739_vm11, %v2129_v56, %v2130_v22  ;;  %v2270_v0 = vrot.slane %v2208_v3, 2  ;;  %v2273_v60 = vrot.slane %v2210_v62, 2  ;;  %v2393_v32 = vunpack.c.l.bf16 %v2385_v20 }
 0x272   : > { %v2133_v10 = vsel %vm1739_vm11, %v2130_v22, %v2132_v2  ;;  %v2164_v57 = vadd.f32 %v2131_v52, %v2023_v61  ;;  %v2360_v8 = vmul.f32 %v5869_v1, %v2338_v7  ;;  %v2361_v44 = vmul.f32 %v5869_v1, %v2339_v51 }
 0x273   : > { %v2165_v18 = vadd.f32 %v2133_v10, %v2024_v17  ;;  %v2272_v6 = vsel %vm1881_vm12, %v2270_v0, %v2271_v43  ;;  %v2274_v4 = vsel %vm1881_vm12, %v2271_v43, %v2273_v60  ;;  %v2420_v19 = vmul.f32 %v5877_v23, %v2338_v7  ;;  %v3147_v17 = vld [vmem:[#allocation2 + $0xb4] sm:$0xff]  }
 0x274   : > { %v2305_v14 = vadd.f32 %v2272_v6, %v2164_v57  ;;  %v2421_v11 = vmul.f32 %v5877_v23, %v2339_v51  ;;  %v2422_v59 = vmul.f32 %v5877_v23, %v2393_v32  ;;  %v2534_v9 = vunpack.c.l.bf16 %v2526_v37  ;;  %v3210_v37 = vld [vmem:[#allocation2 + $0xbc] sm:$0x1] }
 0x275   : > { %v2306_v30 = vadd.f32 %v2274_v4, %v2165_v18  ;;  %v2562_v45 = vmul.f32 %v5886_v16, %v2339_v51  ;;  %v2482_v21 = vrot.slane %v2420_v19, 1  ;;  %v2563_v50 = vmul.f32 %v5886_v16, %v2393_v32 }
 0x276   : > { %v2376_v24 = vadd.f32 %v2360_v8, %v2305_v14  ;;  %v2483_v46 = vrot.slane %v2421_v11, 1  ;;  %v2485_v48 = vrot.slane %v2422_v59, 1  ;;  %v2561_v13 = vmul.f32 %v5886_v16, %v2534_v9  ;;  %v3351_v11 = vld [vmem:[#allocation2 + $0xb4] sm:$0xe] }
 0x277   : > { %v2377_v34 = vadd.f32 %v2361_v44, %v2306_v30  ;;  %v2624_v53 = vrot.slane %v2562_v45, 2  ;;  %v2626_v58 = vrot.slane %v2563_v50, 2  ;;  %v2832_v41 = vmul.f32 %v5748_v38, %v5723_v5 }
 0x278   : > { %v2484_v36 = vsel %vm1739_vm11, %v2482_v21, %v2483_v46  ;;  %v2833_v31 = vmul.f32 %v5748_v38, %v5725_v35  ;;  %v2486_v39 = vsel %vm1739_vm11, %v2483_v46, %v2485_v48  ;;  %v2623_v49 = vrot.slane %v2561_v13, 2 }
 0x279   : > { %v2517_v40 = vadd.f32 %v2484_v36, %v2376_v24  ;;  %v2866_v47 = vunpack.c.l.bf16 %v2858_v33  ;;  %v2518_v12 = vadd.f32 %v2486_v39, %v2377_v34  ;;  %v2627_v15 = vsel %vm1881_vm12, %v2624_v53, %v2626_v58 }
 0x27a   : > { %v2891_v28 = vmul.f32 %v5761_v29, %v5723_v5  ;;  %v2892_v61 = vmul.f32 %v5761_v29, %v5725_v35  ;;  %v2625_v56 = vsel %vm1881_vm12, %v2623_v49, %v2624_v53  ;;  %v3007_v3 = vunpack.c.l.bf16 %v2999_v54  ;;  %v4348_v53 = vld [vmem:[#allocation2 + $0xc0] sm:$0xff]   ;;  %v3562_v54 = vld [vmem:[#allocation2 + $0xc8] sm:$0x1] }
 0x27b   : > { %v2893_v22 = vmul.f32 %v5761_v29, %v2866_v47  ;;  %v3033_v20 = vmul.f32 %v5773_v26, %v5725_v35  ;;  %v2658_v2 = vadd.f32 %v2625_v56, %v2517_v40  ;;  %v2659_v62 = vadd.f32 %v2627_v15, %v2518_v12 }
 0x27c   : > { %v2951_v43 = vrot.slane %v2891_v28, 1  ;;  %v2952_v52 = vrot.slane %v2892_v61, 1  ;;  %v3032_v7 = vmul.f32 %v5773_v26, %v3007_v3  ;;  %v3034_v5 = vmul.f32 %v5773_v26, %v2866_v47 }
 0x27d   : > { %v2954_v0 = vrot.slane %v2893_v22, 1  ;;  %v3093_v51 = vrot.slane %v3033_v20, 2  ;;  %v2680_v10 = vadd.f32 %v5905_v63, %v2658_v2  ;;  %v2681_v57 = vadd.f32 %v5905_v63, %v2659_v62 }
 0x27e   : > { %v2953_v60 = vsel %vm1739_vm11, %v2951_v43, %v2952_v52  ;;  %v3163_v32 = vunpack.c.l.bf16 %v3147_v17  ;;  %v3092_v6 = vrot.slane %v3032_v7, 2  ;;  %v3095_v8 = vrot.slane %v3034_v5, 2 }
 0x27f   : > { %v2955_v35 = vsel %vm1739_vm11, %v2952_v52, %v2954_v0  ;;  %v2989_v18 = vadd.f32 %v2953_v60, %v2832_v41  ;;  %v2696_v44 = vmax.f32 %v2680_v10, 0.0  ;;  %v2697_v4 = vmax.f32 %v2681_v57, 0.0 }
 0x280   : > { %v2990_v14 = vadd.f32 %v2955_v35, %v2833_v31  ;;  %v3164_v19 = vunpack.c.h.bf16 %v3147_v17  ;;  %v3094_v30 = vsel %vm1881_vm12, %v3092_v6, %v3093_v51  ;;  %v3096_v59 = vsel %vm1881_vm12, %v3093_v51, %v3095_v8  ;;  %v3703_v17 = vld [vmem:[#allocation2 + $0xc0] sm:$0xe] }
 0x281   : > { %v3184_v9 = vmul.f32 %v5833_v27, %v3163_v32  ;;  %v3218_v45 = vunpack.c.l.bf16 %v3210_v37  ;;  %v2705_v24 = vpack.c.bf16 %v2697_v4, %v2696_v44  ;;  %v3130_v21 = vadd.f32 %v3094_v30, %v2989_v18  ;;  %v2797_v37 = vld [vmem:[#allocation2 + $0xb4] sm:$0xff]  }
 0x282   : > { %v3131_v46 = vadd.f32 %v3096_v59, %v2990_v14  ;;  %v3185_v50 = vmul.f32 %v5833_v27, %v3164_v19  ;;  %v3243_v33 = vmul.f32 %v5846_v42, %v3163_v32  ;;  %v3244_v34 = vmul.f32 %v5846_v42, %v3164_v19 }
 0x283   : > { %v3245_v48 = vmul.f32 %v5846_v42, %v3218_v45  ;;  %v3359_v13 = vunpack.c.l.bf16 %v3351_v11  ;;  %v2737_v36 = vsel %vm2711_vm13, %v2705_v24, 0  ;;  %v3200_v58 = vadd.f32 %v3184_v9, %v3130_v21  ;;  %v2859_v11 = vld [vmem:[#allocation2 + $0xbc] sm:$0x1]  ;;  %v3000_v24 = vld [vmem:[#allocation2 + $0xb4] sm:$0xe] }
 0x284   : > { %v3201_v41 = vadd.f32 %v3185_v50, %v3131_v46  ;;  %v3385_v31 = vmul.f32 %v5857_v55, %v3164_v19  ;;  %4445 = vmatpush3.bf16.xpose.msra.mxu1 %v2737_v36  ;;  %v3303_v39 = vrot.slane %v3243_v33, 1  ;;  %v3304_v40 = vrot.slane %v3244_v34, 1 }
 0x285   : > { %v3306_v49 = vrot.slane %v3245_v48, 1  ;;  %v3384_v47 = vmul.f32 %v5857_v55, %v3359_v13  ;;  %v3386_v12 = vmul.f32 %v5857_v55, %v3218_v45  ;;  %v5973_v28 = vunpack.c.l.bf16 %v4348_v53 }
 0x286   : > { %v3445_v15 = vrot.slane %v3385_v31, 2  ;;  %v5975_v61 = vunpack.c.h.bf16 %v4348_v53  ;;  %v3305_v56 = vsel %vm1739_vm11, %v3303_v39, %v3304_v40  ;;  %v3570_v20 = vunpack.c.l.bf16 %v3562_v54 }
 0x287   : > { %v3307_v22 = vsel %vm1739_vm11, %v3304_v40, %v3306_v49  ;;  %v3444_v3 = vrot.slane %v3384_v47, 2  ;;  %v3341_v2 = vadd.f32 %v3305_v56, %v3200_v58  ;;  %v3447_v43 = vrot.slane %v3386_v12, 2 }
 0x288   : > { %v3342_v62 = vadd.f32 %v3307_v22, %v3201_v41  ;;  %v3536_v52 = vmul.f32 %v5869_v1, %v5973_v28  ;;  %v3537_v7 = vmul.f32 %v5869_v1, %v5975_v61  ;;  %v3595_v5 = vmul.f32 %v5877_v23, %v5973_v28 }
 0x289   : > { %v3446_v0 = vsel %vm1881_vm12, %v3444_v3, %v3445_v15  ;;  %v3596_v51 = vmul.f32 %v5877_v23, %v5975_v61  ;;  %v3448_v10 = vsel %vm1881_vm12, %v3445_v15, %v3447_v43  ;;  %v3597_v60 = vmul.f32 %v5877_v23, %v3570_v20 }
 0x28a   : > { %v3482_v57 = vadd.f32 %v3446_v0, %v3341_v2  ;;  %v3711_v32 = vunpack.c.l.bf16 %v3703_v17  ;;  %v3483_v35 = vadd.f32 %v3448_v10, %v3342_v62  ;;  %v3655_v18 = vrot.slane %v3595_v5, 1 }
 0x28b   : > { %v3656_v6 = vrot.slane %v3596_v51, 1  ;;  %v3737_v8 = vmul.f32 %v5886_v16, %v5975_v61  ;;  %v3658_v4 = vrot.slane %v3597_v60, 1  ;;  %v3738_v19 = vmul.f32 %v5886_v16, %v3570_v20  ;;  %v3352_v51 = vld [vmem:[#allocation2 + $0xc0] sm:$0xe] }
 0x28c   : > { %v3552_v44 = vadd.f32 %v3536_v52, %v3482_v57  ;;  %v3736_v14 = vmul.f32 %v5886_v16, %v3711_v32  ;;  %v3553_v30 = vadd.f32 %v3537_v7, %v3483_v35  ;;  %v2813_v45 = vunpack.c.l.bf16 %v2797_v37  ;;  %v3211_v52 = vld [vmem:[#allocation2 + $0xc8] sm:$0x1] }
 0x28d   : > { %v3657_v59 = vsel %vm1739_vm11, %v3655_v18, %v3656_v6  ;;  %v3797_v9 = vrot.slane %v3737_v8, 2  ;;  %v3659_v21 = vsel %vm1739_vm11, %v3656_v6, %v3658_v4  ;;  %v3799_v33 = vrot.slane %v3738_v19, 2 }
 0x28e   : > { %v3693_v46 = vadd.f32 %v3657_v59, %v3552_v44  ;;  %v3796_v50 = vrot.slane %v3736_v14, 2  ;;  %v3694_v34 = vadd.f32 %v3659_v21, %v3553_v30  ;;  %v2814_v48 = vunpack.c.h.bf16 %v2797_v37  ;;  %v3501_v30 = vld [vmem:[#allocation2 + $0xcc] sm:$0xff]  }
 0x28f   : > { %v2834_v13 = vmul.f32 %v5748_v38, %v2813_v45  ;;  %v2867_v53 = vunpack.c.l.bf16 %v2859_v11  ;;  %v3800_v58 = vsel %vm1881_vm12, %v3797_v9, %v3799_v33  ;;  %v2894_v41 = vmul.f32 %v5761_v29, %v2813_v45 }
 0x290   : > { %v3798_v36 = vsel %vm1881_vm12, %v3796_v50, %v3797_v9  ;;  %v3008_v31 = vunpack.c.l.bf16 %v3000_v24  ;;  %v3835_v39 = vadd.f32 %v3800_v58, %v3694_v34  ;;  %v2835_v40 = vmul.f32 %v5748_v38, %v2814_v48 }
 0x291   : > { %v3834_v54 = vadd.f32 %v3798_v36, %v3693_v46  ;;  %v2895_v49 = vmul.f32 %v5761_v29, %v2814_v48  ;;  %v2896_v47 = vmul.f32 %v5761_v29, %v2867_v53  ;;  %v2956_v12 = vrot.slane %v2894_v41, 1  ;;  %v3704_v41 = vld [vmem:[#allocation2 + $0xcc] sm:$0xe] }
 0x292   : > { %v3035_v15 = vmul.f32 %v5773_v26, %v3008_v31  ;;  %v3036_v56 = vmul.f32 %v5773_v26, %v2814_v48  ;;  %v3851_v3 = vadd.f32 %v5905_v63, %v3835_v39  ;;  %v3037_v17 = vmul.f32 %v5773_v26, %v2867_v53 }
 0x293   : > { %v3850_v22 = vadd.f32 %v5905_v63, %v3834_v54  ;;  %v2957_v20 = vrot.slane %v2895_v49, 1  ;;  %v2959_v2 = vrot.slane %v2896_v47, 1  ;;  %v3186_v38 = vmul.f32 %v5833_v27, %v5973_v28 }
 0x294   : > { %v3097_v62 = vrot.slane %v3035_v15, 2  ;;  %v3098_v43 = vrot.slane %v3036_v56, 2  ;;  %v3867_v0 = vmax.f32 %v3851_v3, 0.0  ;;  %v3100_v5 = vrot.slane %v3037_v17, 2 }
 0x295   : > { %v3866_v29 = vmax.f32 %v3850_v22, 0.0  ;;  %v2958_v7 = vsel %vm1739_vm11, %v2956_v12, %v2957_v20  ;;  %v2960_v10 = vsel %vm1739_vm11, %v2957_v20, %v2959_v2  ;;  %v3187_v26 = vmul.f32 %v5833_v27, %v5975_v61 }
 0x296   : > { %v2991_v57 = vadd.f32 %v2958_v7, %v2834_v13  ;;  %v3099_v60 = vsel %vm1881_vm12, %v3097_v62, %v3098_v43  ;;  %v2992_v37 = vadd.f32 %v2960_v10, %v2835_v40  ;;  %v3101_v35 = vsel %vm1881_vm12, %v3098_v43, %v3100_v5 }
 0x297   : > { %v3876_v32 = vpack.c.bf16 %v3867_v0, %v3866_v29  ;;  %v3219_v18 = vunpack.c.l.bf16 %v3211_v52  ;;  %v3246_v8 = vmul.f32 %v5846_v42, %v5973_v28  ;;  %v3247_v44 = vmul.f32 %v5846_v42, %v5975_v61  ;;  %v3563_v28 = vld [vmem:[#allocation2 + $0xd4] sm:$0x1]  ;;  %v1600_v29 = vld [vmem:[%s6076_s6] sm:$0x3] }
 0x298   : > { %v3132_v6 = vadd.f32 %v3099_v60, %v2991_v57  ;;  %v3360_v4 = vunpack.c.l.bf16 %v3352_v51  ;;  %v3133_v19 = vadd.f32 %v3101_v35, %v2992_v37  ;;  %v3388_v27 = vmul.f32 %v5857_v55, %v5975_v61  ;;  %4447 = vmatmul.mubr.msk.bf16.vlgmr.msra.gmra.mrb[24].mxu1 %vm2711_vm13, %v1600_v29 }
 0x299   : > { %v3897_v14 = vsel %vm2711_vm13, %v3876_v32, 0  ;;  %v3248_v11 = vmul.f32 %v5846_v42, %v3219_v18  ;;  %v3308_v9 = vrot.slane %v3246_v8, 1  ;;  %v3309_v45 = vrot.slane %v3247_v44, 1 }
 0x29a   : > { %4463 = vmatpush3.bf16.xpose.msra.mxu0 %v3897_v14  ;;  %v3202_v59 = vadd.f32 %v3186_v38, %v3132_v6  ;;  %v3387_v24 = vmul.f32 %v5857_v55, %v3360_v4  ;;  %v3203_v21 = vadd.f32 %v3187_v26, %v3133_v19  ;;  %v3389_v50 = vmul.f32 %v5857_v55, %v3219_v18 }
 0x29b   : > { %4464 = vmatprep.subr.bf16.mxu0 %v4568_v25  ;;  %v3311_v46 = vrot.slane %v3248_v11, 1  ;;  %v3450_v33 = vrot.slane %v3388_v27, 2  ;;  %v3310_v42 = vsel %vm1739_vm11, %v3308_v9, %v3309_v45  ;;  %v3517_v48 = vunpack.c.l.bf16 %v3501_v30  ;;  %v2779_v25 = vld [vmem:[%s353_s18] sm:$0x3] }
 0x29c   : > { %v3449_v34 = vrot.slane %v3387_v24, 2  ;;  %v3518_v61 = vunpack.c.h.bf16 %v3501_v30  ;;  %v3343_v53 = vadd.f32 %v3310_v42, %v3202_v59  ;;  %v3452_v36 = vrot.slane %v3389_v50, 2  ;;  %v3942_v59 = vld [vmem:[%s353_s18 + $0x2] sm:$0x3] }
 0x29d   : > { %v3312_v13 = vsel %vm1739_vm11, %v3309_v45, %v3311_v46  ;;  %v3571_v58 = vunpack.c.l.bf16 %v3563_v28  ;;  %v3538_v39 = vmul.f32 %v5869_v1, %v3517_v48  ;;  %v3598_v47 = vmul.f32 %v5877_v23, %v3517_v48 }
 0x29e   : > { %v3344_v31 = vadd.f32 %v3312_v13, %v3203_v21  ;;  %v3451_v54 = vsel %vm1881_vm12, %v3449_v34, %v3450_v33  ;;  %v3539_v40 = vmul.f32 %v5869_v1, %v3518_v61  ;;  %v3453_v55 = vsel %vm1881_vm12, %v3450_v33, %v3452_v36 }
 0x29f   : > { %v3484_v49 = vadd.f32 %v3451_v54, %v3343_v53  ;;  %v3599_v12 = vmul.f32 %v5877_v23, %v3518_v61  ;;  %v3600_v56 = vmul.f32 %v5877_v23, %v3571_v58  ;;  %v3712_v22 = vunpack.c.l.bf16 %v3704_v41 }
 0x2a0   : > { %v3485_v15 = vadd.f32 %v3453_v55, %v3344_v31  ;;  %v3740_v3 = vmul.f32 %v5886_v16, %v3518_v61  ;;  %v3660_v17 = vrot.slane %v3598_v47, 1  ;;  %v3741_v62 = vmul.f32 %v5886_v16, %v3571_v58 }
 0x2a1   : > { %v3554_v20 = vadd.f32 %v3538_v39, %v3484_v49  ;;  %v3661_v2 = vrot.slane %v3599_v12, 1  ;;  %v3663_v1 = vrot.slane %v3600_v56, 1  ;;  %v3739_v38 = vmul.f32 %v5886_v16, %v3712_v22 }
 0x2a2   : > { %v3555_v43 = vadd.f32 %v3539_v40, %v3485_v15  ;;  %v3802_v52 = vrot.slane %v3740_v3, 2  ;;  %v3804_v23 = vrot.slane %v3741_v62, 2  ;;  %v2780_v4 = vunpack.c.l.bf16 %v2779_v25 }
 0x2a3   : > { %v3662_v0 = vsel %vm1739_vm11, %v3660_v17, %v3661_v2  ;;  %v3664_v7 = vsel %vm1739_vm11, %v3661_v2, %v3663_v1  ;;  %v3801_v51 = vrot.slane %v3739_v38, 2  ;;  %v3943_v9 = vunpack.c.l.bf16 %v3942_v59 }
 0x2a4   : > { %v3695_v5 = vadd.f32 %v3662_v0, %v3554_v20  ;;  %v3696_v10 = vadd.f32 %v3664_v7, %v3555_v43  ;;  %v3805_v16 = vsel %vm1881_vm12, %v3802_v52, %v3804_v23 }
 0x2a5   : > { %v3803_v57 = vsel %vm1881_vm12, %v3801_v51, %v3802_v52 }
 0x2a6   : > { %v3836_v60 = vadd.f32 %v3803_v57, %v3695_v5  ;;  %v3837_v26 = vadd.f32 %v3805_v16, %v3696_v10 }
 0x2a8   : > { %v3852_v32 = vadd.f32 %v5905_v63, %v3836_v60  ;;  %v3853_v37 = vadd.f32 %v5905_v63, %v3837_v26 }
 0x2aa   : > { %v3868_v35 = vmax.f32 %v3852_v32, 0.0  ;;  %v3869_v18 = vmax.f32 %v3853_v37, 0.0 }
 0x2ac   : > { %v3877_v6 = vpack.c.bf16 %v3869_v18, %v3868_v35 }
 0x2ad   : > { %v2709_v44 = vpop.permute.xlu0 %2708 }
 0x2ae   : > { %v3900_v8 = vsel %vm2711_vm13, %v3877_v6, 0 }
 0x2af   : > { %4465 = vmatpush3.bf16.xpose.msra.mxu0 %v3900_v8 }
 0x2b6   : > { %4467 = vmatmul.mubr.msk.bf16.vlgmr.msra.gmra.mrb[12].mxu0 %vm2711_vm13, %v1600_v29 }
 0x36b   : > { %v2773_v14 = vpop.f32.mrb[24].mxu1 }
 0x36c   : > { %v4448_v19 = vpop.f32.mrb[25].mxu1  ;;  %v2774_v63 = vadd.f32 %v2773_v14, %v2709_v44 }
 0x36d   : > { %v2776_v11 = vpop.f32.mrb[26].mxu1 }
 0x36e   : > { %v2781_v27 = vadd.f32 %v2780_v4, %v2774_v63  ;;  %v4449_v30 = vpop.f32.mrb[27].mxu1 }
 0x370   : > { %2782 = vst [vmem:[%s363_s22] sm:$0xf] %v2781_v27 }
 0x389   : > { %v3936_v45 = vpop.f32.mrb[12].mxu0 }
 0x38a   : > { %v3937_v24 = vadd.f32 %v3936_v45, %v2709_v44  ;;  %v4468_v28 = vpop.f32.mrb[13].mxu0 }
 0x38b   : > { %v3939_v21 = vpop.f32.mrb[14].mxu0 }
 0x38c   : > { %v3944_v46 = vadd.f32 %v3943_v9, %v3937_v24  ;;  %v4469_v50 = vpop.f32.mrb[15].mxu0 }
 0x38e   : > { %3945 = vst [vmem:[%s363_s22 + $0x4] sm:$0xf] %v3944_v46 }
 0x38f PF: > { %s18_s29 = sadd.s32 1, %s4565_s29   ;;  %s6087_s27 = smov %s4561_s28 }
 0x390   : > { %p15_p5 = scmp.ge.s32.totalorder %s18_s29, 4   ;;  %s6088_s28 = smov %s6090_s30 }
 0x392   :  { %17 = sbr.rel (!%p15_p5) target bundleno = 2 (0x2), region = 101 }

</bundles_post_ra>
